<compile_context>
chip_gen: v6e
topology: v6e:2x2x1
jax: 0.10.0
libtpu: 0.0.40
codegen_flags: <defaults>
</compile_context>

<pallas_src>
import numpy as np
import jax
import jax.numpy as jnp
from jax import lax
from jax.experimental import pallas as pl
from jax.experimental.pallas import tpu as pltpu


# --------------------------------------------------------------------------
# Host-side constant matrices (numpy; constant-folded / folded under jit).
# --------------------------------------------------------------------------
def _conv3x3_shift_mats(Hi, Wi):
    """S[k, s, p] = 1 iff source pixel s is the tap-k neighbour of dest pixel p
    under zero padding ('same' 3x3 conv).  Tap order k = 3*ky + kx."""
    HWi = Hi * Wi
    y = np.repeat(np.arange(Hi), Wi)          # dest pixel coords
    x = np.tile(np.arange(Wi), Hi)
    dst = np.arange(HWi)
    mats = np.zeros((9, HWi, HWi), np.float32)
    k = 0
    for oy in (-1, 0, 1):
        for ox in (-1, 0, 1):
            ys, xs = y + oy, x + ox
            ok = (ys >= 0) & (ys < Hi) & (xs >= 0) & (xs < Wi)
            mats[k, (ys * Wi + xs)[ok], dst[ok]] = 1.0
            k += 1
    return mats


def _pool2x2_block_gather_mats(C, Hi, Wi):
    """Block-diagonal per-channel 2x2/2 pool corner gathers:
    G[j, c*HWi + s, c*HWo + q] = 1 iff source pixel s is corner j of window q."""
    Ho, Wo = Hi // 2, Wi // 2
    HWi, HWo = Hi * Wi, Ho * Wo
    qy = np.repeat(np.arange(Ho), Wo)
    qx = np.tile(np.arange(Wo), Ho)
    q = np.arange(HWo)
    g = np.zeros((4, HWi, HWo), np.float32)
    j = 0
    for oy in (0, 1):
        for ox in (0, 1):
            g[j, (2 * qy + oy) * Wi + (2 * qx + ox), q] = 1.0
            j += 1
    out = np.zeros((4, C * HWi, C * HWo), np.float32)
    for c in range(C):
        out[:, c * HWi:(c + 1) * HWi, c * HWo:(c + 1) * HWo] = g
    return out


# --------------------------------------------------------------------------
# Kernel: ~11 lane-dense matmuls + VPU elementwise, batch folded into M.
# --------------------------------------------------------------------------
def _cnn_kernel(x_ref, m1_ref, bias1_ref, sc1_ref, sh1_ref, g1_ref,
                m2_ref, bias2_ref, sc2_ref, sh2_ref, g2_ref,
                wfc_ref, bfc_ref, out_ref):
    f32 = jnp.float32
    bf16 = jnp.bfloat16

    def conv_relu_bn(act, m_ref, bias_ref, sc_ref, sh_ref):
        # Single MXU matmul per conv stage: (B, Cin*HW) @ (Cin*HW, Cout*HW).
        y = jnp.dot(act.astype(bf16), m_ref[...], preferred_element_type=f32)
        y = jnp.maximum(y + bias_ref[...], 0.0)           # conv bias + ReLU
        return y * sc_ref[...] + sh_ref[...]              # BatchNorm (eval, folded)

    def maxpool2x2(act, g_ref):
        # Max over 4 block-diagonal corner gathers (one matmul per corner).
        a = act.astype(bf16)
        p = jnp.dot(a, g_ref[0], preferred_element_type=f32)
        for j in range(1, 4):
            p = jnp.maximum(p, jnp.dot(a, g_ref[j], preferred_element_type=f32))
        return p

    a1 = conv_relu_bn(x_ref[...], m1_ref, bias1_ref, sc1_ref, sh1_ref)   # (B, OC*HW)
    p1 = maxpool2x2(a1, g1_ref)                                          # (B, OC*HW/4)
    a2 = conv_relu_bn(p1, m2_ref, bias2_ref, sc2_ref, sh2_ref)           # (B, OC*HW/4)
    p2 = maxpool2x2(a2, g2_ref)                                          # (B, OC*HW/16)

    # p2 is already torch's channel-major NCHW flatten -> fc1 is one matmul.
    logits = jnp.dot(p2.astype(bf16), wfc_ref[...], preferred_element_type=f32)
    logits = logits + bfc_ref[...]                                       # (B, n_cls)

    # Softmax over classes (dim=1).
    m = jnp.max(logits, axis=-1, keepdims=True)
    e = jnp.exp(logits - m)
    out_ref[...] = (e / jnp.sum(e, axis=-1, keepdims=True)).astype(out_ref.dtype)


# --------------------------------------------------------------------------
# Wrapper: all layout plumbing / algebraic folding done here.
# --------------------------------------------------------------------------
@jax.jit
def cnn_forward(x, params):
    """x: (B, C, H, W) float32.  Returns softmax probabilities (B, 5) float32."""
    (w1, b1, bn1_g, bn1_b, bn1_m, bn1_v,
     w2, b2, bn2_g, bn2_b, bn2_m, bn2_v, wfc, bfc) = params
    B, C, H, W = x.shape
    OC = w1.shape[0]
    n_cls = wfc.shape[0]
    H2, W2 = H // 2, W // 2
    H4, W4 = H2 // 2, W2 // 2
    HW, HW2, HW4 = H * W, H2 * W2, H4 * W4
    eps = 1e-5

    # --- Fold conv tap weights into combined matrices ---------------------
    #   m[ci*HW + s, co*HW + p] = sum_k W[co, ci, k] * S[k, s, p]
    S1 = _conv3x3_shift_mats(H, W)            # (9, HW,  HW), 0/1
    S2 = _conv3x3_shift_mats(H2, W2)          # (9, HW2, HW2)
    w1_taps = jnp.transpose(w1, (2, 3, 0, 1)).reshape(9, OC, C)    # tap k = 3*ky+kx
    w2_taps = jnp.transpose(w2, (2, 3, 0, 1)).reshape(9, OC, OC)
    m1 = jnp.einsum('koi,ksp->isop', w1_taps, S1).reshape(C * HW, OC * HW)
    m2 = jnp.einsum('koi,ksp->isop', w2_taps, S2).reshape(OC * HW2, OC * HW2)

    # --- Conv bias / eval-mode BatchNorm folded to (1, Cout*HW) vectors ----
    sc1 = bn1_g / jnp.sqrt(bn1_v + eps)
    sc2 = bn2_g / jnp.sqrt(bn2_v + eps)
    bias1 = jnp.repeat(b1, HW).reshape(1, OC * HW)
    scale1 = jnp.repeat(sc1, HW).reshape(1, OC * HW)
    shift1 = jnp.repeat(bn1_b - bn1_m * sc1, HW).reshape(1, OC * HW)
    bias2 = jnp.repeat(b2, HW2).reshape(1, OC * HW2)
    scale2 = jnp.repeat(sc2, HW2).reshape(1, OC * HW2)
    shift2 = jnp.repeat(bn2_b - bn2_m * sc2, HW2).reshape(1, OC * HW2)

    # --- Block-diagonal 0/1 pool gathers (exact in bf16) -------------------
    g1 = jnp.asarray(_pool2x2_block_gather_mats(OC, H, W), jnp.bfloat16)
    g2 = jnp.asarray(_pool2x2_block_gather_mats(OC, H2, W2), jnp.bfloat16)

    # fc1 weight (n_cls, OC*H4*W4) -> (OC*H4*W4, n_cls); matches channel-major flatten.
    wfc_r = jnp.transpose(wfc, (1, 0)).astype(jnp.bfloat16)
    bfc_r = bfc.reshape(1, n_cls)

    # bf16 matmul operands, f32 accumulation everywhere in the kernel.
    m1_bf = m1.astype(jnp.bfloat16)
    m2_bf = m2.astype(jnp.bfloat16)
    x_flat = x.reshape(B, C * HW)             # channel-major, row-major spatial

    flops = 2 * B * (C * HW * OC * HW              # conv1
                     + 4 * OC * HW * OC * HW2      # pool1 (4 corners)
                     + OC * HW2 * OC * HW2         # conv2
                     + 4 * OC * HW2 * OC * HW4     # pool2
                     + OC * HW4 * n_cls)           # fc1
    operands = (x_flat, m1_bf, bias1, scale1, shift1, g1,
                m2_bf, bias2, scale2, shift2, g2, wfc_r, bfc_r)
    bytes_accessed = sum(int(np.prod(a.shape)) * a.dtype.itemsize for a in operands)
    bytes_accessed += B * n_cls * 4

    vmem = pl.BlockSpec(memory_space=pltpu.MemorySpace.VMEM)
    return pl.pallas_call(
        _cnn_kernel,
        out_shape=jax.ShapeDtypeStruct((B, n_cls), jnp.float32),
        in_specs=[vmem] * len(operands),
        out_specs=vmem,
        cost_estimate=pl.CostEstimate(flops=int(flops),
                                      transcendentals=int(B * n_cls),
                                      bytes_accessed=int(bytes_accessed)),
    )(*operands)


# --------------------------------------------------------------------------
# Pure-JAX f32 reference (conv -> ReLU -> BN(eval) -> pool, x2, fc, softmax)
# --------------------------------------------------------------------------
def _cnn_reference(x, params):
    (w1, b1, bn1_g, bn1_b, bn1_m, bn1_v,
     w2, b2, bn2_g, bn2_b, bn2_m, bn2_v, wfc, bfc) = params
    eps = 1e-5

    def conv(a, w, b):
        y = lax.conv_general_dilated(a, w, (1, 1), 'SAME',
                                     dimension_numbers=('NCHW', 'OIHW', 'NCHW'))
        return y + b[None, :, None, None]

    def bn(a, g, be, m, v):
        return (a - m[None, :, None, None]) / jnp.sqrt(v[None, :, None, None] + eps) \
               * g[None, :, None, None] + be[None, :, None, None]

    def pool(a):
        return lax.reduce_window(a, -jnp.inf, lax.max, (1, 1, 2, 2), (1, 1, 2, 2), 'VALID')

    y = pool(bn(jax.nn.relu(conv(x, w1, b1)), bn1_g, bn1_b, bn1_m, bn1_v))
    y = pool(bn(jax.nn.relu(conv(y, w2, b2)), bn2_g, bn2_b, bn2_m, bn2_v))
    y = y.reshape(y.shape[0], -1)
    return jax.nn.softmax(y @ wfc.T + bfc, axis=1)


# --------------------------------------------------------------------------
# Deterministic synthetic parameters (PyTorch layouts)
# --------------------------------------------------------------------------
def init_params(key, in_ch, out_ch, H, W, n_cls=5):
    flat = out_ch * (H // 4) * (W // 4)
    ks = jax.random.split(key, 14)

    def rnd(i, shape, scale=0.1):
        return scale * jax.random.normal(ks[i], shape, jnp.float32)

    w1 = rnd(0, (out_ch, in_ch, 3, 3))
    b1 = rnd(1, (out_ch,))
    bn1_gamma = 1.0 + rnd(2, (out_ch,))
    bn1_beta = rnd(3, (out_ch,))
    bn1_mean = rnd(4, (out_ch,))
    bn1_var = jnp.abs(1.0 + rnd(5, (out_ch,)))
    w2 = rnd(6, (out_ch, out_ch, 3, 3))
    b2 = rnd(7, (out_ch,))
    bn2_gamma = 1.0 + rnd(8, (out_ch,))
    bn2_beta = rnd(9, (out_ch,))
    bn2_mean = rnd(10, (out_ch,))
    bn2_var = jnp.abs(1.0 + rnd(11, (out_ch,)))
    wfc = rnd(12, (n_cls, flat))
    bfc = rnd(13, (n_cls,))
    return (w1, b1, bn1_gamma, bn1_beta, bn1_mean, bn1_var,
            w2, b2, bn2_gamma, bn2_beta, bn2_mean, bn2_var, wfc, bfc)


if __name__ == "__main__":
    key = jax.random.PRNGKey(0)
    k_x, k_p = jax.random.split(key)

    B, C, H, W = 2, 4, 16, 16
    OC = 4  # out_channels == in_channels (see NOTE at top)

    x = jax.random.normal(k_x, (B, C, H, W), jnp.float32)
    params = init_params(k_p, C, OC, H, W)

    out = cnn_forward(x, params)
    jax.block_until_ready(out)

    assert out.shape == (B, 5) and out.dtype == jnp.float32
    # softmax rows must sum to ~1
    assert bool(jnp.all(jnp.abs(jnp.sum(out, axis=1) - 1.0) < 1e-3))
    # compare against the f32 XLA reference (bf16 matmul operands -> loose tol)
    ref = _cnn_reference(x, params)
    assert bool(jnp.all(jnp.abs(out - ref) < 3e-2)), "mismatch vs reference"
    print("KERNEL_OK")
</pallas_src>

<mosaic_0001>
module attributes {stable_mosaic.version = 11 : i64} {
  func.func @_cnn_kernel(%arg0: memref<2x1024xf32, #tpu.memory_space<vmem>>, %arg1: memref<1024x1024xbf16, #tpu.memory_space<vmem>>, %arg2: memref<1x1024xf32, #tpu.memory_space<vmem>>, %arg3: memref<1x1024xf32, #tpu.memory_space<vmem>>, %arg4: memref<1x1024xf32, #tpu.memory_space<vmem>>, %arg5: memref<4x1024x256xbf16, #tpu.memory_space<vmem>>, %arg6: memref<256x256xbf16, #tpu.memory_space<vmem>>, %arg7: memref<1x256xf32, #tpu.memory_space<vmem>>, %arg8: memref<1x256xf32, #tpu.memory_space<vmem>>, %arg9: memref<1x256xf32, #tpu.memory_space<vmem>>, %arg10: memref<4x256x64xbf16, #tpu.memory_space<vmem>>, %arg11: memref<64x5xbf16, #tpu.memory_space<vmem>>, %arg12: memref<1x5xf32, #tpu.memory_space<vmem>>, %arg13: memref<2x5xf32, #tpu.memory_space<vmem>>) attributes {dimension_semantics = [], scalar_prefetch = 0 : i64, scratch_operands = 0 : i64, tpu.core_type = #tpu.core_type<tc>} {
    %c0 = arith.constant 0 : index
    %c0_0 = arith.constant 0 : index
    %0 = vector.load %arg0[%c0, %c0_0] : memref<2x1024xf32, #tpu.memory_space<vmem>>, vector<2x1024xf32>
    %1 = arith.truncf %0 : vector<2x1024xf32> to vector<2x1024xbf16>
    %c0_1 = arith.constant 0 : index
    %c0_2 = arith.constant 0 : index
    %2 = vector.load %arg1[%c0_1, %c0_2] : memref<1024x1024xbf16, #tpu.memory_space<vmem>>, vector<1024x1024xbf16>
    %cst = arith.constant dense<0.000000e+00> : vector<2x1024xf32>
    %3 = tpu.matmul %1, %2, %cst {dimension_numbers = #tpu.dot_dimension_numbers<[1], [0], [0], [1], [0, 0, 1, 1], [], []>} : vector<2x1024xbf16>, vector<1024x1024xbf16>, vector<2x1024xf32> -> vector<2x1024xf32>
    %c0_3 = arith.constant 0 : index
    %c0_4 = arith.constant 0 : index
    %4 = vector.load %arg2[%c0_3, %c0_4] : memref<1x1024xf32, #tpu.memory_space<vmem>>, vector<1x1024xf32>
    %5 = vector.broadcast %4 : vector<1x1024xf32> to vector<2x1024xf32>
    %6 = arith.addf %3, %5 : vector<2x1024xf32>
    %cst_5 = arith.constant 0.000000e+00 : f32
    %7 = vector.broadcast %cst_5 : f32 to vector<2x1024xf32>
    %8 = arith.maximumf %6, %7 : vector<2x1024xf32>
    %c0_6 = arith.constant 0 : index
    %c0_7 = arith.constant 0 : index
    %9 = vector.load %arg3[%c0_6, %c0_7] : memref<1x1024xf32, #tpu.memory_space<vmem>>, vector<1x1024xf32>
    %10 = vector.broadcast %9 : vector<1x1024xf32> to vector<2x1024xf32>
    %11 = arith.mulf %8, %10 : vector<2x1024xf32>
    %c0_8 = arith.constant 0 : index
    %c0_9 = arith.constant 0 : index
    %12 = vector.load %arg4[%c0_8, %c0_9] : memref<1x1024xf32, #tpu.memory_space<vmem>>, vector<1x1024xf32>
    %13 = vector.broadcast %12 : vector<1x1024xf32> to vector<2x1024xf32>
    %14 = arith.addf %11, %13 : vector<2x1024xf32>
    %15 = arith.truncf %14 : vector<2x1024xf32> to vector<2x1024xbf16>
    %c0_10 = arith.constant 0 : index
    %c0_11 = arith.constant 0 : index
    %c0_12 = arith.constant 0 : index
    %16 = vector.load %arg5[%c0_10, %c0_11, %c0_12] : memref<4x1024x256xbf16, #tpu.memory_space<vmem>>, vector<1x1024x256xbf16>
    %17 = vector.shape_cast %16 : vector<1x1024x256xbf16> to vector<1024x256xbf16>
    %cst_13 = arith.constant dense<0.000000e+00> : vector<2x256xf32>
    %18 = tpu.matmul %15, %17, %cst_13 {dimension_numbers = #tpu.dot_dimension_numbers<[1], [0], [0], [1], [0, 0, 1, 1], [], []>} : vector<2x1024xbf16>, vector<1024x256xbf16>, vector<2x256xf32> -> vector<2x256xf32>
    %c1 = arith.constant 1 : index
    %c0_14 = arith.constant 0 : index
    %c0_15 = arith.constant 0 : index
    %19 = vector.load %arg5[%c1, %c0_14, %c0_15] : memref<4x1024x256xbf16, #tpu.memory_space<vmem>>, vector<1x1024x256xbf16>
    %20 = vector.shape_cast %19 : vector<1x1024x256xbf16> to vector<1024x256xbf16>
    %cst_16 = arith.constant dense<0.000000e+00> : vector<2x256xf32>
    %21 = tpu.matmul %15, %20, %cst_16 {dimension_numbers = #tpu.dot_dimension_numbers<[1], [0], [0], [1], [0, 0, 1, 1], [], []>} : vector<2x1024xbf16>, vector<1024x256xbf16>, vector<2x256xf32> -> vector<2x256xf32>
    %22 = arith.maximumf %18, %21 : vector<2x256xf32>
    %c2 = arith.constant 2 : index
    %c0_17 = arith.constant 0 : index
    %c0_18 = arith.constant 0 : index
    %23 = vector.load %arg5[%c2, %c0_17, %c0_18] : memref<4x1024x256xbf16, #tpu.memory_space<vmem>>, vector<1x1024x256xbf16>
    %24 = vector.shape_cast %23 : vector<1x1024x256xbf16> to vector<1024x256xbf16>
    %cst_19 = arith.constant dense<0.000000e+00> : vector<2x256xf32>
    %25 = tpu.matmul %15, %24, %cst_19 {dimension_numbers = #tpu.dot_dimension_numbers<[1], [0], [0], [1], [0, 0, 1, 1], [], []>} : vector<2x1024xbf16>, vector<1024x256xbf16>, vector<2x256xf32> -> vector<2x256xf32>
    %26 = arith.maximumf %22, %25 : vector<2x256xf32>
    %c3 = arith.constant 3 : index
    %c0_20 = arith.constant 0 : index
    %c0_21 = arith.constant 0 : index
    %27 = vector.load %arg5[%c3, %c0_20, %c0_21] : memref<4x1024x256xbf16, #tpu.memory_space<vmem>>, vector<1x1024x256xbf16>
    %28 = vector.shape_cast %27 : vector<1x1024x256xbf16> to vector<1024x256xbf16>
    %cst_22 = arith.constant dense<0.000000e+00> : vector<2x256xf32>
    %29 = tpu.matmul %15, %28, %cst_22 {dimension_numbers = #tpu.dot_dimension_numbers<[1], [0], [0], [1], [0, 0, 1, 1], [], []>} : vector<2x1024xbf16>, vector<1024x256xbf16>, vector<2x256xf32> -> vector<2x256xf32>
    %30 = arith.maximumf %26, %29 : vector<2x256xf32>
    %31 = arith.truncf %30 : vector<2x256xf32> to vector<2x256xbf16>
    %c0_23 = arith.constant 0 : index
    %c0_24 = arith.constant 0 : index
    %32 = vector.load %arg6[%c0_23, %c0_24] : memref<256x256xbf16, #tpu.memory_space<vmem>>, vector<256x256xbf16>
    %cst_25 = arith.constant dense<0.000000e+00> : vector<2x256xf32>
    %33 = tpu.matmul %31, %32, %cst_25 {dimension_numbers = #tpu.dot_dimension_numbers<[1], [0], [0], [1], [0, 0, 1, 1], [], []>} : vector<2x256xbf16>, vector<256x256xbf16>, vector<2x256xf32> -> vector<2x256xf32>
    %c0_26 = arith.constant 0 : index
    %c0_27 = arith.constant 0 : index
    %34 = vector.load %arg7[%c0_26, %c0_27] : memref<1x256xf32, #tpu.memory_space<vmem>>, vector<1x256xf32>
    %35 = vector.broadcast %34 : vector<1x256xf32> to vector<2x256xf32>
    %36 = arith.addf %33, %35 : vector<2x256xf32>
    %cst_28 = arith.constant 0.000000e+00 : f32
    %37 = vector.broadcast %cst_28 : f32 to vector<2x256xf32>
    %38 = arith.maximumf %36, %37 : vector<2x256xf32>
    %c0_29 = arith.constant 0 : index
    %c0_30 = arith.constant 0 : index
    %39 = vector.load %arg8[%c0_29, %c0_30] : memref<1x256xf32, #tpu.memory_space<vmem>>, vector<1x256xf32>
    %40 = vector.broadcast %39 : vector<1x256xf32> to vector<2x256xf32>
    %41 = arith.mulf %38, %40 : vector<2x256xf32>
    %c0_31 = arith.constant 0 : index
    %c0_32 = arith.constant 0 : index
    %42 = vector.load %arg9[%c0_31, %c0_32] : memref<1x256xf32, #tpu.memory_space<vmem>>, vector<1x256xf32>
    %43 = vector.broadcast %42 : vector<1x256xf32> to vector<2x256xf32>
    %44 = arith.addf %41, %43 : vector<2x256xf32>
    %45 = arith.truncf %44 : vector<2x256xf32> to vector<2x256xbf16>
    %c0_33 = arith.constant 0 : index
    %c0_34 = arith.constant 0 : index
    %c0_35 = arith.constant 0 : index
    %46 = vector.load %arg10[%c0_33, %c0_34, %c0_35] : memref<4x256x64xbf16, #tpu.memory_space<vmem>>, vector<1x256x64xbf16>
    %47 = vector.shape_cast %46 : vector<1x256x64xbf16> to vector<256x64xbf16>
    %cst_36 = arith.constant dense<0.000000e+00> : vector<2x64xf32>
    %48 = tpu.matmul %45, %47, %cst_36 {dimension_numbers = #tpu.dot_dimension_numbers<[1], [0], [0], [1], [0, 0, 1, 1], [], []>} : vector<2x256xbf16>, vector<256x64xbf16>, vector<2x64xf32> -> vector<2x64xf32>
    %c1_37 = arith.constant 1 : index
    %c0_38 = arith.constant 0 : index
    %c0_39 = arith.constant 0 : index
    %49 = vector.load %arg10[%c1_37, %c0_38, %c0_39] : memref<4x256x64xbf16, #tpu.memory_space<vmem>>, vector<1x256x64xbf16>
    %50 = vector.shape_cast %49 : vector<1x256x64xbf16> to vector<256x64xbf16>
    %cst_40 = arith.constant dense<0.000000e+00> : vector<2x64xf32>
    %51 = tpu.matmul %45, %50, %cst_40 {dimension_numbers = #tpu.dot_dimension_numbers<[1], [0], [0], [1], [0, 0, 1, 1], [], []>} : vector<2x256xbf16>, vector<256x64xbf16>, vector<2x64xf32> -> vector<2x64xf32>
    %52 = arith.maximumf %48, %51 : vector<2x64xf32>
    %c2_41 = arith.constant 2 : index
    %c0_42 = arith.constant 0 : index
    %c0_43 = arith.constant 0 : index
    %53 = vector.load %arg10[%c2_41, %c0_42, %c0_43] : memref<4x256x64xbf16, #tpu.memory_space<vmem>>, vector<1x256x64xbf16>
    %54 = vector.shape_cast %53 : vector<1x256x64xbf16> to vector<256x64xbf16>
    %cst_44 = arith.constant dense<0.000000e+00> : vector<2x64xf32>
    %55 = tpu.matmul %45, %54, %cst_44 {dimension_numbers = #tpu.dot_dimension_numbers<[1], [0], [0], [1], [0, 0, 1, 1], [], []>} : vector<2x256xbf16>, vector<256x64xbf16>, vector<2x64xf32> -> vector<2x64xf32>
    %56 = arith.maximumf %52, %55 : vector<2x64xf32>
    %c3_45 = arith.constant 3 : index
    %c0_46 = arith.constant 0 : index
    %c0_47 = arith.constant 0 : index
    %57 = vector.load %arg10[%c3_45, %c0_46, %c0_47] : memref<4x256x64xbf16, #tpu.memory_space<vmem>>, vector<1x256x64xbf16>
    %58 = vector.shape_cast %57 : vector<1x256x64xbf16> to vector<256x64xbf16>
    %cst_48 = arith.constant dense<0.000000e+00> : vector<2x64xf32>
    %59 = tpu.matmul %45, %58, %cst_48 {dimension_numbers = #tpu.dot_dimension_numbers<[1], [0], [0], [1], [0, 0, 1, 1], [], []>} : vector<2x256xbf16>, vector<256x64xbf16>, vector<2x64xf32> -> vector<2x64xf32>
    %60 = arith.maximumf %56, %59 : vector<2x64xf32>
    %61 = arith.truncf %60 : vector<2x64xf32> to vector<2x64xbf16>
    %c0_49 = arith.constant 0 : index
    %c0_50 = arith.constant 0 : index
    %62 = vector.load %arg11[%c0_49, %c0_50] : memref<64x5xbf16, #tpu.memory_space<vmem>>, vector<64x5xbf16>
    %cst_51 = arith.constant dense<0.000000e+00> : vector<2x5xf32>
    %63 = tpu.matmul %61, %62, %cst_51 {dimension_numbers = #tpu.dot_dimension_numbers<[1], [0], [0], [1], [0, 0, 1, 1], [], []>} : vector<2x64xbf16>, vector<64x5xbf16>, vector<2x5xf32> -> vector<2x5xf32>
    %c0_52 = arith.constant 0 : index
    %c0_53 = arith.constant 0 : index
    %64 = vector.load %arg12[%c0_52, %c0_53] : memref<1x5xf32, #tpu.memory_space<vmem>>, vector<1x5xf32>
    %65 = vector.broadcast %64 : vector<1x5xf32> to vector<2x5xf32>
    %66 = arith.addf %63, %65 : vector<2x5xf32>
    %cst_54 = arith.constant dense<0xFF800000> : vector<2xf32>
    %67 = vector.multi_reduction <maximumf>, %66, %cst_54 [1] : vector<2x5xf32> to vector<2xf32>
    %68 = vector.shape_cast %67 : vector<2xf32> to vector<2x1xf32>
    %69 = vector.broadcast %68 : vector<2x1xf32> to vector<2x5xf32>
    %70 = arith.subf %66, %69 : vector<2x5xf32>
    %71 = math.exp %70 : vector<2x5xf32>
    %cst_55 = arith.constant dense<0.000000e+00> : vector<2xf32>
    %72 = vector.multi_reduction <add>, %71, %cst_55 [1] : vector<2x5xf32> to vector<2xf32>
    %73 = vector.shape_cast %72 : vector<2xf32> to vector<2x1xf32>
    %74 = vector.broadcast %73 : vector<2x1xf32> to vector<2x5xf32>
    %75 = arith.divf %71, %74 : vector<2x5xf32>
    %c0_56 = arith.constant 0 : index
    %c0_57 = arith.constant 0 : index
    %76 = vector.load %arg13[%c0_56, %c0_57] : memref<2x5xf32, #tpu.memory_space<vmem>>, vector<2x5xf32>
    tpu.vector_store %arg13[%c0_56, %c0_57], %75 {strides = array<i32>} : memref<2x5xf32, #tpu.memory_space<vmem>>, vector<2x5xf32>,
    return
  }
}

</mosaic_0001>

<bundles_post_ra>
// kernel: cnn_forward.1
= control target key start
LH: loop header
LB: loop body
LE: loop exit
PB: predicated region body
PF: predicated region fallthrough
CT: control target
= control target key end

     0   :  { %v11420_v32 = vmov 1983009808   ;;  %v54_v34 = vlaneseq  ;;  %s15222_s0 = inlined_call_operand.vmem [shape: f32[2,1024], index: 0, kind: input, shape index: {}]   ;;  %s15223_s1 = inlined_call_operand.vmem [shape: bf16[1024,1024], index: 1, kind: input, shape index: {}]   ;;  %s15224_s2 = inlined_call_operand.vmem [shape: f32[1,1024], index: 2, kind: input, shape index: {}]   ;;  %s15225_s3 = inlined_call_operand.vmem [shape: f32[1,1024], index: 3, kind: input, shape index: {}]   ;;  %s15226_s4 = inlined_call_operand.vmem [shape: f32[1,1024], index: 4, kind: input, shape index: {}]   ;;  %s15227_s5 = inlined_call_operand.vmem [shape: bf16[4,1024,256], index: 5, kind: input, shape index: {}]   ;;  %s15228_s6 = inlined_call_operand.vmem [shape: bf16[256,256], index: 6, kind: input, shape index: {}]   ;;  %s15229_s7 = inlined_call_operand.vmem [shape: f32[1,256], index: 7, kind: input, shape index: {}]   ;;  %s15230_s8 = inlined_call_operand.vmem [shape: f32[1,256], index: 8, kind: input, shape index: {}]   ;;  %s15231_s9 = inlined_call_operand.vmem [shape: f32[1,256], index: 9, kind: input, shape index: {}]   ;;  %s15232_s10 = inlined_call_operand.vmem [shape: bf16[4,256,64], index: 10, kind: input, shape index: {}]   ;;  %s15233_s11 = inlined_call_operand.vmem [shape: bf16[64,5], index: 11, kind: input, shape index: {}]   ;;  %s15234_s12 = inlined_call_operand.vmem [shape: f32[1,5], index: 12, kind: input, shape index: {}]   ;;  %s15235_s13 = inlined_call_operand.hbm [shape: f32[2,5], index: 13, kind: output, shape index: {}]  }
   0x1   :  { %v156_v0 = vld [vmem:[%s15223_s1 + $0x1c0] sm:$0xff]  ;;  %v52_v33 = vunpack.c.l.s4 %v11420_v32 }
   0x2   :  { %v160_v1 = vld [vmem:[%s15223_s1 + $0x1e0] sm:$0xff]  ;;  %v11560_v44 = vshrl.u32 %v54_v34, 7 }
   0x3   :  { %v284_v2 = vld [vmem:[%s15223_s1 + $0x5c0] sm:$0xff]  ;;  %v8848_v3 = vcombine.high %v156_v0, %v160_v1  ;;  %v8847_v5 = vcombine.low %v156_v0, %v160_v1  ;;  %v53_v43 = vunpack.c.0.s8 %v52_v33 }
   0x4   :  { %v288_v4 = vld [vmem:[%s15223_s1 + $0x5e0] sm:$0xff] }
   0x5   :  { %v148_v6 = vld [vmem:[%s15223_s1 + $0x180] sm:$0xff]  ;;  %v8976_v8 = vcombine.high %v284_v2, %v288_v4  ;;  %v8975_v9 = vcombine.low %v284_v2, %v288_v4  ;;  %3214 = vmatprep.subr.bf16.mxu0 %v8848_v3  ;;  %v11575_v53 = vsub.s32 %v53_v43, %v11560_v44 }
   0x6   :  { %v152_v7 = vld [vmem:[%s15223_s1 + $0x1a0] sm:$0xff]  ;;  %3215 = vmatpush1.bf16.msra.mxu0 %v8847_v5 }
   0x7   :  { %v8840_v10 = vcombine.high %v148_v6, %v152_v7  ;;  %v276_v11 = vld [vmem:[%s15223_s1 + $0x580] sm:$0xff]  ;;  %3255 = vmatprep.subr.bf16.mxu1 %v8976_v8  ;;  %v8839_v18 = vcombine.low %v148_v6, %v152_v7 }
   0x8   :  { %v280_v12 = vld [vmem:[%s15223_s1 + $0x5a0] sm:$0xff]  ;;  %3256 = vmatpush1.bf16.msra.mxu1 %v8975_v9 }
   0x9   :  { %v140_v13 = vld [vmem:[%s15223_s1 + $0x140] sm:$0xff]  ;;  %v8968_v14 = vcombine.high %v276_v11, %v280_v12  ;;  %3216 = vmatprep.subr.bf16.mxu0 %v8840_v10  ;;  %v8967_v19 = vcombine.low %v276_v11, %v280_v12 }
   0xa   :  { %v144_v15 = vld [vmem:[%s15223_s1 + $0x160] sm:$0xff]  ;;  %3217 = vmatpush1.bf16.msra.mxu0 %v8839_v18 }
   0xb   :  { %v268_v16 = vld [vmem:[%s15223_s1 + $0x540] sm:$0xff]  ;;  %v8832_v20 = vcombine.high %v140_v13, %v144_v15  ;;  %3257 = vmatprep.subr.bf16.mxu1 %v8968_v14  ;;  %v8831_v26 = vcombine.low %v140_v13, %v144_v15 }
   0xc   :  { %v272_v17 = vld [vmem:[%s15223_s1 + $0x560] sm:$0xff]  ;;  %3258 = vmatpush1.bf16.msra.mxu1 %v8967_v19 }
   0xd   :  { %v8960_v21 = vcombine.high %v268_v16, %v272_v17  ;;  %v132_v22 = vld [vmem:[%s15223_s1 + $0x100] sm:$0xff]  ;;  %3218 = vmatprep.subr.bf16.mxu0 %v8832_v20  ;;  %v8959_v27 = vcombine.low %v268_v16, %v272_v17 }
   0xe   :  { %v136_v23 = vld [vmem:[%s15223_s1 + $0x120] sm:$0xff]  ;;  %3219 = vmatpush1.bf16.msra.mxu0 %v8831_v26 }
   0xf   :  { %v260_v24 = vld [vmem:[%s15223_s1 + $0x500] sm:$0xff]  ;;  %v8824_v28 = vcombine.high %v132_v22, %v136_v23  ;;  %3259 = vmatprep.subr.bf16.mxu1 %v8960_v21  ;;  %v8823_v37 = vcombine.low %v132_v22, %v136_v23 }
  0x10   :  { %v264_v25 = vld [vmem:[%s15223_s1 + $0x520] sm:$0xff]  ;;  %3260 = vmatpush1.bf16.msra.mxu1 %v8959_v27 }
  0x11   :  { %v8952_v29 = vcombine.high %v260_v24, %v264_v25  ;;  %v124_v30 = vld [vmem:[%s15223_s1 + $0xc0] sm:$0xff]  ;;  %3220 = vmatprep.subr.bf16.mxu0 %v8824_v28  ;;  %v8951_v38 = vcombine.low %v260_v24, %v264_v25 }
  0x12   :  { %v128_v31 = vld [vmem:[%s15223_s1 + $0xe0] sm:$0xff]  ;;  %3221 = vmatpush1.bf16.msra.mxu0 %v8823_v37 }
  0x13   :  { %v252_v35 = vld [vmem:[%s15223_s1 + $0x4c0] sm:$0xff]  ;;  %v8816_v39 = vcombine.high %v124_v30, %v128_v31  ;;  %3261 = vmatprep.subr.bf16.mxu1 %v8952_v29  ;;  %v8815_v47 = vcombine.low %v124_v30, %v128_v31 }
  0x14   :  { %v256_v36 = vld [vmem:[%s15223_s1 + $0x4e0] sm:$0xff]  ;;  %3262 = vmatpush1.bf16.msra.mxu1 %v8951_v38 }
  0x15   :  { %v8944_v40 = vcombine.high %v252_v35, %v256_v36  ;;  %v116_v41 = vld [vmem:[%s15223_s1 + $0x80] sm:$0xff]  ;;  %3222 = vmatprep.subr.bf16.mxu0 %v8816_v39  ;;  %v8943_v48 = vcombine.low %v252_v35, %v256_v36 }
  0x16   :  { %v120_v42 = vld [vmem:[%s15223_s1 + $0xa0] sm:$0xff]  ;;  %3223 = vmatpush1.bf16.msra.mxu0 %v8815_v47 }
  0x17   :  { %v244_v45 = vld [vmem:[%s15223_s1 + $0x480] sm:$0xff]  ;;  %v8808_v49 = vcombine.high %v116_v41, %v120_v42  ;;  %3263 = vmatprep.subr.bf16.mxu1 %v8944_v40  ;;  %v8807_v56 = vcombine.low %v116_v41, %v120_v42 }
  0x18   :  { %v248_v46 = vld [vmem:[%s15223_s1 + $0x4a0] sm:$0xff]  ;;  %3264 = vmatpush1.bf16.msra.mxu1 %v8943_v48 }
  0x19   :  { %v8936_v50 = vcombine.high %v244_v45, %v248_v46  ;;  %v108_v51 = vld [vmem:[%s15223_s1 + $0x40] sm:$0xff]  ;;  %3224 = vmatprep.subr.bf16.mxu0 %v8808_v49  ;;  %v8935_v57 = vcombine.low %v244_v45, %v248_v46 }
  0x1a   :  { %v112_v52 = vld [vmem:[%s15223_s1 + $0x60] sm:$0xff]  ;;  %3225 = vmatpush1.bf16.msra.mxu0 %v8807_v56 }
  0x1b   :  { %v236_v54 = vld [vmem:[%s15223_s1 + $0x440] sm:$0xff]  ;;  %v8800_v58 = vcombine.high %v108_v51, %v112_v52  ;;  %3265 = vmatprep.subr.bf16.mxu1 %v8936_v50  ;;  %v8799_v3 = vcombine.low %v108_v51, %v112_v52 }
  0x1c   :  { %v240_v55 = vld [vmem:[%s15223_s1 + $0x460] sm:$0xff]  ;;  %3266 = vmatpush1.bf16.msra.mxu1 %v8935_v57 }
  0x1d   :  { %v46_v59 = vld [vmem:[%s15222_s0] sm:$0xff]  ;;  %v8928_v60 = vcombine.high %v236_v54, %v240_v55  ;;  %3226 = vmatprep.subr.bf16.mxu0 %v8800_v58  ;;  %v8927_v6 = vcombine.low %v236_v54, %v240_v55 }
  0x1e   :  { %v100_v61 = vld [vmem:[%s15223_s1] sm:$0xff]  ;;  %v11593_v63 = vrot.slane %v46_v59, %v11575_v53  ;;  %v50_v0 = vcombine.high %v46_v59, %v46_v59  ;;  %3227 = vmatpush1.bf16.msra.mxu0 %v8799_v3 }
  0x1f   :  { %v104_v62 = vld [vmem:[%s15223_s1 + $0x20] sm:$0xff]  ;;  %3267 = vmatprep.subr.bf16.mxu1 %v8928_v60 }
  0x20   :  { %v228_v1 = vld [vmem:[%s15223_s1 + $0x400] sm:$0xff]  ;;  %v65_v4 = vcombine.high %v11593_v63, %v11593_v63  ;;  %v11604_v5 = vrot.slane %v50_v0, %v11575_v53  ;;  %v8792_v7 = vcombine.high %v100_v61, %v104_v62  ;;  %v8791_v15 = vcombine.low %v100_v61, %v104_v62  ;;  %3268 = vmatpush1.bf16.msra.mxu1 %v8927_v6 }
  0x21   :  { %v232_v2 = vld [vmem:[%s15223_s1 + $0x420] sm:$0xff] }
  0x22   :  { %v8920_v8 = vcombine.high %v228_v1, %v232_v2  ;;  %v220_v9 = vld [vmem:[%s15223_s1 + $0x3c0] sm:$0xff]  ;;  %v11612_v11 = vpack.c.bf16 %v65_v4, %v65_v4  ;;  %v66_v12 = vcombine.high %v11604_v5, %v11604_v5  ;;  %3228 = vmatprep.subr.bf16.mxu0 %v8792_v7  ;;  %v8919_v17 = vcombine.low %v228_v1, %v232_v2  ;;  %v47_v4 = vld [vmem:[%s15222_s0 + $0x8] sm:$0xff] }
  0x23   :  { %v224_v10 = vld [vmem:[%s15223_s1 + $0x3e0] sm:$0xff]  ;;  %3229 = vmatpush1.bf16.msra.mxu0 %v8791_v15 }
  0x24   :  { %v348_v13 = vld [vmem:[%s15223_s1 + $0x7c0] sm:$0xff]  ;;  %3246 = vmatprep.mubr.bf16.mxu0 %v11612_v11  ;;  %v11623_v16 = vpack.c.bf16 %v66_v12, %v66_v12  ;;  %v8912_v18 = vcombine.high %v220_v9, %v224_v10  ;;  %3269 = vmatprep.subr.bf16.mxu1 %v8920_v8  ;;  %v8911_v24 = vcombine.low %v220_v9, %v224_v10 }
  0x25   :  { %v352_v14 = vld [vmem:[%s15223_s1 + $0x7e0] sm:$0xff]  ;;  %3270 = vmatpush1.bf16.msra.mxu1 %v8919_v17 }
  0x26   :  { %v9040_v19 = vcombine.high %v348_v13, %v352_v14  ;;  %v212_v20 = vld [vmem:[%s15223_s1 + $0x380] sm:$0xff]  ;;  %3287 = vmatprep.mubr.bf16.mxu1 %v11623_v16  ;;  %3230 = vmatprep.subr.bf16.mxu0 %v8912_v18  ;;  %v9039_v25 = vcombine.low %v348_v13, %v352_v14  ;;  %v67_v14 = vcombine.high %v47_v4, %v47_v4 }
  0x27   :  { %v216_v21 = vld [vmem:[%s15223_s1 + $0x3a0] sm:$0xff]  ;;  %3231 = vmatpush2.bf16.msra.mxu0 %v8911_v24 }
  0x28   :  { %v340_v22 = vld [vmem:[%s15223_s1 + $0x780] sm:$0xff]  ;;  %v8904_v26 = vcombine.high %v212_v20, %v216_v21  ;;  %3271 = vmatprep.subr.bf16.mxu1 %v9040_v19  ;;  %v8903_v32 = vcombine.low %v212_v20, %v216_v21 }
  0x29   :  { %v344_v23 = vld [vmem:[%s15223_s1 + $0x7a0] sm:$0xff]  ;;  %3272 = vmatpush2.bf16.msra.mxu1 %v9039_v25  ;;  %v11729_v25 = vrot.slane %v67_v14, %v11575_v53 }
  0x2a   :  { %v9032_v27 = vcombine.high %v340_v22, %v344_v23  ;;  %v204_v28 = vld [vmem:[%s15223_s1 + $0x340] sm:$0xff]  ;;  %3232 = vmatprep.subr.bf16.mxu0 %v8904_v26  ;;  %v9031_v33 = vcombine.low %v340_v22, %v344_v23  ;;  %v11720_v22 = vrot.slane %v47_v4, %v11575_v53 }
  0x2b   :  { %v208_v29 = vld [vmem:[%s15223_s1 + $0x360] sm:$0xff]  ;;  %3233 = vmatpush2.bf16.msra.mxu0 %v8903_v32  ;;  %v11741_v32 = vpack.c.bf16 %v11593_v63, %v11593_v63 }
  0x2c   :  { %v332_v30 = vld [vmem:[%s15223_s1 + $0x740] sm:$0xff]  ;;  %v8896_v34 = vcombine.high %v204_v28, %v208_v29  ;;  %3273 = vmatprep.subr.bf16.mxu1 %v9032_v27  ;;  %v8895_v40 = vcombine.low %v204_v28, %v208_v29  ;;  %v82_v53 = vcombine.high %v11720_v22, %v11720_v22 }
  0x2d   :  { %v336_v31 = vld [vmem:[%s15223_s1 + $0x760] sm:$0xff]  ;;  %3274 = vmatpush2.bf16.msra.mxu1 %v9031_v33 }
  0x2e   :  { %v9024_v35 = vcombine.high %v332_v30, %v336_v31  ;;  %v196_v36 = vld [vmem:[%s15223_s1 + $0x300] sm:$0xff]  ;;  %3234 = vmatprep.subr.bf16.mxu0 %v8896_v34  ;;  %v9023_v41 = vcombine.low %v332_v30, %v336_v31 }
  0x2f   :  { %v200_v37 = vld [vmem:[%s15223_s1 + $0x320] sm:$0xff]  ;;  %3235 = vmatpush2.bf16.msra.mxu0 %v8895_v40 }
  0x30   :  { %v324_v38 = vld [vmem:[%s15223_s1 + $0x700] sm:$0xff]  ;;  %v8888_v42 = vcombine.high %v196_v36, %v200_v37  ;;  %3275 = vmatprep.subr.bf16.mxu1 %v9024_v35  ;;  %v8887_v49 = vcombine.low %v196_v36, %v200_v37  ;;  %v83_v35 = vcombine.high %v11729_v25, %v11729_v25  ;;  %v11753_v36 = vpack.c.bf16 %v11604_v5, %v11604_v5 }
  0x31   :  { %v328_v39 = vld [vmem:[%s15223_s1 + $0x720] sm:$0xff]  ;;  %3276 = vmatpush2.bf16.msra.mxu1 %v9023_v41 }
  0x32   :  { %v9016_v43 = vcombine.high %v324_v38, %v328_v39  ;;  %v188_v45 = vld [vmem:[%s15223_s1 + $0x2c0] sm:$0xff]  ;;  %3236 = vmatprep.subr.bf16.mxu0 %v8888_v42  ;;  %v9015_v50 = vcombine.low %v324_v38, %v328_v39 }
  0x33   :  { %v192_v46 = vld [vmem:[%s15223_s1 + $0x2e0] sm:$0xff]  ;;  %3237 = vmatpush2.bf16.msra.mxu0 %v8887_v49 }
  0x34   :  { %v316_v47 = vld [vmem:[%s15223_s1 + $0x6c0] sm:$0xff]  ;;  %v8880_v51 = vcombine.high %v188_v45, %v192_v46  ;;  %3277 = vmatprep.subr.bf16.mxu1 %v9016_v43  ;;  %v8879_v58 = vcombine.low %v188_v45, %v192_v46  ;;  %v11767_v43 = vpack.c.bf16 %v82_v53, %v82_v53  ;;  %v11770_v45 = vpack.c.bf16 %v83_v35, %v83_v35 }
  0x35   :  { %v320_v48 = vld [vmem:[%s15223_s1 + $0x6e0] sm:$0xff]  ;;  %3278 = vmatpush2.bf16.msra.mxu1 %v9015_v50 }
  0x36   :  { %v9008_v52 = vcombine.high %v316_v47, %v320_v48  ;;  %v180_v54 = vld [vmem:[%s15223_s1 + $0x280] sm:$0xff]  ;;  %3238 = vmatprep.subr.bf16.mxu0 %v8880_v51  ;;  %v9007_v59 = vcombine.low %v316_v47, %v320_v48 }
  0x37   :  { %v184_v55 = vld [vmem:[%s15223_s1 + $0x2a0] sm:$0xff]  ;;  %3239 = vmatpush2.bf16.msra.mxu0 %v8879_v58 }
  0x38   :  { %v308_v56 = vld [vmem:[%s15223_s1 + $0x680] sm:$0xff]  ;;  %v8872_v60 = vcombine.high %v180_v54, %v184_v55  ;;  %3279 = vmatprep.subr.bf16.mxu1 %v9008_v52  ;;  %v8871_v3 = vcombine.low %v180_v54, %v184_v55 }
  0x39   :  { %v312_v57 = vld [vmem:[%s15223_s1 + $0x6a0] sm:$0xff]  ;;  %3280 = vmatpush2.bf16.msra.mxu1 %v9007_v59 }
  0x3a   :  { %v9000_v61 = vcombine.high %v308_v56, %v312_v57  ;;  %v172_v62 = vld [vmem:[%s15223_s1 + $0x240] sm:$0xff]  ;;  %3240 = vmatprep.subr.bf16.mxu0 %v8872_v60  ;;  %v8999_v6 = vcombine.low %v308_v56, %v312_v57 }
  0x3b   :  { %v176_v0 = vld [vmem:[%s15223_s1 + $0x260] sm:$0xff]  ;;  %3241 = vmatpush2.bf16.msra.mxu0 %v8871_v3 }
  0x3c   :  { %v300_v1 = vld [vmem:[%s15223_s1 + $0x640] sm:$0xff]  ;;  %v8864_v7 = vcombine.high %v172_v62, %v176_v0  ;;  %3281 = vmatprep.subr.bf16.mxu1 %v9000_v61  ;;  %v8863_v15 = vcombine.low %v172_v62, %v176_v0 }
  0x3d   :  { %v304_v2 = vld [vmem:[%s15223_s1 + $0x660] sm:$0xff]  ;;  %3282 = vmatpush2.bf16.msra.mxu1 %v8999_v6 }
  0x3e   :  { %v8992_v8 = vcombine.high %v300_v1, %v304_v2  ;;  %v164_v9 = vld [vmem:[%s15223_s1 + $0x200] sm:$0xff]  ;;  %3242 = vmatprep.subr.bf16.mxu0 %v8864_v7  ;;  %v8991_v17 = vcombine.low %v300_v1, %v304_v2 }
  0x3f   :  { %v168_v10 = vld [vmem:[%s15223_s1 + $0x220] sm:$0xff]  ;;  %3243 = vmatpush2.bf16.msra.mxu0 %v8863_v15 }
  0x40   :  { %v292_v12 = vld [vmem:[%s15223_s1 + $0x600] sm:$0xff]  ;;  %v8856_v18 = vcombine.high %v164_v9, %v168_v10  ;;  %3283 = vmatprep.subr.bf16.mxu1 %v8992_v8  ;;  %v8855_v26 = vcombine.low %v164_v9, %v168_v10 }
  0x41   :  { %v296_v13 = vld [vmem:[%s15223_s1 + $0x620] sm:$0xff]  ;;  %3284 = vmatpush2.bf16.msra.mxu1 %v8991_v17 }
  0x42   :  { %v8984_v19 = vcombine.high %v292_v12, %v296_v13  ;;  %v412_v20 = vld [vmem:[%s15223_s1 + $0x9c0] sm:$0xff]  ;;  %3244 = vmatprep.subr.bf16.mxu0 %v8856_v18  ;;  %v8983_v27 = vcombine.low %v292_v12, %v296_v13 }
  0x43   :  { %v416_v21 = vld [vmem:[%s15223_s1 + $0x9e0] sm:$0xff]  ;;  %3245 = vmatpush2.bf16.msra.mxu0 %v8855_v26 }
  0x44   :  { %v540_v23 = vld [vmem:[%s15223_s1 + $0xdc0] sm:$0xff]  ;;  %v9104_v28 = vcombine.high %v412_v20, %v416_v21  ;;  %3285 = vmatprep.subr.bf16.mxu1 %v8984_v19  ;;  %v9103_v37 = vcombine.low %v412_v20, %v416_v21 }
  0x45   :  { %v544_v24 = vld [vmem:[%s15223_s1 + $0xde0] sm:$0xff]  ;;  %3286 = vmatpush2.bf16.msra.mxu1 %v8983_v27 }
  0x46   :  { %v9232_v29 = vcombine.high %v540_v23, %v544_v24  ;;  %v404_v30 = vld [vmem:[%s15223_s1 + $0x980] sm:$0xff]  ;;  %3296 = vmatprep.subr.bf16.mxu0 %v9104_v28  ;;  %v9231_v63 = vcombine.low %v540_v23, %v544_v24  ;;  %3247 = vmatmul.mubr.bf16.vlgmr.msra.gmra.mxu0 %v11741_v32 }
  0x47   :  { %v408_v31 = vld [vmem:[%s15223_s1 + $0x9a0] sm:$0xff]  ;;  %3297 = vmatpush1.bf16.msra.mxu0 %v9103_v37  ;;  %3328 = vmatprep.mubr.bf16.mxu0 %v11767_v43 }
  0x48   :  { %v532_v33 = vld [vmem:[%s15223_s1 + $0xd80] sm:$0xff]  ;;  %v9096_v38 = vcombine.high %v404_v30, %v408_v31  ;;  %3337 = vmatprep.subr.bf16.mxu1 %v9232_v29  ;;  %3288 = vmatmul.mubr.bf16.vlgmr.msra.gmra.mxu1 %v11753_v36  ;;  %v9095_v46 = vcombine.low %v404_v30, %v408_v31 }
  0x49   :  { %v536_v34 = vld [vmem:[%s15223_s1 + $0xda0] sm:$0xff]  ;;  %3338 = vmatpush1.bf16.msra.mxu1 %v9231_v63  ;;  %3369 = vmatprep.mubr.bf16.mxu1 %v11770_v45 }
  0x4a   :  { %v396_v39 = vld [vmem:[%s15223_s1 + $0x940] sm:$0xff]  ;;  %v9224_v5 = vcombine.high %v532_v33, %v536_v34  ;;  %3298 = vmatprep.subr.bf16.mxu0 %v9096_v38  ;;  %v9223_v47 = vcombine.low %v532_v33, %v536_v34 }
  0x4b   :  { %v400_v40 = vld [vmem:[%s15223_s1 + $0x960] sm:$0xff]  ;;  %3299 = vmatpush1.bf16.msra.mxu0 %v9095_v46 }
  0x4c   :  { %v524_v41 = vld [vmem:[%s15223_s1 + $0xd40] sm:$0xff]  ;;  %v9088_v48 = vcombine.high %v396_v39, %v400_v40  ;;  %3339 = vmatprep.subr.bf16.mxu1 %v9224_v5  ;;  %v9087_v55 = vcombine.low %v396_v39, %v400_v40 }
  0x4d   :  { %v528_v42 = vld [vmem:[%s15223_s1 + $0xd60] sm:$0xff]  ;;  %3340 = vmatpush1.bf16.msra.mxu1 %v9223_v47 }
  0x4e   :  { %v388_v49 = vld [vmem:[%s15223_s1 + $0x900] sm:$0xff]  ;;  %v9216_v52 = vcombine.high %v524_v41, %v528_v42  ;;  %3300 = vmatprep.subr.bf16.mxu0 %v9088_v48  ;;  %v9215_v56 = vcombine.low %v524_v41, %v528_v42 }
  0x4f   :  { %v392_v50 = vld [vmem:[%s15223_s1 + $0x920] sm:$0xff]  ;;  %3301 = vmatpush1.bf16.msra.mxu0 %v9087_v55 }
  0x50   :  { %v516_v51 = vld [vmem:[%s15223_s1 + $0xd00] sm:$0xff]  ;;  %v9080_v57 = vcombine.high %v388_v49, %v392_v50  ;;  %3341 = vmatprep.subr.bf16.mxu1 %v9216_v52  ;;  %v9079_v0 = vcombine.low %v388_v49, %v392_v50 }
  0x51   :  { %v520_v54 = vld [vmem:[%s15223_s1 + $0xd20] sm:$0xff]  ;;  %3342 = vmatpush1.bf16.msra.mxu1 %v9215_v56 }
  0x52   :  { %v380_v58 = vld [vmem:[%s15223_s1 + $0x8c0] sm:$0xff]  ;;  %v9208_v61 = vcombine.high %v516_v51, %v520_v54  ;;  %3302 = vmatprep.subr.bf16.mxu0 %v9080_v57  ;;  %v9207_v1 = vcombine.low %v516_v51, %v520_v54 }
  0x53   :  { %v384_v59 = vld [vmem:[%s15223_s1 + $0x8e0] sm:$0xff]  ;;  %3303 = vmatpush1.bf16.msra.mxu0 %v9079_v0 }
  0x54   :  { %v508_v60 = vld [vmem:[%s15223_s1 + $0xcc0] sm:$0xff]  ;;  %v9072_v2 = vcombine.high %v380_v58, %v384_v59  ;;  %3343 = vmatprep.subr.bf16.mxu1 %v9208_v61  ;;  %v9071_v9 = vcombine.low %v380_v58, %v384_v59 }
  0x55   :  { %v512_v62 = vld [vmem:[%s15223_s1 + $0xce0] sm:$0xff]  ;;  %3344 = vmatpush1.bf16.msra.mxu1 %v9207_v1 }
  0x56   :  { %v372_v3 = vld [vmem:[%s15223_s1 + $0x880] sm:$0xff]  ;;  %v9200_v7 = vcombine.high %v508_v60, %v512_v62  ;;  %3304 = vmatprep.subr.bf16.mxu0 %v9072_v2  ;;  %v9199_v10 = vcombine.low %v508_v60, %v512_v62 }
  0x57   :  { %v376_v4 = vld [vmem:[%s15223_s1 + $0x8a0] sm:$0xff]  ;;  %3305 = vmatpush1.bf16.msra.mxu0 %v9071_v9 }
  0x58   :  { %v500_v6 = vld [vmem:[%s15223_s1 + $0xc80] sm:$0xff]  ;;  %v9064_v12 = vcombine.high %v372_v3, %v376_v4  ;;  %3345 = vmatprep.subr.bf16.mxu1 %v9200_v7  ;;  %v9063_v19 = vcombine.low %v372_v3, %v376_v4 }
  0x59   :  { %v504_v8 = vld [vmem:[%s15223_s1 + $0xca0] sm:$0xff]  ;;  %3346 = vmatpush1.bf16.msra.mxu1 %v9199_v10 }
  0x5a   :  { %v364_v13 = vld [vmem:[%s15223_s1 + $0x840] sm:$0xff]  ;;  %v9192_v17 = vcombine.high %v500_v6, %v504_v8  ;;  %3306 = vmatprep.subr.bf16.mxu0 %v9064_v12  ;;  %v9191_v20 = vcombine.low %v500_v6, %v504_v8 }
  0x5b   :  { %v368_v14 = vld [vmem:[%s15223_s1 + $0x860] sm:$0xff]  ;;  %3307 = vmatpush1.bf16.msra.mxu0 %v9063_v19 }
  0x5c   :  { %v492_v15 = vld [vmem:[%s15223_s1 + $0xc40] sm:$0xff]  ;;  %v9056_v21 = vcombine.high %v364_v13, %v368_v14  ;;  %3347 = vmatprep.subr.bf16.mxu1 %v9192_v17  ;;  %v9055_v29 = vcombine.low %v364_v13, %v368_v14 }
  0x5d   :  { %v496_v18 = vld [vmem:[%s15223_s1 + $0xc60] sm:$0xff]  ;;  %3348 = vmatpush1.bf16.msra.mxu1 %v9191_v20 }
  0x5e   :  { %v356_v23 = vld [vmem:[%s15223_s1 + $0x800] sm:$0xff]  ;;  %v9184_v27 = vcombine.high %v492_v15, %v496_v18  ;;  %3308 = vmatprep.subr.bf16.mxu0 %v9056_v21  ;;  %v9183_v30 = vcombine.low %v492_v15, %v496_v18 }
  0x5f   :  { %v360_v24 = vld [vmem:[%s15223_s1 + $0x820] sm:$0xff]  ;;  %3309 = vmatpush1.bf16.msra.mxu0 %v9055_v29 }
  0x60   :  { %v484_v26 = vld [vmem:[%s15223_s1 + $0xc00] sm:$0xff]  ;;  %v9048_v31 = vcombine.high %v356_v23, %v360_v24  ;;  %3349 = vmatprep.subr.bf16.mxu1 %v9184_v27  ;;  %v9047_v63 = vcombine.low %v356_v23, %v360_v24 }
  0x61   :  { %v488_v28 = vld [vmem:[%s15223_s1 + $0xc20] sm:$0xff]  ;;  %3350 = vmatpush1.bf16.msra.mxu1 %v9183_v30 }
  0x62   :  { %v476_v53 = vld [vmem:[%s15223_s1 + $0xbc0] sm:$0xff]  ;;  %v9176_v35 = vcombine.high %v484_v26, %v488_v28  ;;  %3310 = vmatprep.subr.bf16.mxu0 %v9048_v31  ;;  %v9175_v38 = vcombine.low %v484_v26, %v488_v28 }
  0x63   :  { %v480_v33 = vld [vmem:[%s15223_s1 + $0xbe0] sm:$0xff]  ;;  %3311 = vmatpush1.bf16.msra.mxu0 %v9047_v63 }
  0x64   :  { %v604_v34 = vld [vmem:[%s15223_s1 + $0xfc0] sm:$0xff]  ;;  %v9168_v39 = vcombine.high %v476_v53, %v480_v33  ;;  %3351 = vmatprep.subr.bf16.mxu1 %v9176_v35  ;;  %v9167_v47 = vcombine.low %v476_v53, %v480_v33 }
  0x65   :  { %v608_v37 = vld [vmem:[%s15223_s1 + $0xfe0] sm:$0xff]  ;;  %3352 = vmatpush1.bf16.msra.mxu1 %v9175_v38 }
  0x66   :  { %v468_v40 = vld [vmem:[%s15223_s1 + $0xb80] sm:$0xff]  ;;  %v9296_v42 = vcombine.high %v604_v34, %v608_v37  ;;  %3312 = vmatprep.subr.bf16.mxu0 %v9168_v39  ;;  %v9295_v48 = vcombine.low %v604_v34, %v608_v37 }
  0x67   :  { %v472_v41 = vld [vmem:[%s15223_s1 + $0xba0] sm:$0xff]  ;;  %3313 = vmatpush2.bf16.msra.mxu0 %v9167_v47  ;;  %v289_v47 = vld [vmem:[%s15223_s1 + $0x5e8] sm:$0xff] }
  0x68   :  { %v596_v5 = vld [vmem:[%s15223_s1 + $0xf80] sm:$0xff]  ;;  %v9160_v49 = vcombine.high %v468_v40, %v472_v41  ;;  %3353 = vmatprep.subr.bf16.mxu1 %v9296_v42  ;;  %v9159_v56 = vcombine.low %v468_v40, %v472_v41  ;;  %v157_v41 = vld [vmem:[%s15223_s1 + $0x1c8] sm:$0xff] }
  0x69   :  { %v600_v46 = vld [vmem:[%s15223_s1 + $0xfa0] sm:$0xff]  ;;  %3354 = vmatpush2.bf16.msra.mxu1 %v9295_v48  ;;  %v285_v42 = vld [vmem:[%s15223_s1 + $0x5c8] sm:$0xff] }
  0x6a   :  { %v460_v50 = vld [vmem:[%s15223_s1 + $0xb40] sm:$0xff]  ;;  %v9288_v54 = vcombine.high %v596_v5, %v600_v46  ;;  %3314 = vmatprep.subr.bf16.mxu0 %v9160_v49  ;;  %v9287_v57 = vcombine.low %v596_v5, %v600_v46  ;;  %v161_v5 = vld [vmem:[%s15223_s1 + $0x1e8] sm:$0xff] }
  0x6b   :  { %v464_v51 = vld [vmem:[%s15223_s1 + $0xb60] sm:$0xff]  ;;  %3315 = vmatpush2.bf16.msra.mxu0 %v9159_v56  ;;  %v281_v56 = vld [vmem:[%s15223_s1 + $0x5a8] sm:$0xff] }
  0x6c   :  { %v588_v52 = vld [vmem:[%s15223_s1 + $0xf40] sm:$0xff]  ;;  %v9152_v58 = vcombine.high %v460_v50, %v464_v51  ;;  %3355 = vmatprep.subr.bf16.mxu1 %v9288_v54  ;;  %v9151_v1 = vcombine.low %v460_v50, %v464_v51  ;;  %v8850_v50 = vcombine.high %v157_v41, %v161_v5  ;;  %v149_v51 = vld [vmem:[%s15223_s1 + $0x188] sm:$0xff] }
  0x6d   :  { %v592_v55 = vld [vmem:[%s15223_s1 + $0xf60] sm:$0xff]  ;;  %3356 = vmatpush2.bf16.msra.mxu1 %v9287_v57  ;;  %v277_v54 = vld [vmem:[%s15223_s1 + $0x588] sm:$0xff]  ;;  %v11957_v57 = vpack.c.bf16 %v11720_v22, %v11720_v22 }
  0x6e   :  { %v452_v59 = vld [vmem:[%s15223_s1 + $0xb00] sm:$0xff]  ;;  %v9280_v62 = vcombine.high %v588_v52, %v592_v55  ;;  %3316 = vmatprep.subr.bf16.mxu0 %v9152_v58  ;;  %v9279_v2 = vcombine.low %v588_v52, %v592_v55  ;;  %v153_v52 = vld [vmem:[%s15223_s1 + $0x1a8] sm:$0xff]  ;;  %v8978_v55 = vcombine.high %v285_v42, %v289_v47  ;;  %v11961_v58 = vpack.c.bf16 %v11729_v25, %v11729_v25 }
  0x6f   :  { %v456_v60 = vld [vmem:[%s15223_s1 + $0xb20] sm:$0xff]  ;;  %3317 = vmatpush2.bf16.msra.mxu0 %v9151_v1  ;;  %v8970_v22 = vcombine.high %v277_v54, %v281_v56  ;;  %v269_v25 = vld [vmem:[%s15223_s1 + $0x548] sm:$0xff] }
  0x70   :  { %v580_v61 = vld [vmem:[%s15223_s1 + $0xf00] sm:$0xff]  ;;  %v9144_v3 = vcombine.high %v452_v59, %v456_v60  ;;  %3357 = vmatprep.subr.bf16.mxu1 %v9280_v62  ;;  %v9143_v10 = vcombine.low %v452_v59, %v456_v60  ;;  %v8849_v59 = vcombine.low %v157_v41, %v161_v5  ;;  %v8977_v60 = vcombine.low %v285_v42, %v289_v47  ;;  %v141_v62 = vld [vmem:[%s15223_s1 + $0x148] sm:$0xff] }
  0x71   :  { %v584_v0 = vld [vmem:[%s15223_s1 + $0xf20] sm:$0xff]  ;;  %3358 = vmatpush2.bf16.msra.mxu1 %v9279_v2  ;;  %v273_v1 = vld [vmem:[%s15223_s1 + $0x568] sm:$0xff]  ;;  %v8841_v2 = vcombine.low %v149_v51, %v153_v52 }
  0x72   :  { %v444_v4 = vld [vmem:[%s15223_s1 + $0xac0] sm:$0xff]  ;;  %v9272_v8 = vcombine.high %v580_v61, %v584_v0  ;;  %3318 = vmatprep.subr.bf16.mxu0 %v9144_v3  ;;  %v9271_v12 = vcombine.low %v580_v61, %v584_v0  ;;  %v8842_v61 = vcombine.high %v149_v51, %v153_v52  ;;  %v145_v0 = vld [vmem:[%s15223_s1 + $0x168] sm:$0xff]  ;;  %v8969_v3 = vcombine.low %v277_v54, %v281_v56 }
  0x73   :  { %v448_v6 = vld [vmem:[%s15223_s1 + $0xae0] sm:$0xff]  ;;  %3319 = vmatpush2.bf16.msra.mxu0 %v9143_v10  ;;  %v265_v10 = vld [vmem:[%s15223_s1 + $0x528] sm:$0xff] }
  0x74   :  { %v572_v7 = vld [vmem:[%s15223_s1 + $0xec0] sm:$0xff]  ;;  %v9136_v13 = vcombine.high %v444_v4, %v448_v6  ;;  %3359 = vmatprep.subr.bf16.mxu1 %v9272_v8  ;;  %v9135_v20 = vcombine.low %v444_v4, %v448_v6  ;;  %v8834_v4 = vcombine.high %v141_v62, %v145_v0  ;;  %v133_v6 = vld [vmem:[%s15223_s1 + $0x108] sm:$0xff] }
  0x75   :  { %v576_v9 = vld [vmem:[%s15223_s1 + $0xee0] sm:$0xff]  ;;  %3360 = vmatpush2.bf16.msra.mxu1 %v9271_v12  ;;  %v261_v8 = vld [vmem:[%s15223_s1 + $0x508] sm:$0xff]  ;;  %v8833_v12 = vcombine.low %v141_v62, %v145_v0 }
  0x76   :  { %v436_v14 = vld [vmem:[%s15223_s1 + $0xa80] sm:$0xff]  ;;  %v9264_v18 = vcombine.high %v572_v7, %v576_v9  ;;  %3320 = vmatprep.subr.bf16.mxu0 %v9136_v13  ;;  %v9263_v21 = vcombine.low %v572_v7, %v576_v9  ;;  %v137_v7 = vld [vmem:[%s15223_s1 + $0x128] sm:$0xff]  ;;  %v8962_v9 = vcombine.high %v269_v25, %v273_v1  ;;  %v8961_v13 = vcombine.low %v269_v25, %v273_v1 }
  0x77   :  { %v440_v15 = vld [vmem:[%s15223_s1 + $0xaa0] sm:$0xff]  ;;  %3321 = vmatpush2.bf16.msra.mxu0 %v9135_v20  ;;  %v257_v20 = vld [vmem:[%s15223_s1 + $0x4e8] sm:$0xff] }
  0x78   :  { %v564_v17 = vld [vmem:[%s15223_s1 + $0xe80] sm:$0xff]  ;;  %v9128_v23 = vcombine.high %v436_v14, %v440_v15  ;;  %3361 = vmatprep.subr.bf16.mxu1 %v9264_v18  ;;  %v9127_v30 = vcombine.low %v436_v14, %v440_v15  ;;  %v8826_v14 = vcombine.high %v133_v6, %v137_v7  ;;  %v125_v15 = vld [vmem:[%s15223_s1 + $0xc8] sm:$0xff] }
  0x79   :  { %v568_v19 = vld [vmem:[%s15223_s1 + $0xea0] sm:$0xff]  ;;  %3362 = vmatpush2.bf16.msra.mxu1 %v9263_v21  ;;  %v253_v18 = vld [vmem:[%s15223_s1 + $0x4c8] sm:$0xff]  ;;  %v8825_v21 = vcombine.low %v133_v6, %v137_v7 }
  0x7a   :  { %v428_v24 = vld [vmem:[%s15223_s1 + $0xa40] sm:$0xff]  ;;  %v9256_v28 = vcombine.high %v564_v17, %v568_v19  ;;  %3322 = vmatprep.subr.bf16.mxu0 %v9128_v23  ;;  %v9255_v31 = vcombine.low %v564_v17, %v568_v19  ;;  %v129_v17 = vld [vmem:[%s15223_s1 + $0xe8] sm:$0xff]  ;;  %v8954_v19 = vcombine.high %v261_v8, %v265_v10  ;;  %v8953_v23 = vcombine.low %v261_v8, %v265_v10 }
  0x7b   :  { %v432_v26 = vld [vmem:[%s15223_s1 + $0xa60] sm:$0xff]  ;;  %3323 = vmatpush2.bf16.msra.mxu0 %v9127_v30  ;;  %v249_v30 = vld [vmem:[%s15223_s1 + $0x4a8] sm:$0xff] }
  0x7c   :  { %v556_v27 = vld [vmem:[%s15223_s1 + $0xe40] sm:$0xff]  ;;  %v9120_v53 = vcombine.high %v428_v24, %v432_v26  ;;  %3363 = vmatprep.subr.bf16.mxu1 %v9256_v28  ;;  %v9119_v38 = vcombine.low %v428_v24, %v432_v26  ;;  %v8818_v24 = vcombine.high %v125_v15, %v129_v17  ;;  %v117_v26 = vld [vmem:[%s15223_s1 + $0x88] sm:$0xff] }
  0x7d   :  { %v560_v29 = vld [vmem:[%s15223_s1 + $0xe60] sm:$0xff]  ;;  %3364 = vmatpush2.bf16.msra.mxu1 %v9255_v31  ;;  %v245_v28 = vld [vmem:[%s15223_s1 + $0x488] sm:$0xff]  ;;  %v8817_v31 = vcombine.low %v125_v15, %v129_v17 }
  0x7e   :  { %v420_v33 = vld [vmem:[%s15223_s1 + $0xa00] sm:$0xff]  ;;  %v9248_v37 = vcombine.high %v556_v27, %v560_v29  ;;  %3324 = vmatprep.subr.bf16.mxu0 %v9120_v53  ;;  %v9247_v39 = vcombine.low %v556_v27, %v560_v29  ;;  %v121_v27 = vld [vmem:[%s15223_s1 + $0xa8] sm:$0xff]  ;;  %v8946_v29 = vcombine.high %v253_v18, %v257_v20  ;;  %v8945_v53 = vcombine.low %v253_v18, %v257_v20 }
  0x7f   :  { %v424_v34 = vld [vmem:[%s15223_s1 + $0xa20] sm:$0xff]  ;;  %3325 = vmatpush2.bf16.msra.mxu0 %v9119_v38  ;;  %v241_v38 = vld [vmem:[%s15223_s1 + $0x468] sm:$0xff] }
  0x80   :  { %v548_v35 = vld [vmem:[%s15223_s1 + $0xe00] sm:$0xff]  ;;  %v9112_v40 = vcombine.high %v420_v33, %v424_v34  ;;  %3365 = vmatprep.subr.bf16.mxu1 %v9248_v37  ;;  %v9111_v48 = vcombine.low %v420_v33, %v424_v34  ;;  %v8810_v33 = vcombine.high %v117_v26, %v121_v27  ;;  %v109_v34 = vld [vmem:[%s15223_s1 + $0x48] sm:$0xff] }
  0x81   :  { %v552_v63 = vld [vmem:[%s15223_s1 + $0xe20] sm:$0xff]  ;;  %3366 = vmatpush2.bf16.msra.mxu1 %v9247_v39  ;;  %v237_v37 = vld [vmem:[%s15223_s1 + $0x448] sm:$0xff]  ;;  %v8809_v39 = vcombine.low %v117_v26, %v121_v27 }
  0x82   :  { %v9240_v46 = vcombine.high %v548_v35, %v552_v63  ;;  %3326 = vmatprep.subr.bf16.mxu0 %v9112_v40  ;;  %v9239_v49 = vcombine.low %v548_v35, %v552_v63  ;;  %v113_v35 = vld [vmem:[%s15223_s1 + $0x68] sm:$0xff]  ;;  %v8938_v63 = vcombine.high %v245_v28, %v249_v30  ;;  %v8937_v40 = vcombine.low %v245_v28, %v249_v30 }
  0x83   :  { %3327 = vmatpush2.bf16.msra.mxu0 %v9111_v48  ;;  %v8802_v41 = vcombine.high %v109_v34, %v113_v35  ;;  %v101_v5 = vld [vmem:[%s15223_s1 + $0x8] sm:$0xff]  ;;  %v8930_v47 = vcombine.high %v237_v37, %v241_v38 }
  0x84   :  { %3367 = vmatprep.subr.bf16.mxu1 %v9240_v46  ;;  %3378 = vmatprep.subr.bf16.mxu0 %v8850_v50  ;;  %v105_v42 = vld [vmem:[%s15223_s1 + $0x28] sm:$0xff]  ;;  %v8929_v50 = vcombine.low %v237_v37, %v241_v38 }
  0x85   :  { %3368 = vmatpush2.bf16.msra.mxu1 %v9239_v49  ;;  %v229_v46 = vld [vmem:[%s15223_s1 + $0x408] sm:$0xff]  ;;  %v8801_v49 = vcombine.low %v109_v34, %v113_v35  ;;  %v8794_v51 = vcombine.high %v101_v5, %v105_v42 }
  0x86   :  { %3419 = vmatprep.subr.bf16.mxu1 %v8978_v55  ;;  %3329 = vmatmul.mubr.bf16.vlgmr.msra.gmra.mxu0 %v11957_v57  ;;  %v233_v48 = vld [vmem:[%s15223_s1 + $0x428] sm:$0xff] }
  0x87   :  { %3379 = vmatpush1.bf16.msra.mxu0 %v8849_v59  ;;  %3410 = vmatprep.mubr.bf16.mxu0 %v11612_v11  ;;  %v221_v52 = vld [vmem:[%s15223_s1 + $0x3c8] sm:$0xff]  ;;  %v8922_v56 = vcombine.high %v229_v46, %v233_v48 }
  0x88   :  { %3370 = vmatmul.mubr.bf16.vlgmr.msra.gmra.mxu1 %v11961_v58  ;;  %3380 = vmatprep.subr.bf16.mxu0 %v8842_v61  ;;  %v225_v54 = vld [vmem:[%s15223_s1 + $0x3e8] sm:$0xff]  ;;  %v8921_v61 = vcombine.low %v229_v46, %v233_v48 }
  0x89   :  { %3420 = vmatpush1.bf16.msra.mxu1 %v8977_v60  ;;  %3451 = vmatprep.mubr.bf16.mxu1 %v11623_v16  ;;  %v349_v55 = vld [vmem:[%s15223_s1 + $0x7c8] sm:$0xff]  ;;  %v8793_v60 = vcombine.low %v101_v5, %v105_v42  ;;  %v8914_v62 = vcombine.high %v221_v52, %v225_v54 }
  0x8a   :  { %3421 = vmatprep.subr.bf16.mxu1 %v8970_v22  ;;  %v353_v59 = vld [vmem:[%s15223_s1 + $0x7e8] sm:$0xff] }
  0x8b   :  { %3381 = vmatpush1.bf16.msra.mxu0 %v8841_v2  ;;  %v213_v0 = vld [vmem:[%s15223_s1 + $0x388] sm:$0xff]  ;;  %v9042_v1 = vcombine.high %v349_v55, %v353_v59 }
  0x8c   :  { %3382 = vmatprep.subr.bf16.mxu0 %v8834_v4  ;;  %v217_v22 = vld [vmem:[%s15223_s1 + $0x3a8] sm:$0xff]  ;;  %v9041_v4 = vcombine.low %v349_v55, %v353_v59 }
  0x8d   :  { %3422 = vmatpush1.bf16.msra.mxu1 %v8969_v3  ;;  %v341_v25 = vld [vmem:[%s15223_s1 + $0x788] sm:$0xff]  ;;  %v8913_v3 = vcombine.low %v221_v52, %v225_v54  ;;  %v8906_v6 = vcombine.high %v213_v0, %v217_v22 }
  0x8e   :  { %3423 = vmatprep.subr.bf16.mxu1 %v8962_v9  ;;  %v345_v2 = vld [vmem:[%s15223_s1 + $0x7a8] sm:$0xff] }
  0x8f   :  { %3383 = vmatpush1.bf16.msra.mxu0 %v8833_v12  ;;  %v205_v7 = vld [vmem:[%s15223_s1 + $0x348] sm:$0xff]  ;;  %v9034_v10 = vcombine.high %v341_v25, %v345_v2 }
  0x90   :  { %3384 = vmatprep.subr.bf16.mxu0 %v8826_v14  ;;  %v209_v8 = vld [vmem:[%s15223_s1 + $0x368] sm:$0xff]  ;;  %v9033_v14 = vcombine.low %v341_v25, %v345_v2 }
  0x91   :  { %3424 = vmatpush1.bf16.msra.mxu1 %v8961_v13  ;;  %v333_v9 = vld [vmem:[%s15223_s1 + $0x748] sm:$0xff]  ;;  %v8905_v13 = vcombine.low %v213_v0, %v217_v22  ;;  %v8898_v15 = vcombine.high %v205_v7, %v209_v8 }
  0x92   :  { %3425 = vmatprep.subr.bf16.mxu1 %v8954_v19  ;;  %v337_v12 = vld [vmem:[%s15223_s1 + $0x768] sm:$0xff] }
  0x93   :  { %3385 = vmatpush1.bf16.msra.mxu0 %v8825_v21  ;;  %v197_v17 = vld [vmem:[%s15223_s1 + $0x308] sm:$0xff]  ;;  %v9026_v20 = vcombine.high %v333_v9, %v337_v12 }
  0x94   :  { %3386 = vmatprep.subr.bf16.mxu0 %v8818_v24  ;;  %v201_v18 = vld [vmem:[%s15223_s1 + $0x328] sm:$0xff]  ;;  %v9025_v24 = vcombine.low %v333_v9, %v337_v12 }
  0x95   :  { %3426 = vmatpush1.bf16.msra.mxu1 %v8953_v23  ;;  %v325_v19 = vld [vmem:[%s15223_s1 + $0x708] sm:$0xff]  ;;  %v8897_v23 = vcombine.low %v205_v7, %v209_v8  ;;  %v8890_v26 = vcombine.high %v197_v17, %v201_v18 }
  0x96   :  { %3427 = vmatprep.subr.bf16.mxu1 %v8946_v29  ;;  %v329_v21 = vld [vmem:[%s15223_s1 + $0x728] sm:$0xff] }
  0x97   :  { %3387 = vmatpush1.bf16.msra.mxu0 %v8817_v31  ;;  %v189_v27 = vld [vmem:[%s15223_s1 + $0x2c8] sm:$0xff]  ;;  %v9018_v30 = vcombine.high %v325_v19, %v329_v21 }
  0x98   :  { %3388 = vmatprep.subr.bf16.mxu0 %v8810_v33  ;;  %v193_v28 = vld [vmem:[%s15223_s1 + $0x2e8] sm:$0xff]  ;;  %v9017_v33 = vcombine.low %v325_v19, %v329_v21 }
  0x99   :  { %3428 = vmatpush1.bf16.msra.mxu1 %v8945_v53  ;;  %v317_v29 = vld [vmem:[%s15223_s1 + $0x6c8] sm:$0xff]  ;;  %v8889_v53 = vcombine.low %v197_v17, %v201_v18  ;;  %v8882_v34 = vcombine.high %v189_v27, %v193_v28 }
  0x9a   :  { %3429 = vmatprep.subr.bf16.mxu1 %v8938_v63  ;;  %v321_v31 = vld [vmem:[%s15223_s1 + $0x6e8] sm:$0xff] }
  0x9b   :  { %3389 = vmatpush1.bf16.msra.mxu0 %v8809_v39  ;;  %v181_v35 = vld [vmem:[%s15223_s1 + $0x288] sm:$0xff]  ;;  %v9010_v38 = vcombine.high %v317_v29, %v321_v31 }
  0x9c   :  { %3390 = vmatprep.subr.bf16.mxu0 %v8802_v41  ;;  %v185_v37 = vld [vmem:[%s15223_s1 + $0x2a8] sm:$0xff]  ;;  %v9009_v41 = vcombine.low %v317_v29, %v321_v31 }
  0x9d   :  { %3430 = vmatpush1.bf16.msra.mxu1 %v8937_v40  ;;  %v309_v63 = vld [vmem:[%s15223_s1 + $0x688] sm:$0xff]  ;;  %v8881_v40 = vcombine.low %v189_v27, %v193_v28  ;;  %v8874_v5 = vcombine.high %v181_v35, %v185_v37 }
  0x9e   :  { %3431 = vmatprep.subr.bf16.mxu1 %v8930_v47  ;;  %v313_v39 = vld [vmem:[%s15223_s1 + $0x6a8] sm:$0xff] }
  0x9f   :  { %3391 = vmatpush1.bf16.msra.mxu0 %v8801_v49  ;;  %v173_v42 = vld [vmem:[%s15223_s1 + $0x248] sm:$0xff]  ;;  %v9002_v48 = vcombine.high %v309_v63, %v313_v39 }
  0xa0   :  { %3392 = vmatprep.subr.bf16.mxu0 %v8794_v51  ;;  %v177_v46 = vld [vmem:[%s15223_s1 + $0x268] sm:$0xff]  ;;  %v9001_v51 = vcombine.low %v309_v63, %v313_v39 }
  0xa1   :  { %3432 = vmatpush1.bf16.msra.mxu1 %v8929_v50  ;;  %v301_v47 = vld [vmem:[%s15223_s1 + $0x648] sm:$0xff]  ;;  %v8873_v50 = vcombine.low %v181_v35, %v185_v37  ;;  %v8866_v52 = vcombine.high %v173_v42, %v177_v46 }
  0xa2   :  { %3433 = vmatprep.subr.bf16.mxu1 %v8922_v56  ;;  %v305_v49 = vld [vmem:[%s15223_s1 + $0x668] sm:$0xff] }
  0xa3   :  { %3393 = vmatpush1.bf16.msra.mxu0 %v8793_v60  ;;  %v165_v54 = vld [vmem:[%s15223_s1 + $0x208] sm:$0xff]  ;;  %v8994_v59 = vcombine.high %v301_v47, %v305_v49 }
  0xa4   :  { %3394 = vmatprep.subr.bf16.mxu0 %v8914_v62  ;;  %v169_v55 = vld [vmem:[%s15223_s1 + $0x228] sm:$0xff]  ;;  %v8993_v62 = vcombine.low %v301_v47, %v305_v49 }
  0xa5   :  { %3434 = vmatpush1.bf16.msra.mxu1 %v8921_v61  ;;  %v293_v56 = vld [vmem:[%s15223_s1 + $0x608] sm:$0xff]  ;;  %v8865_v61 = vcombine.low %v173_v42, %v177_v46  ;;  %v8858_v0 = vcombine.high %v165_v54, %v169_v55 }
  0xa6   :  { %3435 = vmatprep.subr.bf16.mxu1 %v9042_v1  ;;  %v297_v60 = vld [vmem:[%s15223_s1 + $0x628] sm:$0xff] }
  0xa7   :  { %3395 = vmatpush2.bf16.msra.mxu0 %v8913_v3  ;;  %v413_v22 = vld [vmem:[%s15223_s1 + $0x9c8] sm:$0xff]  ;;  %v8986_v2 = vcombine.high %v293_v56, %v297_v60 }
  0xa8   :  { %3396 = vmatprep.subr.bf16.mxu0 %v8906_v6  ;;  %v417_v25 = vld [vmem:[%s15223_s1 + $0x9e8] sm:$0xff]  ;;  %v8985_v6 = vcombine.low %v293_v56, %v297_v60 }
  0xa9   :  { %3436 = vmatpush2.bf16.msra.mxu1 %v9041_v4  ;;  %v541_v1 = vld [vmem:[%s15223_s1 + $0xdc8] sm:$0xff]  ;;  %v8857_v4 = vcombine.low %v165_v54, %v169_v55  ;;  %v9106_v7 = vcombine.high %v413_v22, %v417_v25 }
  0xaa   :  { %3437 = vmatprep.subr.bf16.mxu1 %v9034_v10  ;;  %v545_v3 = vld [vmem:[%s15223_s1 + $0xde8] sm:$0xff] }
  0xab   :  { %3397 = vmatpush2.bf16.msra.mxu0 %v8905_v13  ;;  %v405_v8 = vld [vmem:[%s15223_s1 + $0x988] sm:$0xff]  ;;  %v9234_v12 = vcombine.high %v541_v1, %v545_v3 }
  0xac   :  { %3398 = vmatprep.subr.bf16.mxu0 %v8898_v15  ;;  %v409_v9 = vld [vmem:[%s15223_s1 + $0x9a8] sm:$0xff]  ;;  %v9233_v15 = vcombine.low %v541_v1, %v545_v3 }
  0xad   :  { %3438 = vmatpush2.bf16.msra.mxu1 %v9033_v14  ;;  %v533_v10 = vld [vmem:[%s15223_s1 + $0xd88] sm:$0xff]  ;;  %v9105_v14 = vcombine.low %v413_v22, %v417_v25  ;;  %v9098_v17 = vcombine.high %v405_v8, %v409_v9 }
  0xae   :  { %3439 = vmatprep.subr.bf16.mxu1 %v9026_v20  ;;  %v537_v13 = vld [vmem:[%s15223_s1 + $0xda8] sm:$0xff] }
  0xaf   :  { %3399 = vmatpush2.bf16.msra.mxu0 %v8897_v23  ;;  %v397_v18 = vld [vmem:[%s15223_s1 + $0x948] sm:$0xff]  ;;  %v9226_v21 = vcombine.high %v533_v10, %v537_v13 }
  0xb0   :  { %3400 = vmatprep.subr.bf16.mxu0 %v8890_v26  ;;  %v401_v19 = vld [vmem:[%s15223_s1 + $0x968] sm:$0xff]  ;;  %v9225_v26 = vcombine.low %v533_v10, %v537_v13 }
  0xb1   :  { %3440 = vmatpush2.bf16.msra.mxu1 %v9025_v24  ;;  %v525_v20 = vld [vmem:[%s15223_s1 + $0xd48] sm:$0xff]  ;;  %v9097_v24 = vcombine.low %v405_v8, %v409_v9  ;;  %v9090_v27 = vcombine.high %v397_v18, %v401_v19 }
  0xb2   :  { %3441 = vmatprep.subr.bf16.mxu1 %v9018_v30  ;;  %v529_v23 = vld [vmem:[%s15223_s1 + $0xd68] sm:$0xff] }
  0xb3   :  { %3401 = vmatpush2.bf16.msra.mxu0 %v8889_v53  ;;  %v389_v28 = vld [vmem:[%s15223_s1 + $0x908] sm:$0xff]  ;;  %v9218_v31 = vcombine.high %v525_v20, %v529_v23 }
  0xb4   :  { %3402 = vmatprep.subr.bf16.mxu0 %v8882_v34  ;;  %v393_v29 = vld [vmem:[%s15223_s1 + $0x928] sm:$0xff]  ;;  %v9217_v34 = vcombine.low %v525_v20, %v529_v23 }
  0xb5   :  { %3442 = vmatpush2.bf16.msra.mxu1 %v9017_v33  ;;  %v517_v30 = vld [vmem:[%s15223_s1 + $0xd08] sm:$0xff]  ;;  %v9089_v33 = vcombine.low %v397_v18, %v401_v19  ;;  %v9082_v35 = vcombine.high %v389_v28, %v393_v29 }
  0xb6   :  { %3443 = vmatprep.subr.bf16.mxu1 %v9010_v38  ;;  %v521_v53 = vld [vmem:[%s15223_s1 + $0xd28] sm:$0xff] }
  0xb7   :  { %3403 = vmatpush2.bf16.msra.mxu0 %v8881_v40  ;;  %v381_v37 = vld [vmem:[%s15223_s1 + $0x8c8] sm:$0xff]  ;;  %v9210_v38 = vcombine.high %v517_v30, %v521_v53 }
  0xb8   :  { %3404 = vmatprep.subr.bf16.mxu0 %v8874_v5  ;;  %v385_v63 = vld [vmem:[%s15223_s1 + $0x8e8] sm:$0xff]  ;;  %v9209_v5 = vcombine.low %v517_v30, %v521_v53 }
  0xb9   :  { %3444 = vmatpush2.bf16.msra.mxu1 %v9009_v41  ;;  %v509_v39 = vld [vmem:[%s15223_s1 + $0xcc8] sm:$0xff]  ;;  %v9081_v41 = vcombine.low %v389_v28, %v393_v29  ;;  %v9074_v42 = vcombine.high %v381_v37, %v385_v63 }
  0xba   :  { %3445 = vmatprep.subr.bf16.mxu1 %v9002_v48  ;;  %v513_v40 = vld [vmem:[%s15223_s1 + $0xce8] sm:$0xff] }
  0xbb   :  { %3405 = vmatpush2.bf16.msra.mxu0 %v8873_v50  ;;  %v373_v46 = vld [vmem:[%s15223_s1 + $0x888] sm:$0xff]  ;;  %v9202_v49 = vcombine.high %v509_v39, %v513_v40 }
  0xbc   :  { %3406 = vmatprep.subr.bf16.mxu0 %v8866_v52  ;;  %v377_v47 = vld [vmem:[%s15223_s1 + $0x8a8] sm:$0xff]  ;;  %v9201_v52 = vcombine.low %v509_v39, %v513_v40 }
  0xbd   :  { %3446 = vmatpush2.bf16.msra.mxu1 %v9001_v51  ;;  %v501_v48 = vld [vmem:[%s15223_s1 + $0xc88] sm:$0xff]  ;;  %v9073_v51 = vcombine.low %v381_v37, %v385_v63  ;;  %v9066_v54 = vcombine.high %v373_v46, %v377_v47 }
  0xbe   :  { %3447 = vmatprep.subr.bf16.mxu1 %v8994_v59  ;;  %v505_v50 = vld [vmem:[%s15223_s1 + $0xca8] sm:$0xff] }
  0xbf   :  { %3407 = vmatpush2.bf16.msra.mxu0 %v8865_v61  ;;  %v365_v55 = vld [vmem:[%s15223_s1 + $0x848] sm:$0xff]  ;;  %v9194_v60 = vcombine.high %v501_v48, %v505_v50 }
  0xc0   :  { %3408 = vmatprep.subr.bf16.mxu0 %v8858_v0  ;;  %v369_v56 = vld [vmem:[%s15223_s1 + $0x868] sm:$0xff]  ;;  %v9193_v0 = vcombine.low %v501_v48, %v505_v50 }
  0xc1   :  { %3448 = vmatpush2.bf16.msra.mxu1 %v8993_v62  ;;  %v493_v59 = vld [vmem:[%s15223_s1 + $0xc48] sm:$0xff]  ;;  %v9065_v62 = vcombine.low %v373_v46, %v377_v47  ;;  %v9058_v22 = vcombine.high %v365_v55, %v369_v56 }
  0xc2   :  { %3449 = vmatprep.subr.bf16.mxu1 %v8986_v2  ;;  %v497_v61 = vld [vmem:[%s15223_s1 + $0xc68] sm:$0xff] }
  0xc3   :  { %3409 = vmatpush2.bf16.msra.mxu0 %v8857_v4  ;;  %v357_v25 = vld [vmem:[%s15223_s1 + $0x808] sm:$0xff]  ;;  %v9186_v3 = vcombine.high %v493_v59, %v497_v61 }
  0xc4   :  { %3460 = vmatprep.subr.bf16.mxu0 %v9106_v7  ;;  %v361_v1 = vld [vmem:[%s15223_s1 + $0x828] sm:$0xff]  ;;  %v9185_v7 = vcombine.low %v493_v59, %v497_v61 }
  0xc5   :  { %3450 = vmatpush2.bf16.msra.mxu1 %v8985_v6  ;;  %v485_v2 = vld [vmem:[%s15223_s1 + $0xc08] sm:$0xff]  ;;  %v9057_v6 = vcombine.low %v365_v55, %v369_v56  ;;  %v9050_v8 = vcombine.high %v357_v25, %v361_v1 }
  0xc6   :  { %3501 = vmatprep.subr.bf16.mxu1 %v9234_v12  ;;  %3411 = vmatmul.mubr.bf16.vlgmr.msra.gmra.mxu0 %v11741_v32  ;;  %v489_v4 = vld [vmem:[%s15223_s1 + $0xc28] sm:$0xff] }
  0xc7   :  { %3461 = vmatpush1.bf16.msra.mxu0 %v9105_v14  ;;  %3492 = vmatprep.mubr.bf16.mxu0 %v11767_v43  ;;  %v477_v9 = vld [vmem:[%s15223_s1 + $0xbc8] sm:$0xff]  ;;  %v9178_v13 = vcombine.high %v485_v2, %v489_v4 }
  0xc8   :  { %3452 = vmatmul.mubr.bf16.vlgmr.msra.gmra.mxu1 %v11753_v36  ;;  %3462 = vmatprep.subr.bf16.mxu0 %v9098_v17  ;;  %v481_v10 = vld [vmem:[%s15223_s1 + $0xbe8] sm:$0xff]  ;;  %v9177_v17 = vcombine.low %v485_v2, %v489_v4 }
  0xc9   :  { %3502 = vmatpush1.bf16.msra.mxu1 %v9233_v15  ;;  %3533 = vmatprep.mubr.bf16.mxu1 %v11770_v45  ;;  %v605_v12 = vld [vmem:[%s15223_s1 + $0xfc8] sm:$0xff]  ;;  %v9049_v15 = vcombine.low %v357_v25, %v361_v1  ;;  %v9170_v18 = vcombine.high %v477_v9, %v481_v10 }
  0xca   :  { %3503 = vmatprep.subr.bf16.mxu1 %v9226_v21  ;;  %v609_v14 = vld [vmem:[%s15223_s1 + $0xfe8] sm:$0xff] }
  0xcb   :  { %3463 = vmatpush1.bf16.msra.mxu0 %v9097_v24  ;;  %v469_v19 = vld [vmem:[%s15223_s1 + $0xb88] sm:$0xff]  ;;  %v9298_v23 = vcombine.high %v605_v12, %v609_v14 }
  0xcc   :  { %3464 = vmatprep.subr.bf16.mxu0 %v9090_v27  ;;  %v473_v20 = vld [vmem:[%s15223_s1 + $0xba8] sm:$0xff]  ;;  %v9297_v27 = vcombine.low %v605_v12, %v609_v14 }
  0xcd   :  { %3504 = vmatpush1.bf16.msra.mxu1 %v9225_v26  ;;  %v597_v21 = vld [vmem:[%s15223_s1 + $0xf88] sm:$0xff]  ;;  %v9169_v26 = vcombine.low %v477_v9, %v481_v10  ;;  %v9162_v28 = vcombine.high %v469_v19, %v473_v20 }
  0xce   :  { %3505 = vmatprep.subr.bf16.mxu1 %v9218_v31  ;;  %v601_v24 = vld [vmem:[%s15223_s1 + $0xfa8] sm:$0xff] }
  0xcf   :  { %3465 = vmatpush1.bf16.msra.mxu0 %v9089_v33  ;;  %v461_v29 = vld [vmem:[%s15223_s1 + $0xb48] sm:$0xff]  ;;  %v9290_v53 = vcombine.high %v597_v21, %v601_v24 }
  0xd0   :  { %3466 = vmatprep.subr.bf16.mxu0 %v9082_v35  ;;  %v465_v30 = vld [vmem:[%s15223_s1 + $0xb68] sm:$0xff]  ;;  %v9289_v35 = vcombine.low %v597_v21, %v601_v24  ;;  %v162_v21 = vld [vmem:[%s15223_s1 + $0x1f0] sm:$0xff] }
  0xd1   :  { %3506 = vmatpush1.bf16.msra.mxu1 %v9217_v34  ;;  %v589_v31 = vld [vmem:[%s15223_s1 + $0xf48] sm:$0xff]  ;;  %v9161_v34 = vcombine.low %v469_v19, %v473_v20  ;;  %v9154_v37 = vcombine.high %v461_v29, %v465_v30  ;;  %v158_v20 = vld [vmem:[%s15223_s1 + $0x1d0] sm:$0xff] }
  0xd2   :  { %3507 = vmatprep.subr.bf16.mxu1 %v9210_v38  ;;  %v593_v33 = vld [vmem:[%s15223_s1 + $0xf68] sm:$0xff] }
  0xd3   :  { %3467 = vmatpush1.bf16.msra.mxu0 %v9081_v41  ;;  %v453_v63 = vld [vmem:[%s15223_s1 + $0xb08] sm:$0xff]  ;;  %v9282_v40 = vcombine.high %v589_v31, %v593_v33 }
  0xd4   :  { %3468 = vmatprep.subr.bf16.mxu0 %v9074_v42  ;;  %v457_v38 = vld [vmem:[%s15223_s1 + $0xb28] sm:$0xff]  ;;  %v9281_v42 = vcombine.low %v589_v31, %v593_v33  ;;  %v8852_v31 = vcombine.high %v158_v20, %v162_v21  ;;  %v154_v33 = vld [vmem:[%s15223_s1 + $0x1b0] sm:$0xff] }
  0xd5   :  { %3508 = vmatpush1.bf16.msra.mxu1 %v9209_v5  ;;  %v581_v39 = vld [vmem:[%s15223_s1 + $0xf08] sm:$0xff]  ;;  %v9153_v5 = vcombine.low %v461_v29, %v465_v30  ;;  %v9146_v46 = vcombine.high %v453_v63, %v457_v38  ;;  %v12347_v29 = vsub.s32 0, %v11560_v44 }
  0xd6   :  { %3509 = vmatprep.subr.bf16.mxu1 %v9202_v49  ;;  %v585_v41 = vld [vmem:[%s15223_s1 + $0xf28] sm:$0xff] }
  0xd7   :  { %3469 = vmatpush1.bf16.msra.mxu0 %v9073_v51  ;;  %v445_v47 = vld [vmem:[%s15223_s1 + $0xac8] sm:$0xff]  ;;  %v9274_v50 = vcombine.high %v581_v39, %v585_v41 }
  0xd8   :  { %3470 = vmatprep.subr.bf16.mxu0 %v9066_v54  ;;  %v449_v48 = vld [vmem:[%s15223_s1 + $0xae8] sm:$0xff]  ;;  %v9273_v54 = vcombine.low %v581_v39, %v585_v41  ;;  %v8851_v39 = vcombine.low %v158_v20, %v162_v21 }
  0xd9   :  { %3510 = vmatpush1.bf16.msra.mxu1 %v9201_v52  ;;  %v573_v49 = vld [vmem:[%s15223_s1 + $0xec8] sm:$0xff]  ;;  %v9145_v52 = vcombine.low %v453_v63, %v457_v38  ;;  %v9138_v55 = vcombine.high %v445_v47, %v449_v48  ;;  %v282_v63 = vld [vmem:[%s15223_s1 + $0x5b0] sm:$0xff] }
  0xda   :  { %3511 = vmatprep.subr.bf16.mxu1 %v9194_v60  ;;  %v577_v51 = vld [vmem:[%s15223_s1 + $0xee8] sm:$0xff] }
  0xdb   :  { %3471 = vmatpush1.bf16.msra.mxu0 %v9065_v62  ;;  %v437_v56 = vld [vmem:[%s15223_s1 + $0xa88] sm:$0xff]  ;;  %v9266_v61 = vcombine.high %v573_v49, %v577_v51 }
  0xdc   :  { %3472 = vmatprep.subr.bf16.mxu0 %v9058_v22  ;;  %v441_v59 = vld [vmem:[%s15223_s1 + $0xaa8] sm:$0xff]  ;;  %v9265_v22 = vcombine.low %v573_v49, %v577_v51  ;;  %v274_v49 = vld [vmem:[%s15223_s1 + $0x570] sm:$0xff] }
  0xdd   :  { %3512 = vmatpush1.bf16.msra.mxu1 %v9193_v0  ;;  %v565_v60 = vld [vmem:[%s15223_s1 + $0xe88] sm:$0xff]  ;;  %v9137_v0 = vcombine.low %v445_v47, %v449_v48  ;;  %v9130_v25 = vcombine.high %v437_v56, %v441_v59 }
  0xde   :  { %3513 = vmatprep.subr.bf16.mxu1 %v9186_v3  ;;  %v569_v62 = vld [vmem:[%s15223_s1 + $0xea8] sm:$0xff] }
  0xdf   :  { %3473 = vmatpush1.bf16.msra.mxu0 %v9057_v6  ;;  %v429_v1 = vld [vmem:[%s15223_s1 + $0xa48] sm:$0xff]  ;;  %v9258_v4 = vcombine.high %v565_v60, %v569_v62 }
  0xe0   :  { %3474 = vmatprep.subr.bf16.mxu0 %v9050_v8  ;;  %v433_v2 = vld [vmem:[%s15223_s1 + $0xa68] sm:$0xff]  ;;  %v9257_v8 = vcombine.low %v565_v60, %v569_v62  ;;  %v134_v60 = vld [vmem:[%s15223_s1 + $0x110] sm:$0xff] }
  0xe1   :  { %3514 = vmatpush1.bf16.msra.mxu1 %v9185_v7  ;;  %v557_v3 = vld [vmem:[%s15223_s1 + $0xe48] sm:$0xff]  ;;  %v9129_v7 = vcombine.low %v437_v56, %v441_v59  ;;  %v9122_v9 = vcombine.high %v429_v1, %v433_v2  ;;  %v262_v62 = vld [vmem:[%s15223_s1 + $0x510] sm:$0xff] }
  0xe2   :  { %3515 = vmatprep.subr.bf16.mxu1 %v9178_v13  ;;  %v561_v6 = vld [vmem:[%s15223_s1 + $0xe68] sm:$0xff] }
  0xe3   :  { %3475 = vmatpush1.bf16.msra.mxu0 %v9049_v15  ;;  %v421_v10 = vld [vmem:[%s15223_s1 + $0xa08] sm:$0xff]  ;;  %v9250_v14 = vcombine.high %v557_v3, %v561_v6 }
  0xe4   :  { %3476 = vmatprep.subr.bf16.mxu0 %v9170_v18  ;;  %v425_v12 = vld [vmem:[%s15223_s1 + $0xa28] sm:$0xff]  ;;  %v9249_v18 = vcombine.low %v557_v3, %v561_v6 }
  0xe5   :  { %3516 = vmatpush1.bf16.msra.mxu1 %v9177_v17  ;;  %v549_v13 = vld [vmem:[%s15223_s1 + $0xe08] sm:$0xff]  ;;  %v9121_v17 = vcombine.low %v429_v1, %v433_v2  ;;  %v9114_v19 = vcombine.high %v421_v10, %v425_v12  ;;  %v266_v2 = vld [vmem:[%s15223_s1 + $0x530] sm:$0xff] }
  0xe6   :  { %3517 = vmatprep.subr.bf16.mxu1 %v9298_v23  ;;  %v553_v15 = vld [vmem:[%s15223_s1 + $0xe28] sm:$0xff]  ;;  %v286_v23 = vld [vmem:[%s15223_s1 + $0x5d0] sm:$0xff]  ;;  %v8955_v20 = vcombine.low %v262_v62, %v266_v2 }
  0xe7   :  { %3477 = vmatpush2.bf16.msra.mxu0 %v9169_v26  ;;  %v9242_v24 = vcombine.high %v549_v13, %v553_v15  ;;  %v290_v26 = vld [vmem:[%s15223_s1 + $0x5f0] sm:$0xff]  ;;  %v9241_v30 = vcombine.low %v549_v13, %v553_v15 }
  0xe8   :  { %3478 = vmatprep.subr.bf16.mxu0 %v9162_v28  ;;  %v9113_v28 = vcombine.low %v421_v10, %v425_v12  ;;  %v126_v12 = vld [vmem:[%s15223_s1 + $0xd0] sm:$0xff] }
  0xe9   :  { %3518 = vmatpush2.bf16.msra.mxu1 %v9297_v27  ;;  %v612_v27 = vld [vmem:[%s15224_s2] sm:$0xff]  ;;  %v130_v13 = vld [vmem:[%s15223_s1 + $0xf0] sm:$0xff] }
  0xea   :  { %3519 = vmatprep.subr.bf16.mxu1 %v9290_v53  ;;  %v150_v53 = vld [vmem:[%s15223_s1 + $0x190] sm:$0xff]  ;;  %v617_v38 = vrot.slane %v612_v27, %v12347_v29  ;;  %v8820_v21 = vcombine.high %v126_v12, %v130_v13 }
  0xeb   :  { %3479 = vmatpush2.bf16.msra.mxu0 %v9161_v34  ;;  %v278_v34 = vld [vmem:[%s15223_s1 + $0x590] sm:$0xff]  ;;  %v8844_v41 = vcombine.high %v150_v53, %v154_v33 }
  0xec   :  { %3480 = vmatprep.subr.bf16.mxu0 %v9154_v37  ;;  %v12359_v37 = vsub.s32 1, %v11560_v44  ;;  %v8972_v48 = vcombine.high %v278_v34, %v282_v63  ;;  %v8971_v56 = vcombine.low %v278_v34, %v282_v63  ;;  %v114_v34 = vld [vmem:[%s15223_s1 + $0x70] sm:$0xff] }
  0xed   :  { %3520 = vmatpush2.bf16.msra.mxu1 %v9289_v35  ;;  %v8980_v35 = vcombine.high %v286_v23, %v290_v26 }
  0xee   :  { %3521 = vmatprep.subr.bf16.mxu1 %v9282_v40  ;;  %v8979_v40 = vcombine.low %v286_v23, %v290_v26  ;;  %v621_v47 = vrot.slane %v612_v27, %v12359_v37  ;;  %v118_v23 = vld [vmem:[%s15223_s1 + $0x90] sm:$0xff] }
  0xef   :  { %3481 = vmatpush2.bf16.msra.mxu0 %v9153_v5  ;;  %v142_v5 = vld [vmem:[%s15223_s1 + $0x150] sm:$0xff] }
  0xf0   :  { %3482 = vmatprep.subr.bf16.mxu0 %v9146_v46  ;;  %v270_v46 = vld [vmem:[%s15223_s1 + $0x550] sm:$0xff] }
  0xf1   :  { %3522 = vmatpush2.bf16.msra.mxu1 %v9281_v42  ;;  %v146_v42 = vld [vmem:[%s15223_s1 + $0x170] sm:$0xff]  ;;  %v8964_v1 = vcombine.high %v270_v46, %v274_v49 }
  0xf2   :  { %3523 = vmatprep.subr.bf16.mxu1 %v9274_v50  ;;  %v8836_v59 = vcombine.high %v142_v5, %v146_v42  ;;  %v246_v26 = vld [vmem:[%s15223_s1 + $0x490] sm:$0xff] }
  0xf3   :  { %3483 = vmatpush2.bf16.msra.mxu0 %v9145_v52 }
  0xf4   :  { %3484 = vmatprep.subr.bf16.mxu0 %v9138_v55 }
  0xf5   :  { %3524 = vmatpush2.bf16.msra.mxu1 %v9273_v54  ;;  %v8843_v54 = vcombine.low %v150_v53, %v154_v33  ;;  %v110_v33 = vld [vmem:[%s15223_s1 + $0x50] sm:$0xff] }
  0xf6   :  { %3525 = vmatprep.subr.bf16.mxu1 %v9266_v61  ;;  %v138_v61 = vld [vmem:[%s15223_s1 + $0x130] sm:$0xff] }
  0xf7   :  { %3485 = vmatpush2.bf16.msra.mxu0 %v9137_v0  ;;  %v8828_v10 = vcombine.high %v134_v60, %v138_v61 }
  0xf8   :  { %3486 = vmatprep.subr.bf16.mxu0 %v9130_v25 }
  0xf9   :  { %3526 = vmatpush2.bf16.msra.mxu1 %v9265_v22 }
  0xfa   :  { %3527 = vmatprep.subr.bf16.mxu1 %v9258_v4 }
  0xfb   :  { %3487 = vmatpush2.bf16.msra.mxu0 %v9129_v7  ;;  %v8835_v7 = vcombine.low %v142_v5, %v146_v42  ;;  %v102_v5 = vld [vmem:[%s15223_s1 + $0x10] sm:$0xff] }
  0xfc   :  { %3488 = vmatprep.subr.bf16.mxu0 %v9122_v9  ;;  %v8963_v9 = vcombine.low %v270_v46, %v274_v49  ;;  %v106_v42 = vld [vmem:[%s15223_s1 + $0x30] sm:$0xff]  ;;  %v8803_v49 = vcombine.low %v110_v33, %v114_v34 }
  0xfd   :  { %3528 = vmatpush2.bf16.msra.mxu1 %v9257_v8  ;;  %v230_v46 = vld [vmem:[%s15223_s1 + $0x410] sm:$0xff] }
  0xfe   :  { %3529 = vmatprep.subr.bf16.mxu1 %v9250_v14  ;;  %v254_v14 = vld [vmem:[%s15223_s1 + $0x4d0] sm:$0xff] }
  0xff   :  { %3489 = vmatpush2.bf16.msra.mxu0 %v9121_v17  ;;  %v8956_v17 = vcombine.high %v262_v62, %v266_v2 }
 0x100   :  { %3490 = vmatprep.subr.bf16.mxu0 %v9114_v19  ;;  %v8827_v19 = vcombine.low %v134_v60, %v138_v61  ;;  %v8795_v60 = vcombine.low %v102_v5, %v106_v42 }
 0x101   :  { %3530 = vmatpush2.bf16.msra.mxu1 %v9249_v18  ;;  %v258_v18 = vld [vmem:[%s15223_s1 + $0x4f0] sm:$0xff] }
 0x102   :  { %3531 = vmatprep.subr.bf16.mxu1 %v9242_v24  ;;  %v122_v24 = vld [vmem:[%s15223_s1 + $0xb0] sm:$0xff]  ;;  %v8948_v27 = vcombine.high %v254_v14, %v258_v18 }
 0x103   :  { %3491 = vmatpush2.bf16.msra.mxu0 %v9113_v28  ;;  %v250_v28 = vld [vmem:[%s15223_s1 + $0x4b0] sm:$0xff]  ;;  %v8812_v53 = vcombine.high %v118_v23, %v122_v24 }
 0x104   :  { %3542 = vmatprep.subr.bf16.mxu0 %v8852_v31  ;;  %v8947_v31 = vcombine.low %v254_v14, %v258_v18  ;;  %v8940_v63 = vcombine.high %v246_v26, %v250_v28  ;;  %v338_v14 = vld [vmem:[%s15223_s1 + $0x770] sm:$0xff] }
 0x105   :  { %3532 = vmatpush2.bf16.msra.mxu1 %v9241_v30  ;;  %v8819_v30 = vcombine.low %v126_v12, %v130_v13  ;;  %v334_v12 = vld [vmem:[%s15223_s1 + $0x750] sm:$0xff] }
 0x106   :  { %3583 = vmatprep.subr.bf16.mxu1 %v8980_v35  ;;  %v3248_v50 = vpop.f32.mrf.mxu0  ;;  %3493 = vmatmul.mubr.bf16.vlgmr.msra.gmra.mxu0 %v11957_v57  ;;  %v238_v35 = vld [vmem:[%s15223_s1 + $0x450] sm:$0xff] }
 0x107   :  { %v3249_v51 = vadd.f32 %v3248_v50, %v617_v38  ;;  %3543 = vmatpush1.bf16.msra.mxu0 %v8851_v39  ;;  %3574 = vmatprep.mubr.bf16.mxu0 %v11612_v11  ;;  %v242_v38 = vld [vmem:[%s15223_s1 + $0x470] sm:$0xff]  ;;  %v8811_v39 = vcombine.low %v118_v23, %v122_v24  ;;  %v9028_v23 = vcombine.high %v334_v12, %v338_v14 }
 0x108   :  { %v3289_v52 = vpop.f32.mrf.mxu1  ;;  %3534 = vmatmul.mubr.bf16.vlgmr.msra.gmra.mxu1 %v11961_v58  ;;  %v3250_v55 = vpop.f32.mrf.mxu0  ;;  %3544 = vmatprep.subr.bf16.mxu0 %v8844_v41  ;;  %v8804_v41 = vcombine.high %v110_v33, %v114_v34  ;;  %v8931_v50 = vcombine.low %v238_v35, %v242_v38  ;;  %v330_v24 = vld [vmem:[%s15223_s1 + $0x730] sm:$0xff] }
 0x109   :  { %3584 = vmatpush1.bf16.msra.mxu1 %v8979_v40  ;;  %v12389_v0 = vadd.f32 %v3289_v52, %v3249_v51  ;;  %v3251_v22 = vadd.f32 %v3250_v55, %v621_v47  ;;  %3615 = vmatprep.mubr.bf16.mxu1 %v11623_v16  ;;  %v8939_v40 = vcombine.low %v246_v26, %v250_v28  ;;  %v222_v52 = vld [vmem:[%s15223_s1 + $0x3d0] sm:$0xff] }
 0x10a   :  { %v3291_v25 = vpop.f32.mrf.mxu1  ;;  %3585 = vmatprep.subr.bf16.mxu1 %v8972_v48  ;;  %v3252_v3 = vpop.f32.mrf.mxu0  ;;  %v8932_v47 = vcombine.high %v238_v35, %v242_v38  ;;  %v234_v48 = vld [vmem:[%s15223_s1 + $0x430] sm:$0xff]  ;;  %v8796_v51 = vcombine.high %v102_v5, %v106_v42 }
 0x10b   :  { %v12396_v4 = vadd.f32 %v3291_v25, %v3251_v22  ;;  %3545 = vmatpush1.bf16.msra.mxu0 %v8843_v54  ;;  %v226_v54 = vld [vmem:[%s15223_s1 + $0x3f0] sm:$0xff]  ;;  %v8923_v61 = vcombine.low %v230_v46, %v234_v48 }
 0x10c   :  { %v3293_v6 = vpop.f32.mrf.mxu1  ;;  %v3253_v8 = vpop.f32.mrf.mxu0  ;;  %3546 = vmatprep.subr.bf16.mxu0 %v8836_v59  ;;  %v350_v55 = vld [vmem:[%s15223_s1 + $0x7d0] sm:$0xff]  ;;  %v8916_v62 = vcombine.high %v222_v52, %v226_v54 }
 0x10d   :  { %3586 = vmatpush1.bf16.msra.mxu1 %v8971_v56  ;;  %v8924_v56 = vcombine.high %v230_v46, %v234_v48  ;;  %v354_v59 = vld [vmem:[%s15223_s1 + $0x7f0] sm:$0xff]  ;;  %v8915_v6 = vcombine.low %v222_v52, %v226_v54 }
 0x10e   :  { %v3294_v15 = vpop.f32.mrf.mxu1  ;;  %3587 = vmatprep.subr.bf16.mxu1 %v8964_v1  ;;  %v214_v22 = vld [vmem:[%s15223_s1 + $0x390] sm:$0xff]  ;;  %v9044_v2 = vcombine.high %v350_v55, %v354_v59 }
 0x10f   :  { %3547 = vmatpush1.bf16.msra.mxu0 %v8835_v7  ;;  %v218_v25 = vld [vmem:[%s15223_s1 + $0x3b0] sm:$0xff]  ;;  %v9043_v7 = vcombine.low %v350_v55, %v354_v59 }
 0x110   :  { %3548 = vmatprep.subr.bf16.mxu0 %v8828_v10  ;;  %v342_v1 = vld [vmem:[%s15223_s1 + $0x790] sm:$0xff]  ;;  %v8908_v8 = vcombine.high %v214_v22, %v218_v25  ;;  %v8907_v15 = vcombine.low %v214_v22, %v218_v25 }
 0x111   :  { %3588 = vmatpush1.bf16.msra.mxu1 %v8963_v9  ;;  %v346_v3 = vld [vmem:[%s15223_s1 + $0x7b0] sm:$0xff] }
 0x112   :  { %3589 = vmatprep.subr.bf16.mxu1 %v8956_v17  ;;  %v206_v9 = vld [vmem:[%s15223_s1 + $0x350] sm:$0xff]  ;;  %v9036_v13 = vcombine.high %v342_v1, %v346_v3  ;;  %v9035_v17 = vcombine.low %v342_v1, %v346_v3 }
 0x113   :  { %3549 = vmatpush1.bf16.msra.mxu0 %v8827_v19  ;;  %v210_v10 = vld [vmem:[%s15223_s1 + $0x370] sm:$0xff] }
 0x114   :  { %3550 = vmatprep.subr.bf16.mxu0 %v8820_v21  ;;  %v8900_v18 = vcombine.high %v206_v9, %v210_v10  ;;  %v198_v19 = vld [vmem:[%s15223_s1 + $0x310] sm:$0xff]  ;;  %v8899_v26 = vcombine.low %v206_v9, %v210_v10 }
 0x115   :  { %3590 = vmatpush1.bf16.msra.mxu1 %v8955_v20  ;;  %v202_v20 = vld [vmem:[%s15223_s1 + $0x330] sm:$0xff] }
 0x116   :  { %3591 = vmatprep.subr.bf16.mxu1 %v8948_v27  ;;  %v326_v21 = vld [vmem:[%s15223_s1 + $0x710] sm:$0xff]  ;;  %v9027_v27 = vcombine.low %v334_v12, %v338_v14  ;;  %v8892_v28 = vcombine.high %v198_v19, %v202_v20  ;;  %v8891_v35 = vcombine.low %v198_v19, %v202_v20 }
 0x117   :  { %3551 = vmatpush1.bf16.msra.mxu0 %v8819_v30  ;;  %v190_v30 = vld [vmem:[%s15223_s1 + $0x2d0] sm:$0xff]  ;;  %v9020_v33 = vcombine.high %v326_v21, %v330_v24 }
 0x118   :  { %3552 = vmatprep.subr.bf16.mxu0 %v8812_v53  ;;  %v318_v53 = vld [vmem:[%s15223_s1 + $0x6d0] sm:$0xff] }
 0x119   :  { %3592 = vmatpush1.bf16.msra.mxu1 %v8947_v31  ;;  %v194_v31 = vld [vmem:[%s15223_s1 + $0x2f0] sm:$0xff] }
 0x11a   :  { %3593 = vmatprep.subr.bf16.mxu1 %v8940_v63  ;;  %v322_v34 = vld [vmem:[%s15223_s1 + $0x6f0] sm:$0xff]  ;;  %v9019_v63 = vcombine.low %v326_v21, %v330_v24  ;;  %v8884_v38 = vcombine.high %v190_v30, %v194_v31  ;;  %v8883_v46 = vcombine.low %v190_v30, %v194_v31 }
 0x11b   :  { %3553 = vmatpush1.bf16.msra.mxu0 %v8811_v39  ;;  %v182_v39 = vld [vmem:[%s15223_s1 + $0x290] sm:$0xff]  ;;  %v9012_v5 = vcombine.high %v318_v53, %v322_v34 }
 0x11c   :  { %3554 = vmatprep.subr.bf16.mxu0 %v8804_v41  ;;  %v310_v41 = vld [vmem:[%s15223_s1 + $0x690] sm:$0xff] }
 0x11d   :  { %3594 = vmatpush1.bf16.msra.mxu1 %v8939_v40  ;;  %v186_v40 = vld [vmem:[%s15223_s1 + $0x2b0] sm:$0xff] }
 0x11e   :  { %3595 = vmatprep.subr.bf16.mxu1 %v8932_v47  ;;  %v314_v42 = vld [vmem:[%s15223_s1 + $0x6b0] sm:$0xff]  ;;  %v9011_v47 = vcombine.low %v318_v53, %v322_v34  ;;  %v8876_v48 = vcombine.high %v182_v39, %v186_v40  ;;  %v8875_v55 = vcombine.low %v182_v39, %v186_v40 }
 0x11f   :  { %3555 = vmatpush1.bf16.msra.mxu0 %v8803_v49  ;;  %v174_v49 = vld [vmem:[%s15223_s1 + $0x250] sm:$0xff]  ;;  %v9004_v52 = vcombine.high %v310_v41, %v314_v42 }
 0x120   :  { %3556 = vmatprep.subr.bf16.mxu0 %v8796_v51  ;;  %v302_v51 = vld [vmem:[%s15223_s1 + $0x650] sm:$0xff] }
 0x121   :  { %3596 = vmatpush1.bf16.msra.mxu1 %v8931_v50  ;;  %v178_v50 = vld [vmem:[%s15223_s1 + $0x270] sm:$0xff] }
 0x122   :  { %3597 = vmatprep.subr.bf16.mxu1 %v8924_v56  ;;  %v306_v54 = vld [vmem:[%s15223_s1 + $0x670] sm:$0xff]  ;;  %v9003_v56 = vcombine.low %v310_v41, %v314_v42  ;;  %v8868_v59 = vcombine.high %v174_v49, %v178_v50  ;;  %v8867_v1 = vcombine.low %v174_v49, %v178_v50 }
 0x123   :  { %3557 = vmatpush1.bf16.msra.mxu0 %v8795_v60  ;;  %v166_v60 = vld [vmem:[%s15223_s1 + $0x210] sm:$0xff]  ;;  %v8996_v22 = vcombine.high %v302_v51, %v306_v54 }
 0x124   :  { %3558 = vmatprep.subr.bf16.mxu0 %v8916_v62  ;;  %v294_v62 = vld [vmem:[%s15223_s1 + $0x610] sm:$0xff] }
 0x125   :  { %3598 = vmatpush1.bf16.msra.mxu1 %v8923_v61  ;;  %v170_v61 = vld [vmem:[%s15223_s1 + $0x230] sm:$0xff] }
 0x126   :  { %3599 = vmatprep.subr.bf16.mxu1 %v9044_v2  ;;  %v298_v25 = vld [vmem:[%s15223_s1 + $0x630] sm:$0xff]  ;;  %v8995_v2 = vcombine.low %v302_v51, %v306_v54  ;;  %v8860_v3 = vcombine.high %v166_v60, %v170_v61  ;;  %v8859_v12 = vcombine.low %v166_v60, %v170_v61 }
 0x127   :  { %3559 = vmatpush2.bf16.msra.mxu0 %v8915_v6  ;;  %v414_v6 = vld [vmem:[%s15223_s1 + $0x9d0] sm:$0xff]  ;;  %v8988_v9 = vcombine.high %v294_v62, %v298_v25 }
 0x128   :  { %3560 = vmatprep.subr.bf16.mxu0 %v8908_v8  ;;  %v542_v8 = vld [vmem:[%s15223_s1 + $0xdd0] sm:$0xff] }
 0x129   :  { %3600 = vmatpush2.bf16.msra.mxu1 %v9043_v7  ;;  %v418_v7 = vld [vmem:[%s15223_s1 + $0x9f0] sm:$0xff] }
 0x12a   :  { %3601 = vmatprep.subr.bf16.mxu1 %v9036_v13  ;;  %v546_v10 = vld [vmem:[%s15223_s1 + $0xdf0] sm:$0xff]  ;;  %v8987_v13 = vcombine.low %v294_v62, %v298_v25  ;;  %v9108_v14 = vcombine.high %v414_v6, %v418_v7  ;;  %v9107_v21 = vcombine.low %v414_v6, %v418_v7 }
 0x12b   :  { %3561 = vmatpush2.bf16.msra.mxu0 %v8907_v15  ;;  %v406_v15 = vld [vmem:[%s15223_s1 + $0x990] sm:$0xff]  ;;  %v9236_v19 = vcombine.high %v542_v8, %v546_v10 }
 0x12c   :  { %3562 = vmatprep.subr.bf16.mxu0 %v8900_v18  ;;  %v534_v18 = vld [vmem:[%s15223_s1 + $0xd90] sm:$0xff] }
 0x12d   :  { %3602 = vmatpush2.bf16.msra.mxu1 %v9035_v17  ;;  %v410_v17 = vld [vmem:[%s15223_s1 + $0x9b0] sm:$0xff] }
 0x12e   :  { %3603 = vmatprep.subr.bf16.mxu1 %v9028_v23  ;;  %v538_v20 = vld [vmem:[%s15223_s1 + $0xdb0] sm:$0xff]  ;;  %v9235_v23 = vcombine.low %v542_v8, %v546_v10  ;;  %v9100_v24 = vcombine.high %v406_v15, %v410_v17 }
 0x12f   :  { %3563 = vmatpush2.bf16.msra.mxu0 %v8899_v26  ;;  %v398_v26 = vld [vmem:[%s15223_s1 + $0x950] sm:$0xff]  ;;  %v9228_v30 = vcombine.high %v534_v18, %v538_v20 }
 0x130   :  { %3564 = vmatprep.subr.bf16.mxu0 %v8892_v28  ;;  %v526_v28 = vld [vmem:[%s15223_s1 + $0xd50] sm:$0xff] }
 0x131   :  { %3604 = vmatpush2.bf16.msra.mxu1 %v9027_v27  ;;  %v402_v27 = vld [vmem:[%s15223_s1 + $0x970] sm:$0xff] }
 0x132   :  { %3605 = vmatprep.subr.bf16.mxu1 %v9020_v33  ;;  %v530_v31 = vld [vmem:[%s15223_s1 + $0xd70] sm:$0xff]  ;;  %v9092_v39 = vcombine.high %v398_v26, %v402_v27 }
 0x133   :  { %3565 = vmatpush2.bf16.msra.mxu0 %v8891_v35  ;;  %v9099_v35 = vcombine.low %v406_v15, %v410_v17  ;;  %v390_v40 = vld [vmem:[%s15223_s1 + $0x910] sm:$0xff] }
 0x134   :  { %3566 = vmatprep.subr.bf16.mxu0 %v8884_v38  ;;  %v9227_v38 = vcombine.low %v534_v18, %v538_v20  ;;  %v394_v41 = vld [vmem:[%s15223_s1 + $0x930] sm:$0xff] }
 0x135   :  { %3606 = vmatpush2.bf16.msra.mxu1 %v9019_v63  ;;  %v510_v60 = vld [vmem:[%s15223_s1 + $0xcd0] sm:$0xff]  ;;  %v9083_v25 = vcombine.low %v390_v40, %v394_v41 }
 0x136   :  { %3607 = vmatprep.subr.bf16.mxu1 %v9012_v5  ;;  %v378_v6 = vld [vmem:[%s15223_s1 + $0x8b0] sm:$0xff] }
 0x137   :  { %3567 = vmatpush2.bf16.msra.mxu0 %v8883_v46  ;;  %v502_v7 = vld [vmem:[%s15223_s1 + $0xc90] sm:$0xff] }
 0x138   :  { %3568 = vmatprep.subr.bf16.mxu0 %v8876_v48  ;;  %v522_v48 = vld [vmem:[%s15223_s1 + $0xd30] sm:$0xff] }
 0x139   :  { %3608 = vmatpush2.bf16.msra.mxu1 %v9011_v47  ;;  %v9220_v47 = vcombine.high %v526_v28, %v530_v31  ;;  %v370_v15 = vld [vmem:[%s15223_s1 + $0x870] sm:$0xff] }
 0x13a   :  { %3609 = vmatprep.subr.bf16.mxu1 %v9004_v52  ;;  %v9091_v52 = vcombine.low %v398_v26, %v402_v27  ;;  %v494_v17 = vld [vmem:[%s15223_s1 + $0xc50] sm:$0xff] }
 0x13b   :  { %3569 = vmatpush2.bf16.msra.mxu0 %v8875_v55  ;;  %v9084_v55 = vcombine.high %v390_v40, %v394_v41  ;;  %v362_v26 = vld [vmem:[%s15223_s1 + $0x830] sm:$0xff] }
 0x13c   :  { %3570 = vmatprep.subr.bf16.mxu0 %v8868_v59  ;;  %v386_v59 = vld [vmem:[%s15223_s1 + $0x8f0] sm:$0xff] }
 0x13d   :  { %3610 = vmatpush2.bf16.msra.mxu1 %v9003_v56  ;;  %v382_v56 = vld [vmem:[%s15223_s1 + $0x8d0] sm:$0xff] }
 0x13e   :  { %3611 = vmatprep.subr.bf16.mxu1 %v8996_v22  ;;  %v514_v22 = vld [vmem:[%s15223_s1 + $0xcf0] sm:$0xff]  ;;  %v9075_v10 = vcombine.low %v382_v56, %v386_v59 }
 0x13f   :  { %3571 = vmatpush2.bf16.msra.mxu0 %v8867_v1  ;;  %v9204_v8 = vcombine.high %v510_v60, %v514_v22  ;;  %v486_v27 = vld [vmem:[%s15223_s1 + $0xc10] sm:$0xff] }
 0x140   :  { %3572 = vmatprep.subr.bf16.mxu0 %v8860_v3  ;;  %v374_v3 = vld [vmem:[%s15223_s1 + $0x890] sm:$0xff] }
 0x141   :  { %3612 = vmatpush2.bf16.msra.mxu1 %v8995_v2  ;;  %v9076_v2 = vcombine.high %v382_v56, %v386_v59  ;;  %v9067_v20 = vcombine.low %v374_v3, %v378_v6  ;;  %v590_v56 = vld [vmem:[%s15223_s1 + $0xf50] sm:$0xff] }
 0x142   :  { %3613 = vmatprep.subr.bf16.mxu1 %v8988_v9  ;;  %v506_v9 = vld [vmem:[%s15223_s1 + $0xcb0] sm:$0xff] }
 0x143   :  { %3573 = vmatpush2.bf16.msra.mxu0 %v8859_v12  ;;  %v9203_v12 = vcombine.low %v510_v60, %v514_v22  ;;  %v9196_v18 = vcombine.high %v502_v7, %v506_v9  ;;  %v594_v60 = vld [vmem:[%s15223_s1 + $0xf70] sm:$0xff] }
 0x144   :  { %3624 = vmatprep.subr.bf16.mxu0 %v9108_v14  ;;  %v366_v14 = vld [vmem:[%s15223_s1 + $0x850] sm:$0xff] }
 0x145   :  { %3614 = vmatpush2.bf16.msra.mxu1 %v8987_v13  ;;  %v9068_v13 = vcombine.high %v374_v3, %v378_v6  ;;  %v9284_v3 = vcombine.high %v590_v56, %v594_v60  ;;  %v586_v6 = vld [vmem:[%s15223_s1 + $0xf30] sm:$0xff] }
 0x146   :  { %3665 = vmatprep.subr.bf16.mxu1 %v9236_v19  ;;  %v3330_v53 = vpop.f32.mrf.mxu0  ;;  %3575 = vmatmul.mubr.bf16.vlgmr.msra.gmra.mxu0 %v11741_v32  ;;  %v498_v19 = vld [vmem:[%s15223_s1 + $0xc70] sm:$0xff] }
 0x147   :  { %v3331_v33 = vadd.f32 %v3330_v53, %v12389_v0  ;;  %3625 = vmatpush1.bf16.msra.mxu0 %v9107_v21  ;;  %v518_v0 = vld [vmem:[%s15223_s1 + $0xd10] sm:$0xff]  ;;  %3656 = vmatprep.mubr.bf16.mxu0 %v11767_v43  ;;  %v9195_v21 = vcombine.low %v502_v7, %v506_v9  ;;  %v9187_v53 = vcombine.low %v494_v17, %v498_v19 }
 0x148   :  { %v3371_v34 = vpop.f32.mrf.mxu1  ;;  %3616 = vmatmul.mubr.bf16.vlgmr.msra.gmra.mxu1 %v11753_v36  ;;  %v3332_v63 = vpop.f32.mrf.mxu0  ;;  %3626 = vmatprep.subr.bf16.mxu0 %v9100_v24  ;;  %v9212_v62 = vcombine.high %v518_v0, %v522_v48  ;;  %v9211_v1 = vcombine.low %v518_v0, %v522_v48  ;;  %v358_v24 = vld [vmem:[%s15223_s1 + $0x810] sm:$0xff] }
 0x149   :  { %3666 = vmatpush1.bf16.msra.mxu1 %v9235_v23  ;;  %v12590_v5 = vadd.f32 %v3371_v34, %v3331_v33  ;;  %v3333_v42 = vadd.f32 %v3332_v63, %v12396_v4  ;;  %3697 = vmatprep.mubr.bf16.mxu1 %v11770_v45  ;;  %v9219_v4 = vcombine.low %v526_v28, %v530_v31  ;;  %v478_v34 = vld [vmem:[%s15223_s1 + $0xbd0] sm:$0xff] }
 0x14a   :  { %v3373_v46 = vpop.f32.mrf.mxu1  ;;  %3667 = vmatprep.subr.bf16.mxu1 %v9228_v30  ;;  %v3334_v49 = vpop.f32.mrf.mxu0  ;;  %v9060_v23 = vcombine.high %v366_v14, %v370_v15  ;;  %v9188_v28 = vcombine.high %v494_v17, %v498_v19  ;;  %v490_v30 = vld [vmem:[%s15223_s1 + $0xc30] sm:$0xff]  ;;  %v9059_v31 = vcombine.low %v366_v14, %v370_v15  ;;  %v9052_v33 = vcombine.high %v358_v24, %v362_v26 }
 0x14b   :  { %v12598_v50 = vadd.f32 %v3373_v46, %v3333_v42  ;;  %3627 = vmatpush1.bf16.msra.mxu0 %v9099_v35  ;;  %v482_v35 = vld [vmem:[%s15223_s1 + $0xbf0] sm:$0xff]  ;;  %v9051_v40 = vcombine.low %v358_v24, %v362_v26  ;;  %v9179_v41 = vcombine.low %v486_v27, %v490_v30 }
 0x14c   :  { %v3375_v51 = vpop.f32.mrf.mxu1  ;;  %v3335_v54 = vpop.f32.mrf.mxu0  ;;  %3628 = vmatprep.subr.bf16.mxu0 %v9092_v39  ;;  %v606_v63 = vld [vmem:[%s15223_s1 + $0xfd0] sm:$0xff]  ;;  %v9172_v0 = vcombine.high %v478_v34, %v482_v35 }
 0x14d   :  { %3668 = vmatpush1.bf16.msra.mxu1 %v9227_v38  ;;  %v9180_v38 = vcombine.high %v486_v27, %v490_v30  ;;  %v610_v39 = vld [vmem:[%s15223_s1 + $0xff0] sm:$0xff]  ;;  %v9171_v51 = vcombine.low %v478_v34, %v482_v35 }
 0x14e   :  { %v3376_v61 = vpop.f32.mrf.mxu1  ;;  %3669 = vmatprep.subr.bf16.mxu1 %v9220_v47  ;;  %v470_v42 = vld [vmem:[%s15223_s1 + $0xb90] sm:$0xff]  ;;  %v9300_v48 = vcombine.high %v606_v63, %v610_v39 }
 0x14f   :  { %3629 = vmatpush1.bf16.msra.mxu0 %v9091_v52  ;;  %v474_v46 = vld [vmem:[%s15223_s1 + $0xbb0] sm:$0xff]  ;;  %v9299_v52 = vcombine.low %v606_v63, %v610_v39 }
 0x150   :  { %3630 = vmatprep.subr.bf16.mxu0 %v9084_v55  ;;  %v598_v47 = vld [vmem:[%s15223_s1 + $0xf90] sm:$0xff]  ;;  %v9164_v54 = vcombine.high %v470_v42, %v474_v46  ;;  %v9163_v61 = vcombine.low %v470_v42, %v474_v46 }
 0x151   :  { %3670 = vmatpush1.bf16.msra.mxu1 %v9219_v4  ;;  %v602_v49 = vld [vmem:[%s15223_s1 + $0xfb0] sm:$0xff] }
 0x152   :  { %3671 = vmatprep.subr.bf16.mxu1 %v9212_v62  ;;  %v462_v4 = vld [vmem:[%s15223_s1 + $0xb50] sm:$0xff]  ;;  %v9292_v59 = vcombine.high %v598_v47, %v602_v49  ;;  %v9291_v62 = vcombine.low %v598_v47, %v602_v49 }
 0x153   :  { %3631 = vmatpush1.bf16.msra.mxu0 %v9083_v25  ;;  %v466_v55 = vld [vmem:[%s15223_s1 + $0xb70] sm:$0xff] }
 0x154   :  { %3632 = vmatprep.subr.bf16.mxu0 %v9076_v2  ;;  %v9156_v22 = vcombine.high %v462_v4, %v466_v55  ;;  %v454_v25 = vld [vmem:[%s15223_s1 + $0xb10] sm:$0xff]  ;;  %v9155_v7 = vcombine.low %v462_v4, %v466_v55  ;;  %v12754_v55 = vsub.s32 2, %v11560_v44 }
 0x155   :  { %3672 = vmatpush1.bf16.msra.mxu1 %v9211_v1  ;;  %v458_v1 = vld [vmem:[%s15223_s1 + $0xb30] sm:$0xff] }
 0x156   :  { %3673 = vmatprep.subr.bf16.mxu1 %v9204_v8  ;;  %v582_v2 = vld [vmem:[%s15223_s1 + $0xf10] sm:$0xff]  ;;  %v9283_v8 = vcombine.low %v590_v56, %v594_v60  ;;  %v9148_v9 = vcombine.high %v454_v25, %v458_v1  ;;  %v9147_v17 = vcombine.low %v454_v25, %v458_v1  ;;  %v291_v56 = vld [vmem:[%s15223_s1 + $0x5f8] sm:$0xff] }
 0x157   :  { %3633 = vmatpush1.bf16.msra.mxu0 %v9075_v10  ;;  %v446_v10 = vld [vmem:[%s15223_s1 + $0xad0] sm:$0xff]  ;;  %v9276_v14 = vcombine.high %v582_v2, %v586_v6  ;;  %v279_v25 = vld [vmem:[%s15223_s1 + $0x598] sm:$0xff] }
 0x158   :  { %3634 = vmatprep.subr.bf16.mxu0 %v9068_v13  ;;  %v574_v13 = vld [vmem:[%s15223_s1 + $0xed0] sm:$0xff] }
 0x159   :  { %3674 = vmatpush1.bf16.msra.mxu1 %v9203_v12  ;;  %v450_v12 = vld [vmem:[%s15223_s1 + $0xaf0] sm:$0xff] }
 0x15a   :  { %3675 = vmatprep.subr.bf16.mxu1 %v9196_v18  ;;  %v578_v15 = vld [vmem:[%s15223_s1 + $0xef0] sm:$0xff]  ;;  %v9275_v18 = vcombine.low %v582_v2, %v586_v6  ;;  %v9140_v19 = vcombine.high %v446_v10, %v450_v12  ;;  %v9139_v27 = vcombine.low %v446_v10, %v450_v12  ;;  %v12769_v2 = vsub.s32 3, %v11560_v44  ;;  %v12777_v6 = vld [vmem:[%s15224_s2] sm:$0xff] }
 0x15b   :  { %3635 = vmatpush1.bf16.msra.mxu0 %v9067_v20  ;;  %v438_v20 = vld [vmem:[%s15223_s1 + $0xa90] sm:$0xff]  ;;  %v9268_v24 = vcombine.high %v574_v13, %v578_v15 }
 0x15c   :  { %3636 = vmatprep.subr.bf16.mxu0 %v9060_v23  ;;  %v566_v23 = vld [vmem:[%s15223_s1 + $0xe90] sm:$0xff]  ;;  %v629_v12 = vrot.slane %v12777_v6, %v12769_v2 }
 0x15d   :  { %3676 = vmatpush1.bf16.msra.mxu1 %v9195_v21  ;;  %v442_v21 = vld [vmem:[%s15223_s1 + $0xab0] sm:$0xff] }
 0x15e   :  { %3677 = vmatprep.subr.bf16.mxu1 %v9188_v28  ;;  %v570_v26 = vld [vmem:[%s15223_s1 + $0xeb0] sm:$0xff]  ;;  %v9267_v28 = vcombine.low %v574_v13, %v578_v15  ;;  %v9132_v30 = vcombine.high %v438_v20, %v442_v21  ;;  %v9131_v63 = vcombine.low %v438_v20, %v442_v21  ;;  %v147_v15 = vld [vmem:[%s15223_s1 + $0x178] sm:$0xff] }
 0x15f   :  { %3637 = vmatpush1.bf16.msra.mxu0 %v9059_v31  ;;  %v430_v31 = vld [vmem:[%s15223_s1 + $0xa50] sm:$0xff]  ;;  %v9260_v34 = vcombine.high %v566_v23, %v570_v26 }
 0x160   :  { %3638 = vmatprep.subr.bf16.mxu0 %v9052_v33  ;;  %v558_v33 = vld [vmem:[%s15223_s1 + $0xe50] sm:$0xff] }
 0x161   :  { %3678 = vmatpush1.bf16.msra.mxu1 %v9187_v53  ;;  %v434_v53 = vld [vmem:[%s15223_s1 + $0xa70] sm:$0xff] }
 0x162   :  { %3679 = vmatprep.subr.bf16.mxu1 %v9180_v38  ;;  %v562_v35 = vld [vmem:[%s15223_s1 + $0xe70] sm:$0xff]  ;;  %v9259_v38 = vcombine.low %v566_v23, %v570_v26  ;;  %v9124_v39 = vcombine.high %v430_v31, %v434_v53  ;;  %v9123_v47 = vcombine.low %v430_v31, %v434_v53  ;;  %v139_v26 = vld [vmem:[%s15223_s1 + $0x138] sm:$0xff] }
 0x163   :  { %3639 = vmatpush1.bf16.msra.mxu0 %v9051_v40  ;;  %v422_v40 = vld [vmem:[%s15223_s1 + $0xa10] sm:$0xff]  ;;  %v9252_v42 = vcombine.high %v558_v33, %v562_v35 }
 0x164   :  { %3640 = vmatprep.subr.bf16.mxu0 %v9172_v0  ;;  %v550_v0 = vld [vmem:[%s15223_s1 + $0xe10] sm:$0xff] }
 0x165   :  { %3680 = vmatpush1.bf16.msra.mxu1 %v9179_v41  ;;  %v426_v41 = vld [vmem:[%s15223_s1 + $0xa30] sm:$0xff] }
 0x166   :  { %3681 = vmatprep.subr.bf16.mxu1 %v9300_v48  ;;  %v554_v46 = vld [vmem:[%s15223_s1 + $0xe30] sm:$0xff]  ;;  %v9251_v48 = vcombine.low %v558_v33, %v562_v35  ;;  %v9116_v49 = vcombine.high %v422_v40, %v426_v41 }
 0x167   :  { %3641 = vmatpush2.bf16.msra.mxu0 %v9171_v51  ;;  %v159_v51 = vld [vmem:[%s15223_s1 + $0x1d8] sm:$0xff]  ;;  %v9244_v4 = vcombine.high %v550_v0, %v554_v46  ;;  %v9243_v60 = vcombine.low %v550_v0, %v554_v46 }
 0x168   :  { %3642 = vmatprep.subr.bf16.mxu0 %v9164_v54  ;;  %v287_v54 = vld [vmem:[%s15223_s1 + $0x5d8] sm:$0xff] }
 0x169   :  { %3682 = vmatpush2.bf16.msra.mxu1 %v9299_v52  ;;  %v163_v52 = vld [vmem:[%s15223_s1 + $0x1f8] sm:$0xff]  ;;  %v8982_v1 = vcombine.high %v287_v54, %v291_v56 }
 0x16a   :  { %3683 = vmatprep.subr.bf16.mxu1 %v9292_v59  ;;  %v9115_v59 = vcombine.low %v422_v40, %v426_v41 }
 0x16b   :  { %3643 = vmatpush2.bf16.msra.mxu0 %v9163_v61  ;;  %v8854_v61 = vcombine.high %v159_v51, %v163_v52 }
 0x16c   :  { %3644 = vmatprep.subr.bf16.mxu0 %v9156_v22  ;;  %v155_v22 = vld [vmem:[%s15223_s1 + $0x1b8] sm:$0xff] }
 0x16d   :  { %3684 = vmatpush2.bf16.msra.mxu1 %v9291_v62  ;;  %v151_v62 = vld [vmem:[%s15223_s1 + $0x198] sm:$0xff] }
 0x16e   :  { %3685 = vmatprep.subr.bf16.mxu1 %v9284_v3  ;;  %v283_v3 = vld [vmem:[%s15223_s1 + $0x5b8] sm:$0xff]  ;;  %v8846_v10 = vcombine.high %v151_v62, %v155_v22  ;;  %v8845_v23 = vcombine.low %v151_v62, %v155_v22 }
 0x16f   :  { %3645 = vmatpush2.bf16.msra.mxu0 %v9155_v7  ;;  %v625_v7 = vrot.slane %v12777_v6, %v12754_v55  ;;  %v8974_v13 = vcombine.high %v279_v25, %v283_v3  ;;  %v251_v62 = vld [vmem:[%s15223_s1 + $0x4b8] sm:$0xff] }
 0x170   :  { %3646 = vmatprep.subr.bf16.mxu0 %v9148_v9  ;;  %v8981_v9 = vcombine.low %v287_v54, %v291_v56  ;;  %v119_v56 = vld [vmem:[%s15223_s1 + $0x98] sm:$0xff] }
 0x171   :  { %3686 = vmatpush2.bf16.msra.mxu1 %v9283_v8  ;;  %v8853_v8 = vcombine.low %v159_v51, %v163_v52  ;;  %v259_v51 = vld [vmem:[%s15223_s1 + $0x4f8] sm:$0xff] }
 0x172   :  { %3687 = vmatprep.subr.bf16.mxu1 %v9276_v14  ;;  %v143_v14 = vld [vmem:[%s15223_s1 + $0x158] sm:$0xff] }
 0x173   :  { %3647 = vmatpush2.bf16.msra.mxu0 %v9147_v17  ;;  %v8837_v41 = vcombine.low %v143_v14, %v147_v15 }
 0x174   :  { %3648 = vmatprep.subr.bf16.mxu0 %v9140_v19  ;;  %v275_v19 = vld [vmem:[%s15223_s1 + $0x578] sm:$0xff] }
 0x175   :  { %3688 = vmatpush2.bf16.msra.mxu1 %v9275_v18  ;;  %v271_v18 = vld [vmem:[%s15223_s1 + $0x558] sm:$0xff] }
 0x176   :  { %3689 = vmatprep.subr.bf16.mxu1 %v9268_v24  ;;  %v135_v24 = vld [vmem:[%s15223_s1 + $0x118] sm:$0xff] }
 0x177   :  { %3649 = vmatpush2.bf16.msra.mxu0 %v9139_v27  ;;  %v8829_v52 = vcombine.low %v135_v24, %v139_v26 }
 0x178   :  { %3650 = vmatprep.subr.bf16.mxu0 %v9132_v30  ;;  %v8838_v30 = vcombine.high %v143_v14, %v147_v15  ;;  %v103_v15 = vld [vmem:[%s15223_s1 + $0x18] sm:$0xff] }
 0x179   :  { %3690 = vmatpush2.bf16.msra.mxu1 %v9267_v28  ;;  %v8973_v28 = vcombine.low %v279_v25, %v283_v3  ;;  %v111_v3 = vld [vmem:[%s15223_s1 + $0x58] sm:$0xff] }
 0x17a   :  { %3691 = vmatprep.subr.bf16.mxu1 %v9260_v34  ;;  %v8966_v34 = vcombine.high %v271_v18, %v275_v19 }
 0x17b   :  { %3651 = vmatpush2.bf16.msra.mxu0 %v9131_v63  ;;  %v263_v63 = vld [vmem:[%s15223_s1 + $0x518] sm:$0xff] }
 0x17c   :  { %3652 = vmatprep.subr.bf16.mxu0 %v9124_v39 }
 0x17d   :  { %3692 = vmatpush2.bf16.msra.mxu1 %v9259_v38  ;;  %v267_v38 = vld [vmem:[%s15223_s1 + $0x538] sm:$0xff] }
 0x17e   :  { %3693 = vmatprep.subr.bf16.mxu1 %v9252_v42  ;;  %v8830_v42 = vcombine.high %v135_v24, %v139_v26  ;;  %v8957_v54 = vcombine.low %v263_v63, %v267_v38 }
 0x17f   :  { %3653 = vmatpush2.bf16.msra.mxu0 %v9123_v47  ;;  %v8958_v47 = vcombine.high %v263_v63, %v267_v38 }
 0x180   :  { %3654 = vmatprep.subr.bf16.mxu0 %v9116_v49  ;;  %v255_v49 = vld [vmem:[%s15223_s1 + $0x4d8] sm:$0xff] }
 0x181   :  { %3694 = vmatpush2.bf16.msra.mxu1 %v9251_v48  ;;  %v127_v48 = vld [vmem:[%s15223_s1 + $0xd8] sm:$0xff]  ;;  %v8949_v25 = vcombine.low %v255_v49, %v259_v51 }
 0x182   :  { %3695 = vmatprep.subr.bf16.mxu1 %v9244_v4 }
 0x183   :  { %3655 = vmatpush2.bf16.msra.mxu0 %v9115_v59  ;;  %v123_v59 = vld [vmem:[%s15223_s1 + $0xb8] sm:$0xff] }
 0x184   :  { %3706 = vmatprep.subr.bf16.mxu0 %v8854_v61  ;;  %v8950_v61 = vcombine.high %v255_v49, %v259_v51 }
 0x185   :  { %3696 = vmatpush2.bf16.msra.mxu1 %v9243_v60  ;;  %v247_v60 = vld [vmem:[%s15223_s1 + $0x498] sm:$0xff] }
 0x186   :  { %3747 = vmatprep.subr.bf16.mxu1 %v8982_v1  ;;  %v3412_v17 = vpop.f32.mrf.mxu0  ;;  %3657 = vmatmul.mubr.bf16.vlgmr.msra.gmra.mxu0 %v11957_v57  ;;  %v8814_v1 = vcombine.high %v119_v56, %v123_v59 }
 0x187   :  { %v3413_v20 = vadd.f32 %v3412_v17, %v625_v7  ;;  %3707 = vmatpush1.bf16.msra.mxu0 %v8853_v8  ;;  %3738 = vmatprep.mubr.bf16.mxu0 %v11612_v11  ;;  %v8965_v11 = vcombine.low %v271_v18, %v275_v19  ;;  %v115_v7 = vld [vmem:[%s15223_s1 + $0x78] sm:$0xff] }
 0x188   :  { %v3453_v21 = vpop.f32.mrf.mxu1  ;;  %3698 = vmatmul.mubr.bf16.vlgmr.msra.gmra.mxu1 %v11961_v58  ;;  %v3414_v27 = vpop.f32.mrf.mxu0  ;;  %3708 = vmatprep.subr.bf16.mxu0 %v8846_v10  ;;  %v239_v8 = vld [vmem:[%s15223_s1 + $0x458] sm:$0xff]  ;;  %v8806_v14 = vcombine.high %v111_v3, %v115_v7 }
 0x189   :  { %3748 = vmatpush1.bf16.msra.mxu1 %v8981_v9  ;;  %v12803_v31 = vadd.f32 %v3453_v21, %v3413_v20  ;;  %v3415_v53 = vadd.f32 %v3414_v27, %v629_v12  ;;  %3779 = vmatprep.mubr.bf16.mxu1 %v11623_v16  ;;  %v131_v16 = vld [vmem:[%s15223_s1 + $0xf8] sm:$0xff]  ;;  %v8942_v9 = vcombine.high %v247_v60, %v251_v62 }
 0x18a   :  { %v3455_v33 = vpop.f32.mrf.mxu1  ;;  %3749 = vmatprep.subr.bf16.mxu1 %v8974_v13  ;;  %v3416_v35 = vpop.f32.mrf.mxu0  ;;  %v8822_v4 = vcombine.high %v127_v48, %v131_v16  ;;  %v8821_v22 = vcombine.low %v127_v48, %v131_v16  ;;  %v243_v10 = vld [vmem:[%s15223_s1 + $0x478] sm:$0xff]  ;;  %v8813_v12 = vcombine.low %v119_v56, %v123_v59  ;;  %v8941_v13 = vcombine.low %v247_v60, %v251_v62 }
 0x18b   :  { %v12813_v39 = vadd.f32 %v3455_v33, %v3415_v53  ;;  %3709 = vmatpush1.bf16.msra.mxu0 %v8845_v23  ;;  %v107_v17 = vld [vmem:[%s15223_s1 + $0x38] sm:$0xff]  ;;  %v8934_v19 = vcombine.high %v239_v8, %v243_v10 }
 0x18c   :  { %v3457_v40 = vpop.f32.mrf.mxu1  ;;  %v3417_v0 = vpop.f32.mrf.mxu0  ;;  %3710 = vmatprep.subr.bf16.mxu0 %v8838_v30  ;;  %v231_v18 = vld [vmem:[%s15223_s1 + $0x418] sm:$0xff] }
 0x18d   :  { %3750 = vmatpush1.bf16.msra.mxu1 %v8973_v28  ;;  %v235_v20 = vld [vmem:[%s15223_s1 + $0x438] sm:$0xff] }
 0x18e   :  { %v3458_v46 = vpop.f32.mrf.mxu1  ;;  %3751 = vmatprep.subr.bf16.mxu1 %v8966_v34 }
 0x18f   :  { %3711 = vmatpush1.bf16.msra.mxu0 %v8837_v41 }
 0x190   :  { %3712 = vmatprep.subr.bf16.mxu0 %v8830_v42 }
 0x191   :  { %3752 = vmatpush1.bf16.msra.mxu1 %v8965_v11 }
 0x192   :  { %3753 = vmatprep.subr.bf16.mxu1 %v8958_v47 }
 0x193   :  { %3713 = vmatpush1.bf16.msra.mxu0 %v8829_v52 }
 0x194   :  { %3714 = vmatprep.subr.bf16.mxu0 %v8822_v4 }
 0x195   :  { %3754 = vmatpush1.bf16.msra.mxu1 %v8957_v54 }
 0x196   :  { %3755 = vmatprep.subr.bf16.mxu1 %v8950_v61 }
 0x197   :  { %3715 = vmatpush1.bf16.msra.mxu0 %v8821_v22 }
 0x198   :  { %3716 = vmatprep.subr.bf16.mxu0 %v8814_v1 }
 0x199   :  { %3756 = vmatpush1.bf16.msra.mxu1 %v8949_v25 }
 0x19a   :  { %3757 = vmatprep.subr.bf16.mxu1 %v8942_v9 }
 0x19b   :  { %18 = vsyncpa [#allocation3], 0  ;;  %3717 = vmatpush1.bf16.msra.mxu0 %v8813_v12  ;;  %v8805_v21 = vcombine.low %v111_v3, %v115_v7  ;;  %v8933_v23 = vcombine.low %v239_v8, %v243_v10  ;;  %v8798_v24 = vcombine.high %v103_v15, %v107_v17  ;;  %v8926_v26 = vcombine.high %v231_v18, %v235_v20  ;;  %v223_v27 = vld [vmem:[%s15223_s1 + $0x3d8] sm:$0xff] }
 0x19c   :  { %3718 = vmatprep.subr.bf16.mxu0 %v8806_v14  ;;  %v227_v28 = vld [vmem:[%s15223_s1 + $0x3f8] sm:$0xff]  ;;  %v8797_v33 = vcombine.low %v103_v15, %v107_v17  ;;  %v8925_v34 = vcombine.low %v231_v18, %v235_v20  ;;  %vm11422_vm0 = vmmov 0   ;;  %vm8720_vm1 = vcmask 523264  }
 0x19d   :  { %3758 = vmatpush1.bf16.msra.mxu1 %v8941_v13  ;;  %v351_v30 = vld [vmem:[%s15223_s1 + $0x7d8] sm:$0xff]  ;;  %v8918_v35 = vcombine.high %v223_v27, %v227_v28  ;;  %v8917_v11 = vcombine.low %v223_v27, %v227_v28  ;;  %vm8764_vm2 = vcmask 33792  }
 0x19e   :  { %3759 = vmatprep.subr.bf16.mxu1 %v8934_v19  ;;  %v355_v53 = vld [vmem:[%s15223_s1 + $0x7f8] sm:$0xff] }
 0x19f   :  { %3719 = vmatpush1.bf16.msra.mxu0 %v8805_v21  ;;  %v9046_v63 = vcombine.high %v351_v30, %v355_v53  ;;  %v215_v38 = vld [vmem:[%s15223_s1 + $0x398] sm:$0xff]  ;;  %v9045_v42 = vcombine.low %v351_v30, %v355_v53 }
 0x1a0   :  { %3720 = vmatprep.subr.bf16.mxu0 %v8798_v24  ;;  %v219_v40 = vld [vmem:[%s15223_s1 + $0x3b8] sm:$0xff] }
 0x1a1   :  { %3760 = vmatpush1.bf16.msra.mxu1 %v8933_v23  ;;  %v343_v41 = vld [vmem:[%s15223_s1 + $0x798] sm:$0xff]  ;;  %v8910_v46 = vcombine.high %v215_v38, %v219_v40  ;;  %v8909_v52 = vcombine.low %v215_v38, %v219_v40 }
 0x1a2   :  { %3761 = vmatprep.subr.bf16.mxu1 %v8926_v26  ;;  %v347_v0 = vld [vmem:[%s15223_s1 + $0x7b8] sm:$0xff] }
 0x1a3   :  { %3721 = vmatpush1.bf16.msra.mxu0 %v8797_v33  ;;  %v9038_v47 = vcombine.high %v343_v41, %v347_v0  ;;  %v207_v48 = vld [vmem:[%s15223_s1 + $0x358] sm:$0xff]  ;;  %v9037_v54 = vcombine.low %v343_v41, %v347_v0 }
 0x1a4   :  { %3722 = vmatprep.subr.bf16.mxu0 %v8918_v35  ;;  %v211_v16 = vld [vmem:[%s15223_s1 + $0x378] sm:$0xff] }
 0x1a5   :  { %3762 = vmatpush1.bf16.msra.mxu1 %v8925_v34  ;;  %v335_v49 = vld [vmem:[%s15223_s1 + $0x758] sm:$0xff]  ;;  %v8902_v4 = vcombine.high %v207_v48, %v211_v16  ;;  %v8901_v22 = vcombine.low %v207_v48, %v211_v16 }
 0x1a6   :  { %3763 = vmatprep.subr.bf16.mxu1 %v9046_v63  ;;  %v339_v51 = vld [vmem:[%s15223_s1 + $0x778] sm:$0xff] }
 0x1a7   :  { %3723 = vmatpush2.bf16.msra.mxu0 %v8917_v11  ;;  %v9030_v56 = vcombine.high %v335_v49, %v339_v51  ;;  %v199_v59 = vld [vmem:[%s15223_s1 + $0x318] sm:$0xff]  ;;  %v9029_v25 = vcombine.low %v335_v49, %v339_v51 }
 0x1a8   :  { %3724 = vmatprep.subr.bf16.mxu0 %v8910_v46  ;;  %v203_v60 = vld [vmem:[%s15223_s1 + $0x338] sm:$0xff] }
 0x1a9   :  { %3764 = vmatpush2.bf16.msra.mxu1 %v9045_v42  ;;  %v327_v61 = vld [vmem:[%s15223_s1 + $0x718] sm:$0xff]  ;;  %v8894_v1 = vcombine.high %v199_v59, %v203_v60  ;;  %v8893_v12 = vcombine.low %v199_v59, %v203_v60 }
 0x1aa   :  { %3765 = vmatprep.subr.bf16.mxu1 %v9038_v47  ;;  %v331_v62 = vld [vmem:[%s15223_s1 + $0x738] sm:$0xff] }
 0x1ab   :  { %3725 = vmatpush2.bf16.msra.mxu0 %v8909_v52  ;;  %v9022_v3 = vcombine.high %v327_v61, %v331_v62  ;;  %v191_v7 = vld [vmem:[%s15223_s1 + $0x2d8] sm:$0xff]  ;;  %v9021_v13 = vcombine.low %v327_v61, %v331_v62 }
 0x1ac   :  { %3726 = vmatprep.subr.bf16.mxu0 %v8902_v4  ;;  %v195_v8 = vld [vmem:[%s15223_s1 + $0x2f8] sm:$0xff] }
 0x1ad   :  { %3766 = vmatpush2.bf16.msra.mxu1 %v9037_v54  ;;  %v319_v9 = vld [vmem:[%s15223_s1 + $0x6d8] sm:$0xff]  ;;  %v8886_v14 = vcombine.high %v191_v7, %v195_v8  ;;  %v8885_v21 = vcombine.low %v191_v7, %v195_v8 }
 0x1ae   :  { %3767 = vmatprep.subr.bf16.mxu1 %v9030_v56  ;;  %v323_v10 = vld [vmem:[%s15223_s1 + $0x6f8] sm:$0xff] }
 0x1af   :  { %3727 = vmatpush2.bf16.msra.mxu0 %v8901_v22  ;;  %v9014_v15 = vcombine.high %v319_v9, %v323_v10  ;;  %v183_v17 = vld [vmem:[%s15223_s1 + $0x298] sm:$0xff]  ;;  %v9013_v23 = vcombine.low %v319_v9, %v323_v10 }
 0x1b0   :  { %3728 = vmatprep.subr.bf16.mxu0 %v8894_v1  ;;  %v187_v18 = vld [vmem:[%s15223_s1 + $0x2b8] sm:$0xff] }
 0x1b1   :  { %3768 = vmatpush2.bf16.msra.mxu1 %v9029_v25  ;;  %v311_v19 = vld [vmem:[%s15223_s1 + $0x698] sm:$0xff]  ;;  %v8878_v24 = vcombine.high %v183_v17, %v187_v18  ;;  %v8877_v33 = vcombine.low %v183_v17, %v187_v18 }
 0x1b2   :  { %3769 = vmatprep.subr.bf16.mxu1 %v9022_v3  ;;  %v315_v20 = vld [vmem:[%s15223_s1 + $0x6b8] sm:$0xff] }
 0x1b3   :  { %3729 = vmatpush2.bf16.msra.mxu0 %v8893_v12  ;;  %v9006_v26 = vcombine.high %v311_v19, %v315_v20  ;;  %v175_v27 = vld [vmem:[%s15223_s1 + $0x258] sm:$0xff]  ;;  %v9005_v34 = vcombine.low %v311_v19, %v315_v20 }
 0x1b4   :  { %3730 = vmatprep.subr.bf16.mxu0 %v8886_v14  ;;  %v179_v28 = vld [vmem:[%s15223_s1 + $0x278] sm:$0xff] }
 0x1b5   :  { %3770 = vmatpush2.bf16.msra.mxu1 %v9021_v13  ;;  %v303_v30 = vld [vmem:[%s15223_s1 + $0x658] sm:$0xff]  ;;  %v8870_v35 = vcombine.high %v175_v27, %v179_v28  ;;  %v8869_v11 = vcombine.low %v175_v27, %v179_v28 }
 0x1b6   :  { %3771 = vmatprep.subr.bf16.mxu1 %v9014_v15  ;;  %v307_v53 = vld [vmem:[%s15223_s1 + $0x678] sm:$0xff] }
 0x1b7   :  { %3731 = vmatpush2.bf16.msra.mxu0 %v8885_v21  ;;  %v8998_v63 = vcombine.high %v303_v30, %v307_v53  ;;  %v167_v38 = vld [vmem:[%s15223_s1 + $0x218] sm:$0xff]  ;;  %v8997_v42 = vcombine.low %v303_v30, %v307_v53 }
 0x1b8   :  { %3732 = vmatprep.subr.bf16.mxu0 %v8878_v24  ;;  %v171_v40 = vld [vmem:[%s15223_s1 + $0x238] sm:$0xff] }
 0x1b9   :  { %3772 = vmatpush2.bf16.msra.mxu1 %v9013_v23  ;;  %v295_v41 = vld [vmem:[%s15223_s1 + $0x618] sm:$0xff]  ;;  %v8862_v46 = vcombine.high %v167_v38, %v171_v40  ;;  %v8861_v52 = vcombine.low %v167_v38, %v171_v40 }
 0x1ba   :  { %3773 = vmatprep.subr.bf16.mxu1 %v9006_v26  ;;  %v299_v0 = vld [vmem:[%s15223_s1 + $0x638] sm:$0xff] }
 0x1bb   :  { %3733 = vmatpush2.bf16.msra.mxu0 %v8877_v33  ;;  %v8990_v47 = vcombine.high %v295_v41, %v299_v0  ;;  %v415_v48 = vld [vmem:[%s15223_s1 + $0x9d8] sm:$0xff]  ;;  %v8989_v54 = vcombine.low %v295_v41, %v299_v0 }
 0x1bc   :  { %3734 = vmatprep.subr.bf16.mxu0 %v8870_v35  ;;  %v419_v16 = vld [vmem:[%s15223_s1 + $0x9f8] sm:$0xff] }
 0x1bd   :  { %3774 = vmatpush2.bf16.msra.mxu1 %v9005_v34  ;;  %v543_v49 = vld [vmem:[%s15223_s1 + $0xdd8] sm:$0xff]  ;;  %v9110_v4 = vcombine.high %v415_v48, %v419_v16  ;;  %v9109_v22 = vcombine.low %v415_v48, %v419_v16 }
 0x1be   :  { %3775 = vmatprep.subr.bf16.mxu1 %v8998_v63  ;;  %v547_v51 = vld [vmem:[%s15223_s1 + $0xdf8] sm:$0xff] }
 0x1bf   :  { %3735 = vmatpush2.bf16.msra.mxu0 %v8869_v11  ;;  %v9238_v56 = vcombine.high %v543_v49, %v547_v51  ;;  %v407_v59 = vld [vmem:[%s15223_s1 + $0x998] sm:$0xff]  ;;  %v9237_v25 = vcombine.low %v543_v49, %v547_v51 }
 0x1c0   :  { %3736 = vmatprep.subr.bf16.mxu0 %v8862_v46  ;;  %v411_v60 = vld [vmem:[%s15223_s1 + $0x9b8] sm:$0xff] }
 0x1c1   :  { %3776 = vmatpush2.bf16.msra.mxu1 %v8997_v42  ;;  %v535_v61 = vld [vmem:[%s15223_s1 + $0xd98] sm:$0xff]  ;;  %v9102_v1 = vcombine.high %v407_v59, %v411_v60  ;;  %v9101_v15 = vcombine.low %v407_v59, %v411_v60 }
 0x1c2   :  { %3777 = vmatprep.subr.bf16.mxu1 %v8990_v47  ;;  %v539_v62 = vld [vmem:[%s15223_s1 + $0xdb8] sm:$0xff] }
 0x1c3   :  { %3737 = vmatpush2.bf16.msra.mxu0 %v8861_v52  ;;  %v9230_v3 = vcombine.high %v535_v61, %v539_v62  ;;  %v399_v7 = vld [vmem:[%s15223_s1 + $0x958] sm:$0xff] }
 0x1c4   :  { %3788 = vmatprep.subr.bf16.mxu0 %v9110_v4  ;;  %v403_v8 = vld [vmem:[%s15223_s1 + $0x978] sm:$0xff] }
 0x1c5   :  { %3778 = vmatpush2.bf16.msra.mxu1 %v8989_v54  ;;  %v527_v10 = vld [vmem:[%s15223_s1 + $0xd58] sm:$0xff]  ;;  %v9094_v18 = vcombine.high %v399_v7, %v403_v8  ;;  %v9093_v28 = vcombine.low %v399_v7, %v403_v8 }
 0x1c6   :  { %3829 = vmatprep.subr.bf16.mxu1 %v9238_v56  ;;  %v3494_v9 = vpop.f32.mrf.mxu0  ;;  %3739 = vmatmul.mubr.bf16.vlgmr.msra.gmra.mxu0 %v11741_v32  ;;  %v531_v12 = vld [vmem:[%s15223_s1 + $0xd78] sm:$0xff]  ;;  %v9229_v32 = vcombine.low %v535_v61, %v539_v62 }
 0x1c7   :  { %v3495_v13 = vadd.f32 %v3494_v9, %v12803_v31  ;;  %3789 = vmatpush1.bf16.msra.mxu0 %v9109_v22  ;;  %v9222_v21 = vcombine.high %v527_v10, %v531_v12  ;;  %v391_v31 = vld [vmem:[%s15223_s1 + $0x918] sm:$0xff]  ;;  %3820 = vmatprep.mubr.bf16.mxu0 %v11767_v43  ;;  %v9221_v53 = vcombine.low %v527_v10, %v531_v12 }
 0x1c8   :  { %v3535_v14 = vpop.f32.mrf.mxu1  ;;  %3780 = vmatmul.mubr.bf16.vlgmr.msra.gmra.mxu1 %v11753_v36  ;;  %v12998_v17 = vpop.f32.mrf.mxu0  ;;  %3790 = vmatprep.subr.bf16.mxu0 %v9102_v1  ;;  %v395_v36 = vld [vmem:[%s15223_s1 + $0x938] sm:$0xff] }
 0x1c9   :  { %3830 = vmatpush1.bf16.msra.mxu1 %v9237_v25  ;;  %v13000_v19 = vadd.f32 %v3535_v14, %v3495_v13  ;;  %v519_v24 = vld [vmem:[%s15223_s1 + $0xd18] sm:$0xff]  ;;  %3861 = vmatprep.mubr.bf16.mxu1 %v11770_v45  ;;  %v9086_v33 = vcombine.high %v391_v31, %v395_v36  ;;  %v9085_v40 = vcombine.low %v391_v31, %v395_v36 }
 0x1ca   :  { %v13002_v20 = vpop.f32.mrf.mxu1  ;;  %3831 = vmatprep.subr.bf16.mxu1 %v9230_v3  ;;  %v3498_v23 = vpop.f32.mrf.mxu0  ;;  %v523_v26 = vld [vmem:[%s15223_s1 + $0xd38] sm:$0xff] }
 0x1cb   :  { %3791 = vmatpush1.bf16.msra.mxu0 %v9101_v15  ;;  %v9214_v34 = vcombine.high %v519_v24, %v523_v26  ;;  %v383_v35 = vld [vmem:[%s15223_s1 + $0x8d8] sm:$0xff]  ;;  %v9213_v41 = vcombine.low %v519_v24, %v523_v26 }
 0x1cc   :  { %v3539_v27 = vpop.f32.mrf.mxu1  ;;  %v3499_v30 = vpop.f32.mrf.mxu0  ;;  %3792 = vmatprep.subr.bf16.mxu0 %v9094_v18  ;;  %v387_v63 = vld [vmem:[%s15223_s1 + $0x8f8] sm:$0xff] }
 0x1cd   :  { %3832 = vmatpush1.bf16.msra.mxu1 %v9229_v32  ;;  %v511_v45 = vld [vmem:[%s15223_s1 + $0xcd8] sm:$0xff]  ;;  %v9078_v0 = vcombine.high %v383_v35, %v387_v63  ;;  %v9077_v16 = vcombine.low %v383_v35, %v387_v63 }
 0x1ce   :  { %v3540_v43 = vpop.f32.mrf.mxu1  ;;  %3833 = vmatprep.subr.bf16.mxu1 %v9222_v21  ;;  %v515_v38 = vld [vmem:[%s15223_s1 + $0xcf8] sm:$0xff] }
 0x1cf   :  { %3793 = vmatpush1.bf16.msra.mxu0 %v9093_v28  ;;  %v9206_v11 = vcombine.high %v511_v45, %v515_v38  ;;  %v375_v42 = vld [vmem:[%s15223_s1 + $0x898] sm:$0xff]  ;;  %v9205_v49 = vcombine.low %v511_v45, %v515_v38 }
 0x1d0   :  { %3794 = vmatprep.subr.bf16.mxu0 %v9086_v33  ;;  %v379_v46 = vld [vmem:[%s15223_s1 + $0x8b8] sm:$0xff] }
 0x1d1   :  { %3834 = vmatpush1.bf16.msra.mxu1 %v9221_v53  ;;  %v503_v47 = vld [vmem:[%s15223_s1 + $0xc98] sm:$0xff]  ;;  %v9070_v51 = vcombine.high %v375_v42, %v379_v46  ;;  %v9069_v60 = vcombine.low %v375_v42, %v379_v46 }
 0x1d2   :  { %3835 = vmatprep.subr.bf16.mxu1 %v9214_v34  ;;  %v507_v48 = vld [vmem:[%s15223_s1 + $0xcb8] sm:$0xff] }
 0x1d3   :  { %3795 = vmatpush1.bf16.msra.mxu0 %v9085_v40  ;;  %v9198_v52 = vcombine.high %v503_v47, %v507_v48  ;;  %v367_v54 = vld [vmem:[%s15223_s1 + $0x858] sm:$0xff]  ;;  %v9197_v61 = vcombine.low %v503_v47, %v507_v48 }
 0x1d4   :  { %3796 = vmatprep.subr.bf16.mxu0 %v9078_v0  ;;  %v371_v4 = vld [vmem:[%s15223_s1 + $0x878] sm:$0xff] }
 0x1d5   :  { %3836 = vmatpush1.bf16.msra.mxu1 %v9213_v41  ;;  %v495_v56 = vld [vmem:[%s15223_s1 + $0xc58] sm:$0xff]  ;;  %v9062_v62 = vcombine.high %v367_v54, %v371_v4  ;;  %v9061_v8 = vcombine.low %v367_v54, %v371_v4 }
 0x1d6   :  { %3837 = vmatprep.subr.bf16.mxu1 %v9206_v11  ;;  %v499_v59 = vld [vmem:[%s15223_s1 + $0xc78] sm:$0xff] }
 0x1d7   :  { %3797 = vmatpush1.bf16.msra.mxu0 %v9077_v16  ;;  %v9190_v22 = vcombine.high %v495_v56, %v499_v59  ;;  %v359_v25 = vld [vmem:[%s15223_s1 + $0x818] sm:$0xff]  ;;  %v9189_v9 = vcombine.low %v495_v56, %v499_v59 }
 0x1d8   :  { %3798 = vmatprep.subr.bf16.mxu0 %v9070_v51  ;;  %v363_v1 = vld [vmem:[%s15223_s1 + $0x838] sm:$0xff] }
 0x1d9   :  { %3838 = vmatpush1.bf16.msra.mxu1 %v9205_v49  ;;  %v487_v3 = vld [vmem:[%s15223_s1 + $0xc18] sm:$0xff]  ;;  %v9054_v10 = vcombine.high %v359_v25, %v363_v1  ;;  %v9053_v18 = vcombine.low %v359_v25, %v363_v1 }
 0x1da   :  { %3839 = vmatprep.subr.bf16.mxu1 %v9198_v52  ;;  %v491_v7 = vld [vmem:[%s15223_s1 + $0xc38] sm:$0xff] }
 0x1db   :  { %3799 = vmatpush1.bf16.msra.mxu0 %v9069_v60  ;;  %v9182_v12 = vcombine.high %v487_v3, %v491_v7  ;;  %v479_v13 = vld [vmem:[%s15223_s1 + $0xbd8] sm:$0xff]  ;;  %v9181_v21 = vcombine.low %v487_v3, %v491_v7  ;;  %v3497_v3 = vadd.f32 %v12998_v17, %v12813_v39 }
 0x1dc   :  { %3800 = vmatprep.subr.bf16.mxu0 %v9062_v62  ;;  %v483_v14 = vld [vmem:[%s15223_s1 + $0xbf8] sm:$0xff] }
 0x1dd   :  { %3840 = vmatpush1.bf16.msra.mxu1 %v9197_v61  ;;  %v607_v15 = vld [vmem:[%s15223_s1 + $0xfd8] sm:$0xff]  ;;  %v9174_v31 = vcombine.high %v479_v13, %v483_v14  ;;  %v9173_v28 = vcombine.low %v479_v13, %v483_v14  ;;  %v3538_v14 = vadd.f32 %v13002_v20, %v3497_v3 }
 0x1de   :  { %3841 = vmatprep.subr.bf16.mxu1 %v9190_v22  ;;  %v611_v32 = vld [vmem:[%s15223_s1 + $0xff8] sm:$0xff] }
 0x1df   :  { %3801 = vmatpush1.bf16.msra.mxu0 %v9061_v8  ;;  %v9302_v36 = vcombine.high %v607_v15, %v611_v32  ;;  %v471_v23 = vld [vmem:[%s15223_s1 + $0xb98] sm:$0xff]  ;;  %v9301_v30 = vcombine.low %v607_v15, %v611_v32 }
 0x1e0   :  { %3802 = vmatprep.subr.bf16.mxu0 %v9054_v10  ;;  %v475_v24 = vld [vmem:[%s15223_s1 + $0xbb8] sm:$0xff] }
 0x1e1   :  { %3842 = vmatpush1.bf16.msra.mxu1 %v9189_v9  ;;  %v599_v26 = vld [vmem:[%s15223_s1 + $0xf98] sm:$0xff]  ;;  %v9166_v53 = vcombine.high %v471_v23, %v475_v24  ;;  %v9165_v45 = vcombine.low %v471_v23, %v475_v24  ;;  %v3871_v23 = vmax.f32 %v12598_v50, 0.0 }
 0x1e2   :  { %3843 = vmatprep.subr.bf16.mxu1 %v9182_v12  ;;  %v603_v27 = vld [vmem:[%s15223_s1 + $0xfb8] sm:$0xff] }
 0x1e3   :  { %3803 = vmatpush1.bf16.msra.mxu0 %v9053_v18  ;;  %v9294_v33 = vcombine.high %v599_v26, %v603_v27  ;;  %v463_v43 = vld [vmem:[%s15223_s1 + $0xb58] sm:$0xff]  ;;  %v9293_v38 = vcombine.low %v599_v26, %v603_v27 }
 0x1e4   :  { %3804 = vmatprep.subr.bf16.mxu0 %v9174_v31  ;;  %v467_v34 = vld [vmem:[%s15223_s1 + $0xb78] sm:$0xff] }
 0x1e5   :  { %3844 = vmatpush1.bf16.msra.mxu1 %v9181_v21  ;;  %v591_v35 = vld [vmem:[%s15223_s1 + $0xf58] sm:$0xff]  ;;  %v9158_v40 = vcombine.high %v463_v43, %v467_v34  ;;  %v9157_v47 = vcombine.low %v463_v43, %v467_v34  ;;  %v13156_v21 = vld [vmem:[%s15225_s3] sm:$0xff] }
 0x1e6   :  { %3845 = vmatprep.subr.bf16.mxu1 %v9302_v36  ;;  %v595_v63 = vld [vmem:[%s15223_s1 + $0xf78] sm:$0xff]  ;;  %v3887_v24 = vrot.slane %v13156_v21, %v12359_v37  ;;  %v13178_v43 = vld [vmem:[%s15226_s4] sm:$0xff] }
 0x1e7   :  { %3805 = vmatpush2.bf16.msra.mxu0 %v9173_v28  ;;  %v9286_v41 = vcombine.high %v591_v35, %v595_v63  ;;  %v455_v0 = vld [vmem:[%s15223_s1 + $0xb18] sm:$0xff]  ;;  %v9285_v48 = vcombine.low %v591_v35, %v595_v63  ;;  %v3873_v28 = vmax.f32 %v3538_v14, 0.0  ;;  %v3937_v63 = vrot.slane %v13178_v43, %v12359_v37 }
 0x1e8   :  { %3806 = vmatprep.subr.bf16.mxu0 %v9166_v53  ;;  %v459_v11 = vld [vmem:[%s15223_s1 + $0xb38] sm:$0xff]  ;;  %v3921_v35 = vmul.f32 %v3887_v24, %v3871_v23 }
 0x1e9   :  { %3846 = vmatpush2.bf16.msra.mxu1 %v9301_v30  ;;  %v583_v42 = vld [vmem:[%s15223_s1 + $0xf18] sm:$0xff]  ;;  %v9150_v16 = vcombine.high %v455_v0, %v459_v11  ;;  %v9149_v56 = vcombine.low %v455_v0, %v459_v11  ;;  %v3895_v30 = vrot.slane %v13156_v21, %v12769_v2 }
 0x1ea   :  { %3847 = vmatprep.subr.bf16.mxu1 %v9294_v33  ;;  %v587_v46 = vld [vmem:[%s15223_s1 + $0xf38] sm:$0xff] }
 0x1eb   :  { %3807 = vmatpush2.bf16.msra.mxu0 %v9165_v45  ;;  %v9278_v49 = vcombine.high %v583_v42, %v587_v46  ;;  %v447_v51 = vld [vmem:[%s15223_s1 + $0xad8] sm:$0xff]  ;;  %v9277_v59 = vcombine.low %v583_v42, %v587_v46  ;;  %v3923_v45 = vmul.f32 %v3895_v30, %v3873_v28  ;;  %v3971_v46 = vadd.f32 %v3937_v63, %v3921_v35  ;;  %v10552_v28 = vld [vmem:[%s15227_s5 + $0x4] ss:$8 sps:$4 sm:$0xff]  }
 0x1ec   :  { %3808 = vmatprep.subr.bf16.mxu0 %v9158_v40  ;;  %v451_v52 = vld [vmem:[%s15223_s1 + $0xaf8] sm:$0xff]  ;;  %v10555_v30 = vld [vmem:[%s15227_s5 + $0x104] ss:$8 sps:$4 sm:$0xff]  }
 0x1ed   :  { %3848 = vmatpush2.bf16.msra.mxu1 %v9293_v38  ;;  %v575_v54 = vld [vmem:[%s15223_s1 + $0xed8] sm:$0xff]  ;;  %v9142_v60 = vcombine.high %v447_v51, %v451_v52  ;;  %v9141_v7 = vcombine.low %v447_v51, %v451_v52  ;;  %v3945_v38 = vrot.slane %v13178_v43, %v12769_v2  ;;  %v13204_v51 = vpack.c.bf16 %v3971_v46, %v3971_v46 }
 0x1ee   :  { %3849 = vmatprep.subr.bf16.mxu1 %v9286_v41  ;;  %v579_v4 = vld [vmem:[%s15223_s1 + $0xef8] sm:$0xff]  ;;  %v13185_v41 = vsub.s32 4, %v11560_v44 }
 0x1ef   :  { %3809 = vmatpush2.bf16.msra.mxu0 %v9157_v47  ;;  %v9270_v61 = vcombine.high %v575_v54, %v579_v4  ;;  %v439_v62 = vld [vmem:[%s15223_s1 + $0xa98] sm:$0xff]  ;;  %v9269_v8 = vcombine.low %v575_v54, %v579_v4  ;;  %v3973_v47 = vadd.f32 %v3945_v38, %v3923_v45  ;;  %v10564_v45 = vld [vmem:[%s15227_s5 + $0xe4] ss:$8 sps:$4 sm:$0xff]  }
 0x1f0   :  { %3810 = vmatprep.subr.bf16.mxu0 %v9150_v16  ;;  %v443_v22 = vld [vmem:[%s15223_s1 + $0xab8] sm:$0xff]  ;;  %v633_v2 = vrot.slane %v12777_v6, %v13185_v41  ;;  %v10519_v6 = vld [vmem:[%s15227_s5 + $0x164] ss:$8 sps:$4 sm:$0xff]  }
 0x1f1   :  { %3850 = vmatpush2.bf16.msra.mxu1 %v9285_v48  ;;  %v567_v25 = vld [vmem:[%s15223_s1 + $0xe98] sm:$0xff]  ;;  %v9134_v9 = vcombine.high %v439_v62, %v443_v22  ;;  %v9133_v15 = vcombine.low %v439_v62, %v443_v22  ;;  %v13210_v54 = vpack.c.bf16 %v3973_v47, %v3973_v47  ;;  %v10567_v38 = vld [vmem:[%s15227_s5 + $0x1e4] ss:$8 sps:$4 sm:$0xff]  }
 0x1f2   :  { %3851 = vmatprep.subr.bf16.mxu1 %v9278_v49  ;;  %v571_v1 = vld [vmem:[%s15223_s1 + $0xeb8] sm:$0xff]  ;;  %v10516_v49 = vld [vmem:[%s15227_s5 + $0x64] ss:$8 sps:$4 sm:$0xff]  }
 0x1f3   :  { %3811 = vmatpush2.bf16.msra.mxu0 %v9149_v56  ;;  %v9262_v10 = vcombine.high %v567_v25, %v571_v1  ;;  %v431_v12 = vld [vmem:[%s15223_s1 + $0xa58] sm:$0xff]  ;;  %v9261_v32 = vcombine.low %v567_v25, %v571_v1 }
 0x1f4   :  { %3812 = vmatprep.subr.bf16.mxu0 %v9142_v60  ;;  %v435_v13 = vld [vmem:[%s15223_s1 + $0xa78] sm:$0xff] }
 0x1f5   :  { %3852 = vmatpush2.bf16.msra.mxu1 %v9277_v59  ;;  %v559_v39 = vld [vmem:[%s15223_s1 + $0xe58] sm:$0xff]  ;;  %v9126_v18 = vcombine.high %v431_v12, %v435_v13  ;;  %v9125_v53 = vcombine.low %v431_v12, %v435_v13  ;;  %v10514_v59 = vld [vmem:[%s15227_s5 + $0x60] ss:$8 sps:$4 sm:$0xff]   ;;  %v10531_v12 = vld [vmem:[%s15227_s5 + $0x144] ss:$8 sps:$4 sm:$0xff]  }
 0x1f6   :  { %3853 = vmatprep.subr.bf16.mxu1 %v9270_v61  ;;  %v563_v17 = vld [vmem:[%s15223_s1 + $0xe78] sm:$0xff]  ;;  %v10526_v13 = vld [vmem:[%s15227_s5 + $0x40] ss:$8 sps:$4 sm:$0xff]  }
 0x1f7   :  { %3813 = vmatpush2.bf16.msra.mxu0 %v9141_v7  ;;  %v9254_v31 = vcombine.high %v559_v39, %v563_v17  ;;  %v423_v36 = vld [vmem:[%s15223_s1 + $0xa18] sm:$0xff]  ;;  %v9253_v50 = vcombine.low %v559_v39, %v563_v17  ;;  %v10529_v39 = vld [vmem:[%s15227_s5 + $0x140] ss:$8 sps:$4 sm:$0xff]  }
 0x1f8   :  { %3814 = vmatprep.subr.bf16.mxu0 %v9134_v9  ;;  %v427_v20 = vld [vmem:[%s15223_s1 + $0xa38] sm:$0xff]  ;;  %v10528_v9 = vld [vmem:[%s15227_s5 + $0x44] ss:$8 sps:$4 sm:$0xff]  }
 0x1f9   :  { %3854 = vmatpush2.bf16.msra.mxu1 %v9269_v8  ;;  %v551_v26 = vld [vmem:[%s15223_s1 + $0xe18] sm:$0xff]  ;;  %v9118_v33 = vcombine.high %v423_v36, %v427_v20  ;;  %v9117_v40 = vcombine.low %v423_v36, %v427_v20  ;;  %v10538_v36 = vld [vmem:[%s15227_s5 + $0x20] ss:$8 sps:$4 sm:$0xff]  }
 0x1fa   :  { %3855 = vmatprep.subr.bf16.mxu1 %v9262_v10  ;;  %v555_v27 = vld [vmem:[%s15223_s1 + $0xe38] sm:$0xff]  ;;  %v10541_v20 = vld [vmem:[%s15227_s5 + $0x120] ss:$8 sps:$4 sm:$0xff]  }
 0x1fb   :  { %3815 = vmatpush2.bf16.msra.mxu0 %v9133_v15  ;;  %v9246_v34 = vcombine.high %v551_v26, %v555_v27  ;;  %v9245_v0 = vcombine.low %v551_v26, %v555_v27  ;;  %v10510_v11 = vld [vmem:[%s15227_s5 + $0x74] ss:$8 sps:$4 sm:$0xff]   ;;  %v10508_v48 = vld [vmem:[%s15227_s5 + $0x70] ss:$8 sps:$4 sm:$0xff]  }
 0x1fc   :  { %3816 = vmatprep.subr.bf16.mxu0 %v9126_v18  ;;  %v10513_v42 = vld [vmem:[%s15227_s5 + $0x174] ss:$8 sps:$4 sm:$0xff]   ;;  %v10511_v16 = vld [vmem:[%s15227_s5 + $0x170] ss:$8 sps:$4 sm:$0xff]   ;;  %v10540_v18 = vld [vmem:[%s15227_s5 + $0x24] ss:$8 sps:$4 sm:$0xff]  }
 0x1fd   :  { %3856 = vmatpush2.bf16.msra.mxu1 %v9261_v32  ;;  %v10522_v61 = vld [vmem:[%s15227_s5 + $0x54] ss:$8 sps:$4 sm:$0xff]   ;;  %v10520_v3 = vld [vmem:[%s15227_s5 + $0x50] ss:$8 sps:$4 sm:$0xff]  }
 0x1fe   :  { %3857 = vmatprep.subr.bf16.mxu1 %v9254_v31  ;;  %v10525_v22 = vld [vmem:[%s15227_s5 + $0x154] ss:$8 sps:$4 sm:$0xff]   ;;  %v10523_v8 = vld [vmem:[%s15227_s5 + $0x150] ss:$8 sps:$4 sm:$0xff]   ;;  %v10543_v31 = vld [vmem:[%s15227_s5 + $0x124] ss:$8 sps:$4 sm:$0xff]  }
 0x1ff   :  { %3817 = vmatpush2.bf16.msra.mxu0 %v9125_v53  ;;  %v10534_v17 = vld [vmem:[%s15227_s5 + $0x34] ss:$8 sps:$4 sm:$0xff]   ;;  %v10532_v15 = vld [vmem:[%s15227_s5 + $0x30] ss:$8 sps:$4 sm:$0xff]   ;;  %v10550_v53 = vld [vmem:[%s15227_s5] ss:$8 sps:$4 sm:$0xff]  }
 0x200   :  { %3818 = vmatprep.subr.bf16.mxu0 %v9118_v33  ;;  %v10537_v14 = vld [vmem:[%s15227_s5 + $0x134] ss:$8 sps:$4 sm:$0xff]   ;;  %v10535_v32 = vld [vmem:[%s15227_s5 + $0x130] ss:$8 sps:$4 sm:$0xff]  }
 0x201   :  { %3858 = vmatpush2.bf16.msra.mxu1 %v9253_v50  ;;  %v10546_v23 = vld [vmem:[%s15227_s5 + $0x14] ss:$8 sps:$4 sm:$0xff]   ;;  %v10544_v26 = vld [vmem:[%s15227_s5 + $0x10] ss:$8 sps:$4 sm:$0xff]   ;;  %v10553_v50 = vld [vmem:[%s15227_s5 + $0x100] ss:$8 sps:$4 sm:$0xff]  }
 0x202   :  { %3859 = vmatprep.subr.bf16.mxu1 %v9246_v34  ;;  %v10549_v24 = vld [vmem:[%s15227_s5 + $0x114] ss:$8 sps:$4 sm:$0xff]   ;;  %v10547_v27 = vld [vmem:[%s15227_s5 + $0x110] ss:$8 sps:$4 sm:$0xff]  }
 0x203   :  { %3819 = vmatpush2.bf16.msra.mxu0 %v9117_v40  ;;  %v10558_v33 = vld [vmem:[%s15227_s5 + $0xf4] ss:$8 sps:$4 sm:$0xff]   ;;  %v10556_v35 = vld [vmem:[%s15227_s5 + $0xf0] ss:$8 sps:$4 sm:$0xff]   ;;  %v10562_v40 = vld [vmem:[%s15227_s5 + $0xe0] ss:$8 sps:$4 sm:$0xff]  }
 0x204   :  { %4754 = vmatprep.subr.bf16.mxu0 %v10510_v11  ;;  %v10561_v34 = vld [vmem:[%s15227_s5 + $0x1f4] ss:$8 sps:$4 sm:$0xff]   ;;  %v10559_v63 = vld [vmem:[%s15227_s5 + $0x1f0] ss:$8 sps:$4 sm:$0xff]  }
 0x205   :  { %3860 = vmatpush2.bf16.msra.mxu1 %v9245_v0  ;;  %v10565_v0 = vld [vmem:[%s15227_s5 + $0x1e0] ss:$8 sps:$4 sm:$0xff]   ;;  %v10570_v11 = vld [vmem:[%s15227_s5 + $0xd4] ss:$8 sps:$4 sm:$0xff]   ;;  %v10568_v46 = vld [vmem:[%s15227_s5 + $0xd0] ss:$8 sps:$4 sm:$0xff]  }
 0x206   :  { %4795 = vmatprep.subr.bf16.mxu1 %v10513_v42  ;;  %v3576_v52 = vpop.f32.mrf.mxu0  ;;  %3821 = vmatmul.mubr.bf16.vlgmr.msra.gmra.mxu0 %v11957_v57  ;;  %v10517_v57 = vld [vmem:[%s15227_s5 + $0x160] ss:$8 sps:$4 sm:$0xff]   ;;  %v10573_v42 = vld [vmem:[%s15227_s5 + $0x1d4] ss:$8 sps:$4 sm:$0xff]   ;;  %v10571_v47 = vld [vmem:[%s15227_s5 + $0x1d0] ss:$8 sps:$4 sm:$0xff]  }
 0x207   :  { %v3577_v4 = vadd.f32 %v3576_v52, %v633_v2  ;;  %4755 = vmatpush1.bf16.msra.mxu0 %v10508_v48  ;;  %4786 = vmatprep.mubr.bf16.mxu0 %v13204_v51  ;;  %v10576_v2 = vld [vmem:[%s15227_s5 + $0xc4] ss:$8 sps:$4 sm:$0xff]   ;;  %v10582_v52 = vld [vmem:[%s15227_s5 + $0xb4] ss:$8 sps:$4 sm:$0xff]  }
 0x208   :  { %v3617_v56 = vpop.f32.mrf.mxu1  ;;  %3862 = vmatmul.mubr.bf16.vlgmr.msra.gmra.mxu1 %v11961_v58  ;;  %v13217_v60 = vpop.f32.mrf.mxu0  ;;  %4756 = vmatprep.subr.bf16.mxu0 %v10516_v49  ;;  %v10579_v48 = vld [vmem:[%s15227_s5 + $0x1c4] ss:$8 sps:$4 sm:$0xff]   ;;  %v10577_v49 = vld [vmem:[%s15227_s5 + $0x1c0] ss:$8 sps:$4 sm:$0xff]  }
 0x209   :  { %4796 = vmatpush1.bf16.msra.mxu1 %v10511_v16  ;;  %v13225_v62 = vadd.f32 %v3617_v56, %v3577_v4  ;;  %4827 = vmatprep.mubr.bf16.mxu1 %v13210_v54  ;;  %v10574_v16 = vld [vmem:[%s15227_s5 + $0xc0] ss:$8 sps:$4 sm:$0xff]   ;;  %v10580_v4 = vld [vmem:[%s15227_s5 + $0xb0] ss:$8 sps:$4 sm:$0xff]  }
 0x20a   :  { %v13228_v58 = vpop.f32.mrf.mxu1  ;;  %v3580_v25 = vpop.f32.mrf.mxu0  ;;  %4797 = vmatprep.subr.bf16.mxu1 %v10519_v6  ;;  %v10585_v6 = vld [vmem:[%s15227_s5 + $0x1b4] ss:$8 sps:$4 sm:$0xff]   ;;  %v10583_v56 = vld [vmem:[%s15227_s5 + $0x1b0] ss:$8 sps:$4 sm:$0xff]  }
 0x20b   :  { %4757 = vmatpush1.bf16.msra.mxu0 %v10514_v59  ;;  %v10588_v59 = vld [vmem:[%s15227_s5 + $0xa4] ss:$8 sps:$4 sm:$0xff]   ;;  %v3883_v25 = vrot.slane %v13156_v21, %v12347_v29 }
 0x20c   :  { %v3621_v1 = vpop.f32.mrf.mxu1  ;;  %v3581_v7 = vpop.f32.mrf.mxu0  ;;  %4758 = vmatprep.subr.bf16.mxu0 %v10522_v61  ;;  %v10586_v61 = vld [vmem:[%s15227_s5 + $0xa0] ss:$8 sps:$4 sm:$0xff]  }
 0x20d   :  { %4798 = vmatpush1.bf16.msra.mxu1 %v10517_v57  ;;  %v10591_v57 = vld [vmem:[%s15227_s5 + $0x1a4] ss:$8 sps:$4 sm:$0xff]   ;;  %v10589_v1 = vld [vmem:[%s15227_s5 + $0x1a0] ss:$8 sps:$4 sm:$0xff]   ;;  %v3872_v7 = vmax.f32 %v13000_v19, 0.0  ;;  %v3933_v19 = vrot.slane %v13178_v43, %v12347_v29 }
 0x20e   :  { %v3622_v10 = vpop.f32.mrf.mxu1  ;;  %4799 = vmatprep.subr.bf16.mxu1 %v10525_v22  ;;  %v3870_v22 = vmax.f32 %v12590_v5, 0.0  ;;  %v10597_v5 = vld [vmem:[%s15227_s5 + $0x194] ss:$8 sps:$4 sm:$0xff]  }
 0x20f   :  { %4759 = vmatpush1.bf16.msra.mxu0 %v10520_v3  ;;  %v10594_v3 = vld [vmem:[%s15227_s5 + $0x94] ss:$8 sps:$4 sm:$0xff]   ;;  %v10592_v10 = vld [vmem:[%s15227_s5 + $0x90] ss:$8 sps:$4 sm:$0xff]  }
 0x210   :  { %4760 = vmatprep.subr.bf16.mxu0 %v10528_v9  ;;  %v13384_v9 = vsub.s32 5, %v11560_v44 }
 0x211   :  { %4800 = vmatpush1.bf16.msra.mxu1 %v10523_v8  ;;  %v3891_v8 = vrot.slane %v13156_v21, %v12754_v55 }
 0x212   :  { %4801 = vmatprep.subr.bf16.mxu1 %v10531_v12  ;;  %v3920_v12 = vmul.f32 %v3883_v25, %v3870_v22  ;;  %v10618_v22 = vld [vmem:[%s15227_s5 + $0x234] ss:$8 sps:$4 sm:$0xff]   ;;  %v10682_v25 = vld [vmem:[%s15227_s5 + $0x340] ss:$8 sps:$4 sm:$0xff]  }
 0x213   :  { %4761 = vmatpush1.bf16.msra.mxu0 %v10526_v13  ;;  %v10595_v13 = vld [vmem:[%s15227_s5 + $0x190] ss:$8 sps:$4 sm:$0xff]  }
 0x214   :  { %4762 = vmatprep.subr.bf16.mxu0 %v10534_v17  ;;  %v3922_v17 = vmul.f32 %v3891_v8, %v3872_v7  ;;  %v10616_v8 = vld [vmem:[%s15227_s5 + $0x230] ss:$8 sps:$4 sm:$0xff]  }
 0x215   :  { %4802 = vmatpush1.bf16.msra.mxu1 %v10529_v39  ;;  %v10600_v39 = vld [vmem:[%s15227_s5 + $0x84] ss:$8 sps:$4 sm:$0xff]  }
 0x216   :  { %4803 = vmatprep.subr.bf16.mxu1 %v10537_v14  ;;  %v3941_v14 = vrot.slane %v13178_v43, %v12754_v55  ;;  %v10601_v55 = vld [vmem:[%s15227_s5 + $0x180] ss:$8 sps:$4 sm:$0xff]  }
 0x217   :  { %4763 = vmatpush1.bf16.msra.mxu0 %v10532_v15  ;;  %v10603_v15 = vld [vmem:[%s15227_s5 + $0x184] ss:$8 sps:$4 sm:$0xff]  }
 0x218   :  { %4764 = vmatprep.subr.bf16.mxu0 %v10540_v18 }
 0x219   :  { %4804 = vmatpush1.bf16.msra.mxu1 %v10535_v32  ;;  %v13405_v32 = vld [vmem:[%s15224_s2] sm:$0xff] }
 0x21a   :  { %4805 = vmatprep.subr.bf16.mxu1 %v10543_v31  ;;  %v637_v18 = vrot.slane %v13405_v32, %v13384_v9  ;;  %v10598_v31 = vld [vmem:[%s15227_s5 + $0x80] ss:$8 sps:$4 sm:$0xff]  }
 0x21b   :  { %4765 = vmatpush1.bf16.msra.mxu0 %v10538_v36  ;;  %v3970_v36 = vadd.f32 %v3933_v19, %v3920_v12  ;;  %v10619_v12 = vld [vmem:[%s15227_s5 + $0x220] ss:$8 sps:$4 sm:$0xff]   ;;  %v10624_v19 = vld [vmem:[%s15227_s5 + $0x214] ss:$8 sps:$4 sm:$0xff]  }
 0x21c   :  { %4766 = vmatprep.subr.bf16.mxu0 %v10546_v23  ;;  %v3972_v23 = vadd.f32 %v3941_v14, %v3922_v17  ;;  %v10622_v17 = vld [vmem:[%s15227_s5 + $0x210] ss:$8 sps:$4 sm:$0xff]   ;;  %v10627_v14 = vld [vmem:[%s15227_s5 + $0x204] ss:$8 sps:$4 sm:$0xff]  }
 0x21d   :  { %4806 = vmatpush1.bf16.msra.mxu1 %v10541_v20  ;;  %v10606_v20 = vld [vmem:[%s15227_s5 + $0x274] ss:$8 sps:$4 sm:$0xff]  }
 0x21e   :  { %4807 = vmatprep.subr.bf16.mxu1 %v10549_v24  ;;  %v10666_v24 = vld [vmem:[%s15227_s5 + $0x374] ss:$8 sps:$4 sm:$0xff]  }
 0x21f   :  { %4767 = vmatpush1.bf16.msra.mxu0 %v10544_v26  ;;  %v3579_v26 = vadd.f32 %v13217_v60, %v637_v18  ;;  %v10672_v60 = vld [vmem:[%s15227_s5 + $0x364] ss:$8 sps:$4 sm:$0xff]  }
 0x220   :  { %4768 = vmatprep.subr.bf16.mxu0 %v10552_v28  ;;  %v13425_v28 = vpack.c.bf16 %v3970_v36, %v3970_v36  ;;  %v10708_v18 = vld [vmem:[%s15227_s5 + $0x304] ss:$8 sps:$4 sm:$0xff]   ;;  %v10630_v36 = vld [vmem:[%s15227_s5 + $0x2f4] ss:$8 sps:$4 sm:$0xff]  }
 0x221   :  { %4808 = vmatpush1.bf16.msra.mxu1 %v10547_v27  ;;  %v10604_v27 = vld [vmem:[%s15227_s5 + $0x270] ss:$8 sps:$4 sm:$0xff]  }
 0x222   :  { %4809 = vmatprep.subr.bf16.mxu1 %v10555_v30  ;;  %v10609_v30 = vld [vmem:[%s15227_s5 + $0x264] ss:$8 sps:$4 sm:$0xff]  }
 0x223   :  { %4769 = vmatpush1.bf16.msra.mxu0 %v10550_v53  ;;  %v10664_v53 = vld [vmem:[%s15227_s5 + $0x370] ss:$8 sps:$4 sm:$0xff]  }
 0x224   :  { %4770 = vmatprep.subr.bf16.mxu0 %v10558_v33 }
 0x225   :  { %4810 = vmatpush1.bf16.msra.mxu1 %v10553_v50  ;;  %v13433_v50 = vpack.c.bf16 %v3972_v23, %v3972_v23  ;;  %v10628_v23 = vld [vmem:[%s15227_s5 + $0x2f0] ss:$8 sps:$4 sm:$0xff]  }
 0x226   :  { %4811 = vmatprep.subr.bf16.mxu1 %v10561_v34  ;;  %v3620_v34 = vadd.f32 %v13228_v58, %v3579_v26  ;;  %v10670_v58 = vld [vmem:[%s15227_s5 + $0x360] ss:$8 sps:$4 sm:$0xff]   ;;  %v10712_v26 = vld [vmem:[%s15227_s5 + $0x3f0] ss:$8 sps:$4 sm:$0xff]  }
 0x227   :  { %4771 = vmatpush2.bf16.msra.mxu0 %v10556_v35 }
 0x228   :  { %4772 = vmatprep.subr.bf16.mxu0 %v10564_v45 }
 0x229   :  { %4812 = vmatpush2.bf16.msra.mxu1 %v10559_v63  ;;  %v10607_v63 = vld [vmem:[%s15227_s5 + $0x260] ss:$8 sps:$4 sm:$0xff]  }
 0x22a   :  { %4813 = vmatprep.subr.bf16.mxu1 %v10567_v38  ;;  %v10612_v38 = vld [vmem:[%s15227_s5 + $0x254] ss:$8 sps:$4 sm:$0xff]  }
 0x22b   :  { %4773 = vmatpush2.bf16.msra.mxu0 %v10562_v40 }
 0x22c   :  { %4774 = vmatprep.subr.bf16.mxu0 %v10570_v11  ;;  %v10678_v11 = vld [vmem:[%s15227_s5 + $0x354] ss:$8 sps:$4 sm:$0xff]  }
 0x22d   :  { %4814 = vmatpush2.bf16.msra.mxu1 %v10565_v0 }
 0x22e   :  { %4815 = vmatprep.subr.bf16.mxu1 %v10573_v42 }
 0x22f   :  { %4775 = vmatpush2.bf16.msra.mxu0 %v10568_v46 }
 0x230   :  { %4776 = vmatprep.subr.bf16.mxu0 %v10576_v2 }
 0x231   :  { %4816 = vmatpush2.bf16.msra.mxu1 %v10571_v47  ;;  %v3903_v47 = vrot.slane %v13156_v21, %v13384_v9 }
 0x232   :  { %4817 = vmatprep.subr.bf16.mxu1 %v10579_v48  ;;  %v10610_v48 = vld [vmem:[%s15227_s5 + $0x250] ss:$8 sps:$4 sm:$0xff]  }
 0x233   :  { %4777 = vmatpush2.bf16.msra.mxu0 %v10574_v16 }
 0x234   :  { %4778 = vmatprep.subr.bf16.mxu0 %v10582_v52  ;;  %v10676_v52 = vld [vmem:[%s15227_s5 + $0x350] ss:$8 sps:$4 sm:$0xff]  }
 0x235   :  { %4818 = vmatpush2.bf16.msra.mxu1 %v10577_v49  ;;  %v10615_v49 = vld [vmem:[%s15227_s5 + $0x244] ss:$8 sps:$4 sm:$0xff]  }
 0x236   :  { %4819 = vmatprep.subr.bf16.mxu1 %v10585_v6 }
 0x237   :  { %4779 = vmatpush2.bf16.msra.mxu0 %v10580_v4  ;;  %v3953_v4 = vrot.slane %v13178_v43, %v13384_v9  ;;  %v10688_v9 = vld [vmem:[%s15227_s5 + $0x330] ss:$8 sps:$4 sm:$0xff]  }
 0x238   :  { %4780 = vmatprep.subr.bf16.mxu0 %v10588_v59  ;;  %v10684_v59 = vld [vmem:[%s15227_s5 + $0x344] ss:$8 sps:$4 sm:$0xff]  }
 0x239   :  { %4820 = vmatpush2.bf16.msra.mxu1 %v10583_v56 }
 0x23a   :  { %4821 = vmatprep.subr.bf16.mxu1 %v10591_v57 }
 0x23b   :  { %4781 = vmatpush2.bf16.msra.mxu0 %v10586_v61  ;;  %v10613_v61 = vld [vmem:[%s15227_s5 + $0x240] ss:$8 sps:$4 sm:$0xff]  }
 0x23c   :  { %4782 = vmatprep.subr.bf16.mxu0 %v10594_v3  ;;  %v10690_v3 = vld [vmem:[%s15227_s5 + $0x334] ss:$8 sps:$4 sm:$0xff]  }
 0x23d   :  { %4822 = vmatpush2.bf16.msra.mxu1 %v10589_v1 }
 0x23e   :  { %4823 = vmatprep.subr.bf16.mxu1 %v10597_v5  ;;  %v10621_v5 = vld [vmem:[%s15227_s5 + $0x224] ss:$8 sps:$4 sm:$0xff]  }
 0x23f   :  { %4783 = vmatpush2.bf16.msra.mxu0 %v10592_v10  ;;  %v10696_v10 = vld [vmem:[%s15227_s5 + $0x324] ss:$8 sps:$4 sm:$0xff]  }
 0x240   :  { %4784 = vmatprep.subr.bf16.mxu0 %v10600_v39  ;;  %v10702_v39 = vld [vmem:[%s15227_s5 + $0x314] ss:$8 sps:$4 sm:$0xff]  }
 0x241   :  { %4824 = vmatpush2.bf16.msra.mxu1 %v10595_v13  ;;  %v10694_v13 = vld [vmem:[%s15227_s5 + $0x320] ss:$8 sps:$4 sm:$0xff]  }
 0x242   :  { %4825 = vmatprep.subr.bf16.mxu1 %v10603_v15  ;;  %v10700_v15 = vld [vmem:[%s15227_s5 + $0x310] ss:$8 sps:$4 sm:$0xff]  }
 0x243   :  { %4785 = vmatpush2.bf16.msra.mxu0 %v10598_v31  ;;  %v10625_v31 = vld [vmem:[%s15227_s5 + $0x200] ss:$8 sps:$4 sm:$0xff]  }
 0x244   :  { %4836 = vmatprep.subr.bf16.mxu0 %v10606_v20  ;;  %v10714_v20 = vld [vmem:[%s15227_s5 + $0x3f4] ss:$8 sps:$4 sm:$0xff]  }
 0x245   :  { %4826 = vmatpush2.bf16.msra.mxu1 %v10601_v55  ;;  %v10706_v55 = vld [vmem:[%s15227_s5 + $0x300] ss:$8 sps:$4 sm:$0xff]  }
 0x246   :  { %4877 = vmatprep.subr.bf16.mxu1 %v10666_v24  ;;  %v13438_v33 = vpop.f32.mrf.mxu0  ;;  %4787 = vmatmul.mubr.bf16.vlgmr.msra.gmra.mxu0 %v13425_v28  ;;  %v10633_v24 = vld [vmem:[%s15227_s5 + $0x2e4] ss:$8 sps:$4 sm:$0xff]  }
 0x247   :  { %4837 = vmatpush1.bf16.msra.mxu0 %v10604_v27  ;;  %v10720_v27 = vld [vmem:[%s15227_s5 + $0x3e4] ss:$8 sps:$4 sm:$0xff]  }
 0x248   :  { %v13442_v35 = vpop.f32.mrf.mxu1  ;;  %4828 = vmatmul.mubr.bf16.vlgmr.msra.gmra.mxu1 %v13433_v50  ;;  %v3660_v45 = vpop.f32.mrf.mxu0  ;;  %4838 = vmatprep.subr.bf16.mxu0 %v10609_v30  ;;  %v10631_v30 = vld [vmem:[%s15227_s5 + $0x2e0] ss:$8 sps:$4 sm:$0xff]  }
 0x249   :  { %4878 = vmatpush1.bf16.msra.mxu1 %v10664_v53  ;;  %v3661_v40 = vadd.f32 %v3660_v45, %v3620_v34  ;;  %v10636_v53 = vld [vmem:[%s15227_s5 + $0x2d4] ss:$8 sps:$4 sm:$0xff]   ;;  %v10639_v45 = vld [vmem:[%s15227_s5 + $0x2c4] ss:$8 sps:$4 sm:$0xff]  }
 0x24a   :  { %v3701_v0 = vpop.f32.mrf.mxu1  ;;  %4879 = vmatprep.subr.bf16.mxu1 %v10672_v60  ;;  %v3662_v42 = vpop.f32.mrf.mxu0  ;;  %v10718_v60 = vld [vmem:[%s15227_s5 + $0x3e0] ss:$8 sps:$4 sm:$0xff]   ;;  %v10726_v34 = vld [vmem:[%s15227_s5 + $0x3d4] ss:$8 sps:$4 sm:$0xff]  }
 0x24b   :  { %v3702_v46 = vadd.f32 %v3701_v0, %v3661_v40  ;;  %4839 = vmatpush1.bf16.msra.mxu0 %v10607_v63  ;;  %v10634_v63 = vld [vmem:[%s15227_s5 + $0x2d0] ss:$8 sps:$4 sm:$0xff]   ;;  %v10637_v40 = vld [vmem:[%s15227_s5 + $0x2c0] ss:$8 sps:$4 sm:$0xff]   ;;  %v3659_v0 = vadd.f32 %v13438_v33, %v13225_v62 }
 0x24c   :  { %v3703_v2 = vpop.f32.mrf.mxu1  ;;  %v3663_v16 = vpop.f32.mrf.mxu0  ;;  %4840 = vmatprep.subr.bf16.mxu0 %v10612_v38  ;;  %v10724_v38 = vld [vmem:[%s15227_s5 + $0x3d0] ss:$8 sps:$4 sm:$0xff]   ;;  %v10730_v42 = vld [vmem:[%s15227_s5 + $0x3c0] ss:$8 sps:$4 sm:$0xff]  }
 0x24d   :  { %4880 = vmatpush1.bf16.msra.mxu1 %v10670_v58  ;;  %v3875_v6 = vmax.f32 %v3702_v46, 0.0  ;;  %v10732_v58 = vld [vmem:[%s15227_s5 + $0x3c4] ss:$8 sps:$4 sm:$0xff]   ;;  %v10738_v46 = vld [vmem:[%s15227_s5 + $0x3b4] ss:$8 sps:$4 sm:$0xff]   ;;  %v3700_v33 = vadd.f32 %v13442_v35, %v3659_v0 }
 0x24e   :  { %v3704_v56 = vpop.f32.mrf.mxu1  ;;  %4881 = vmatprep.subr.bf16.mxu1 %v10678_v11  ;;  %v10642_v11 = vld [vmem:[%s15227_s5 + $0x2b4] ss:$8 sps:$4 sm:$0xff]   ;;  %v10640_v62 = vld [vmem:[%s15227_s5 + $0x2b0] ss:$8 sps:$4 sm:$0xff]   ;;  %v10643_v35 = vld [vmem:[%s15227_s5 + $0x2a0] ss:$8 sps:$4 sm:$0xff]  }
 0x24f   :  { %v3925_v57 = vmul.f32 %v3903_v47, %v3875_v6  ;;  %4841 = vmatpush1.bf16.msra.mxu0 %v10610_v48  ;;  %v10645_v47 = vld [vmem:[%s15227_s5 + $0x2a4] ss:$8 sps:$4 sm:$0xff]   ;;  %v10736_v2 = vld [vmem:[%s15227_s5 + $0x3b0] ss:$8 sps:$4 sm:$0xff]   ;;  %v3874_v16 = vmax.f32 %v3700_v33, 0.0 }
 0x250   :  { %4842 = vmatprep.subr.bf16.mxu0 %v10615_v49  ;;  %v10744_v48 = vld [vmem:[%s15227_s5 + $0x3a4] ss:$8 sps:$4 sm:$0xff]   ;;  %v3899_v49 = vrot.slane %v13156_v21, %v13185_v41  ;;  %v10742_v6 = vld [vmem:[%s15227_s5 + $0x3a0] ss:$8 sps:$4 sm:$0xff]   ;;  %v10646_v56 = vld [vmem:[%s15227_s5 + $0x290] ss:$8 sps:$4 sm:$0xff]  }
 0x251   :  { %4882 = vmatpush1.bf16.msra.mxu1 %v10676_v52  ;;  %v3975_v1 = vadd.f32 %v3953_v4, %v3925_v57  ;;  %v10648_v52 = vld [vmem:[%s15227_s5 + $0x294] ss:$8 sps:$4 sm:$0xff]   ;;  %v3949_v57 = vrot.slane %v13178_v43, %v13185_v41  ;;  %v10649_v41 = vld [vmem:[%s15227_s5 + $0x280] ss:$8 sps:$4 sm:$0xff]  }
 0x252   :  { %4883 = vmatprep.subr.bf16.mxu1 %v10684_v59  ;;  %v10750_v4 = vld [vmem:[%s15227_s5 + $0x394] ss:$8 sps:$4 sm:$0xff]   ;;  %v3924_v59 = vmul.f32 %v3899_v49, %v3874_v16  ;;  %v10697_v0 = vld [vmem:[%s15227_s5 + $0x4e0] ss:$8 sps:$4 sm:$0xff]   ;;  %v640_v16 = vsub.s32 6, %v11560_v44  ;;  %v644_v49 = vsub.s32 7, %v11560_v44 }
 0x253   :  { %v13485_v7 = vpack.c.bf16 %v3975_v1, %v3975_v1  ;;  %4843 = vmatpush1.bf16.msra.mxu0 %v10613_v61  ;;  %v10651_v61 = vld [vmem:[%s15227_s5 + $0x284] ss:$8 sps:$4 sm:$0xff]   ;;  %v10717_v33 = vld [vmem:[%s15227_s5 + $0x4b4] ss:$8 sps:$4 sm:$0xff]  }
 0x254   :  { %4844 = vmatprep.subr.bf16.mxu0 %v10618_v22  ;;  %v10748_v22 = vld [vmem:[%s15227_s5 + $0x390] ss:$8 sps:$4 sm:$0xff]   ;;  %v3974_v1 = vadd.f32 %v3949_v57, %v3924_v59  ;;  %v10733_v59 = vld [vmem:[%s15227_s5 + $0x480] ss:$8 sps:$4 sm:$0xff]   ;;  %v10741_v44 = vld [vmem:[%s15227_s5 + $0x674] ss:$8 sps:$4 sm:$0xff]  }
 0x255   :  { %4884 = vmatpush1.bf16.msra.mxu1 %v10682_v25  ;;  %4868 = vmatprep.mubr.bf16.mxu0 %v13485_v7  ;;  %v10756_v25 = vld [vmem:[%s15227_s5 + $0x384] ss:$8 sps:$4 sm:$0xff]  }
 0x256   :  { %4885 = vmatprep.subr.bf16.mxu1 %v10690_v3  ;;  %v10654_v3 = vld [vmem:[%s15227_s5 + $0x474] ss:$8 sps:$4 sm:$0xff]  }
 0x257   :  { %4845 = vmatpush1.bf16.msra.mxu0 %v10616_v8  ;;  %v10754_v8 = vld [vmem:[%s15227_s5 + $0x380] ss:$8 sps:$4 sm:$0xff]  }
 0x258   :  { %4846 = vmatprep.subr.bf16.mxu0 %v10621_v5  ;;  %v10762_v5 = vld [vmem:[%s15227_s5 + $0x574] ss:$8 sps:$4 sm:$0xff]  }
 0x259   :  { %4886 = vmatpush1.bf16.msra.mxu1 %v10688_v9  ;;  %v10652_v9 = vld [vmem:[%s15227_s5 + $0x470] ss:$8 sps:$4 sm:$0xff]  }
 0x25a   :  { %4887 = vmatprep.subr.bf16.mxu1 %v10696_v10  ;;  %v13642_v10 = vpack.c.bf16 %v3974_v1, %v3974_v1 }
 0x25b   :  { %4847 = vmatpush1.bf16.msra.mxu0 %v10619_v12  ;;  %v10657_v12 = vld [vmem:[%s15227_s5 + $0x464] ss:$8 sps:$4 sm:$0xff]  }
 0x25c   :  { %4848 = vmatprep.subr.bf16.mxu0 %v10624_v19 }
 0x25d   :  { %4888 = vmatpush1.bf16.msra.mxu1 %v10694_v13 }
 0x25e   :  { %4889 = vmatprep.subr.bf16.mxu1 %v10702_v39  ;;  %v10655_v39 = vld [vmem:[%s15227_s5 + $0x460] ss:$8 sps:$4 sm:$0xff]  }
 0x25f   :  { %4849 = vmatpush1.bf16.msra.mxu0 %v10622_v17 }
 0x260   :  { %4850 = vmatprep.subr.bf16.mxu0 %v10627_v14  ;;  %v10660_v14 = vld [vmem:[%s15227_s5 + $0x454] ss:$8 sps:$4 sm:$0xff]  }
 0x261   :  { %4890 = vmatpush1.bf16.msra.mxu1 %v10700_v15 }
 0x262   :  { %4891 = vmatprep.subr.bf16.mxu1 %v10708_v18 }
 0x263   :  { %4851 = vmatpush1.bf16.msra.mxu0 %v10625_v31 }
 0x264   :  { %4852 = vmatprep.subr.bf16.mxu0 %v10630_v36  ;;  %v10658_v36 = vld [vmem:[%s15227_s5 + $0x450] ss:$8 sps:$4 sm:$0xff]  }
 0x265   :  { %4892 = vmatpush1.bf16.msra.mxu1 %v10706_v55 }
 0x266   :  { %4893 = vmatprep.subr.bf16.mxu1 %v10714_v20  ;;  %v10663_v20 = vld [vmem:[%s15227_s5 + $0x444] ss:$8 sps:$4 sm:$0xff]  }
 0x267   :  { %4853 = vmatpush2.bf16.msra.mxu0 %v10628_v23 }
 0x268   :  { %4854 = vmatprep.subr.bf16.mxu0 %v10633_v24  ;;  %v10661_v24 = vld [vmem:[%s15227_s5 + $0x440] ss:$8 sps:$4 sm:$0xff]  }
 0x269   :  { %4894 = vmatpush2.bf16.msra.mxu1 %v10712_v26  ;;  %v10669_v26 = vld [vmem:[%s15227_s5 + $0x434] ss:$8 sps:$4 sm:$0xff]  }
 0x26a   :  { %4895 = vmatprep.subr.bf16.mxu1 %v10720_v27  ;;  %v10667_v27 = vld [vmem:[%s15227_s5 + $0x430] ss:$8 sps:$4 sm:$0xff]  }
 0x26b   :  { %4855 = vmatpush2.bf16.msra.mxu0 %v10631_v30  ;;  %v10675_v30 = vld [vmem:[%s15227_s5 + $0x424] ss:$8 sps:$4 sm:$0xff]  }
 0x26c   :  { %4856 = vmatprep.subr.bf16.mxu0 %v10636_v53  ;;  %v10673_v53 = vld [vmem:[%s15227_s5 + $0x420] ss:$8 sps:$4 sm:$0xff]  }
 0x26d   :  { %4896 = vmatpush2.bf16.msra.mxu1 %v10718_v60  ;;  %v10681_v60 = vld [vmem:[%s15227_s5 + $0x414] ss:$8 sps:$4 sm:$0xff]  }
 0x26e   :  { %4897 = vmatprep.subr.bf16.mxu1 %v10726_v34  ;;  %v10679_v34 = vld [vmem:[%s15227_s5 + $0x410] ss:$8 sps:$4 sm:$0xff]  }
 0x26f   :  { %4857 = vmatpush2.bf16.msra.mxu0 %v10634_v63  ;;  %v10687_v63 = vld [vmem:[%s15227_s5 + $0x404] ss:$8 sps:$4 sm:$0xff]  }
 0x270   :  { %4858 = vmatprep.subr.bf16.mxu0 %v10639_v45  ;;  %v10685_v45 = vld [vmem:[%s15227_s5 + $0x400] ss:$8 sps:$4 sm:$0xff]  }
 0x271   :  { %4898 = vmatpush2.bf16.msra.mxu1 %v10724_v38  ;;  %v10693_v38 = vld [vmem:[%s15227_s5 + $0x4f4] ss:$8 sps:$4 sm:$0xff]  }
 0x272   :  { %4899 = vmatprep.subr.bf16.mxu1 %v10732_v58  ;;  %v10691_v58 = vld [vmem:[%s15227_s5 + $0x4f0] ss:$8 sps:$4 sm:$0xff]  }
 0x273   :  { %4859 = vmatpush2.bf16.msra.mxu0 %v10637_v40  ;;  %v10699_v40 = vld [vmem:[%s15227_s5 + $0x4e4] ss:$8 sps:$4 sm:$0xff]  }
 0x274   :  { %4860 = vmatprep.subr.bf16.mxu0 %v10642_v11  ;;  %v10705_v11 = vld [vmem:[%s15227_s5 + $0x4d4] ss:$8 sps:$4 sm:$0xff]  }
 0x275   :  { %4900 = vmatpush2.bf16.msra.mxu1 %v10730_v42  ;;  %v10703_v42 = vld [vmem:[%s15227_s5 + $0x4d0] ss:$8 sps:$4 sm:$0xff]  }
 0x276   :  { %4901 = vmatprep.subr.bf16.mxu1 %v10738_v46  ;;  %v10711_v46 = vld [vmem:[%s15227_s5 + $0x4c4] ss:$8 sps:$4 sm:$0xff]  }
 0x277   :  { %4861 = vmatpush2.bf16.msra.mxu0 %v10640_v62  ;;  %v10709_v62 = vld [vmem:[%s15227_s5 + $0x4c0] ss:$8 sps:$4 sm:$0xff]  }
 0x278   :  { %4862 = vmatprep.subr.bf16.mxu0 %v10645_v47  ;;  %v10715_v47 = vld [vmem:[%s15227_s5 + $0x4b0] ss:$8 sps:$4 sm:$0xff]  }
 0x279   :  { %4902 = vmatpush2.bf16.msra.mxu1 %v10736_v2  ;;  %v10723_v2 = vld [vmem:[%s15227_s5 + $0x4a4] ss:$8 sps:$4 sm:$0xff]  }
 0x27a   :  { %4903 = vmatprep.subr.bf16.mxu1 %v10744_v48  ;;  %v10721_v48 = vld [vmem:[%s15227_s5 + $0x4a0] ss:$8 sps:$4 sm:$0xff]  }
 0x27b   :  { %4863 = vmatpush2.bf16.msra.mxu0 %v10643_v35  ;;  %v10729_v35 = vld [vmem:[%s15227_s5 + $0x494] ss:$8 sps:$4 sm:$0xff]  }
 0x27c   :  { %4864 = vmatprep.subr.bf16.mxu0 %v10648_v52  ;;  %v10727_v52 = vld [vmem:[%s15227_s5 + $0x490] ss:$8 sps:$4 sm:$0xff]  }
 0x27d   :  { %4904 = vmatpush2.bf16.msra.mxu1 %v10742_v6  ;;  %v10735_v6 = vld [vmem:[%s15227_s5 + $0x484] ss:$8 sps:$4 sm:$0xff]  }
 0x27e   :  { %4905 = vmatprep.subr.bf16.mxu1 %v10750_v4  ;;  %v641_v4 = vrot.slane %v13405_v32, %v640_v16 }
 0x27f   :  { %4865 = vmatpush2.bf16.msra.mxu0 %v10646_v56  ;;  %v645_v56 = vrot.slane %v13405_v32, %v644_v49  ;;  %v10747_v32 = vld [vmem:[%s15227_s5 + $0x664] ss:$8 sps:$4 sm:$0xff]  }
 0x280   :  { %4866 = vmatprep.subr.bf16.mxu0 %v10651_v61 }
 0x281   :  { %4906 = vmatpush2.bf16.msra.mxu1 %v10748_v22  ;;  %v10739_v22 = vld [vmem:[%s15227_s5 + $0x670] ss:$8 sps:$4 sm:$0xff]  }
 0x282   :  { %4907 = vmatprep.subr.bf16.mxu1 %v10756_v25 }
 0x283   :  { %4867 = vmatpush2.bf16.msra.mxu0 %v10649_v41 }
 0x284   :  { %5687 = vmatprep.subr.bf16.mxu0 %v10654_v3 }
 0x285   :  { %4908 = vmatpush2.bf16.msra.mxu1 %v10754_v8 }
 0x286   :  { %5728 = vmatprep.subr.bf16.mxu1 %v10762_v5  ;;  %v13647_v19 = vpop.f32.mrf.mxu0  ;;  %4869 = vmatmul.mubr.bf16.vlgmr.msra.gmra.mxu0 %v13642_v10  ;;  %v10745_v5 = vld [vmem:[%s15227_s5 + $0x660] ss:$8 sps:$4 sm:$0xff]  }
 0x287   :  { %5688 = vmatpush1.bf16.msra.mxu0 %v10652_v9  ;;  %5719 = vmatprep.mubr.bf16.mxu0 %v13204_v51  ;;  %v3741_v57 = vadd.f32 %v13647_v19, %v641_v4  ;;  %v10784_v4 = vld [vmem:[%s15227_s5 + $0x530] ss:$8 sps:$4 sm:$0xff]  }
 0x288   :  { %v13650_v13 = vpop.f32.mrf.mxu1  ;;  %v13656_v17 = vpop.f32.mrf.mxu0  ;;  %5689 = vmatprep.subr.bf16.mxu0 %v10657_v12  ;;  %v10753_v12 = vld [vmem:[%s15227_s5 + $0x654] ss:$8 sps:$4 sm:$0xff]  }
 0x289   :  { %v3743_v61 = vadd.f32 %v13656_v17, %v645_v56  ;;  %v3782_v25 = vadd.f32 %v13650_v13, %v3741_v57  ;;  %v3907_v13 = vrot.slane %v13156_v21, %v640_v16  ;;  %v10787_v56 = vld [vmem:[%s15227_s5 + $0x6f0] ss:$8 sps:$4 sm:$0xff]   ;;  %v10790_v57 = vld [vmem:[%s15227_s5 + $0x520] ss:$8 sps:$4 sm:$0xff]  }
 0x28a   :  { %v13661_v15 = vpop.f32.mrf.mxu1  ;;  %v3744_v18 = vpop.f32.mrf.mxu0 }
 0x28b   :  { %5690 = vmatpush1.bf16.msra.mxu0 %v10655_v39  ;;  %v3784_v1 = vadd.f32 %v13661_v15, %v3743_v61  ;;  %v10793_v61 = vld [vmem:[%s15227_s5 + $0x6e0] ss:$8 sps:$4 sm:$0xff]  }
 0x28c   :  { %v3785_v31 = vpop.f32.mrf.mxu1  ;;  %v3745_v55 = vpop.f32.mrf.mxu0  ;;  %5691 = vmatprep.subr.bf16.mxu0 %v10660_v14 }
 0x28d   :  { %v3911_v31 = vrot.slane %v13156_v21, %v644_v49  ;;  %v10751_v55 = vld [vmem:[%s15227_s5 + $0x650] ss:$8 sps:$4 sm:$0xff]  }
 0x28e   :  { %v3786_v23 = vpop.f32.mrf.mxu1 }
 0x28f   :  { %5692 = vmatpush1.bf16.msra.mxu0 %v10658_v36 }
 0x290   :  { %5693 = vmatprep.subr.bf16.mxu0 %v10663_v20  ;;  %v3957_v20 = vrot.slane %v13178_v43, %v640_v16  ;;  %v10778_v16 = vld [vmem:[%s15227_s5 + $0x540] ss:$8 sps:$4 sm:$0xff]  }
 0x293   :  { %5694 = vmatpush1.bf16.msra.mxu0 %v10661_v24  ;;  %v10759_v24 = vld [vmem:[%s15227_s5 + $0x644] ss:$8 sps:$4 sm:$0xff]  }
 0x294   :  { %5695 = vmatprep.subr.bf16.mxu0 %v10669_v26 }
 0x297   :  { %5696 = vmatpush1.bf16.msra.mxu0 %v10667_v27 }
 0x298   :  { %5697 = vmatprep.subr.bf16.mxu0 %v10675_v30  ;;  %v3961_v30 = vrot.slane %v13178_v43, %v644_v49  ;;  %v10760_v43 = vld [vmem:[%s15227_s5 + $0x570] ss:$8 sps:$4 sm:$0xff]   ;;  %v10781_v49 = vld [vmem:[%s15227_s5 + $0x600] ss:$8 sps:$4 sm:$0xff]  }
 0x29b   :  { %5698 = vmatpush1.bf16.msra.mxu0 %v10673_v53 }
 0x29c   :  { %5699 = vmatprep.subr.bf16.mxu0 %v10681_v60  ;;  %v10757_v60 = vld [vmem:[%s15227_s5 + $0x640] ss:$8 sps:$4 sm:$0xff]  }
 0x29f   :  { %5700 = vmatpush1.bf16.msra.mxu0 %v10679_v34 }
 0x2a0   :  { %5701 = vmatprep.subr.bf16.mxu0 %v10687_v63  ;;  %v10765_v63 = vld [vmem:[%s15227_s5 + $0x634] ss:$8 sps:$4 sm:$0xff]  }
 0x2a3   :  { %5702 = vmatpush1.bf16.msra.mxu0 %v10685_v45 }
 0x2a4   :  { %5703 = vmatprep.subr.bf16.mxu0 %v10693_v38 }
 0x2a7   :  { %5704 = vmatpush2.bf16.msra.mxu0 %v10691_v58 }
 0x2a8   :  { %5705 = vmatprep.subr.bf16.mxu0 %v10699_v40  ;;  %v10763_v40 = vld [vmem:[%s15227_s5 + $0x630] ss:$8 sps:$4 sm:$0xff]  }
 0x2ab   :  { %5706 = vmatpush2.bf16.msra.mxu0 %v10697_v0  ;;  %v10768_v0 = vld [vmem:[%s15227_s5 + $0x564] ss:$8 sps:$4 sm:$0xff]  }
 0x2ac   :  { %5707 = vmatprep.subr.bf16.mxu0 %v10705_v11  ;;  %v10771_v11 = vld [vmem:[%s15227_s5 + $0x624] ss:$8 sps:$4 sm:$0xff]  }
 0x2af   :  { %5708 = vmatpush2.bf16.msra.mxu0 %v10703_v42  ;;  %v10766_v42 = vld [vmem:[%s15227_s5 + $0x560] ss:$8 sps:$4 sm:$0xff]  }
 0x2b0   :  { %5709 = vmatprep.subr.bf16.mxu0 %v10711_v46  ;;  %v10769_v46 = vld [vmem:[%s15227_s5 + $0x620] ss:$8 sps:$4 sm:$0xff]  }
 0x2b3   :  { %5710 = vmatpush2.bf16.msra.mxu0 %v10709_v62  ;;  %v10774_v62 = vld [vmem:[%s15227_s5 + $0x554] ss:$8 sps:$4 sm:$0xff]  }
 0x2b4   :  { %5711 = vmatprep.subr.bf16.mxu0 %v10717_v33  ;;  %v10777_v33 = vld [vmem:[%s15227_s5 + $0x614] ss:$8 sps:$4 sm:$0xff]  }
 0x2b7   :  { %5712 = vmatpush2.bf16.msra.mxu0 %v10715_v47  ;;  %v10772_v47 = vld [vmem:[%s15227_s5 + $0x550] ss:$8 sps:$4 sm:$0xff]  }
 0x2b8   :  { %5713 = vmatprep.subr.bf16.mxu0 %v10723_v2  ;;  %v10775_v2 = vld [vmem:[%s15227_s5 + $0x610] ss:$8 sps:$4 sm:$0xff]  }
 0x2bb   :  { %5714 = vmatpush2.bf16.msra.mxu0 %v10721_v48  ;;  %v10780_v48 = vld [vmem:[%s15227_s5 + $0x544] ss:$8 sps:$4 sm:$0xff]  }
 0x2bc   :  { %5715 = vmatprep.subr.bf16.mxu0 %v10729_v35  ;;  %v10783_v35 = vld [vmem:[%s15227_s5 + $0x604] ss:$8 sps:$4 sm:$0xff]  }
 0x2bf   :  { %5716 = vmatpush2.bf16.msra.mxu0 %v10727_v52  ;;  %v10786_v52 = vld [vmem:[%s15227_s5 + $0x534] ss:$8 sps:$4 sm:$0xff]  }
 0x2c0   :  { %5717 = vmatprep.subr.bf16.mxu0 %v10735_v6  ;;  %v10789_v6 = vld [vmem:[%s15227_s5 + $0x6f4] ss:$8 sps:$4 sm:$0xff]  }
 0x2c3   :  { %5718 = vmatpush2.bf16.msra.mxu0 %v10733_v59  ;;  %v10792_v59 = vld [vmem:[%s15227_s5 + $0x524] ss:$8 sps:$4 sm:$0xff]  }
 0x2c4   :  { %5769 = vmatprep.subr.bf16.mxu0 %v10741_v44  ;;  %v10795_v44 = vld [vmem:[%s15227_s5 + $0x6e4] ss:$8 sps:$4 sm:$0xff]  }
 0x2c6   :  { %v3822_v41 = vpop.f32.mrf.mxu0  ;;  %5720 = vmatmul.mubr.bf16.vlgmr.msra.gmra.mxu0 %v13425_v28 }
 0x2c7   :  { %v3823_v3 = vadd.f32 %v3822_v41, %v3782_v25  ;;  %5770 = vmatpush1.bf16.msra.mxu0 %v10739_v22  ;;  %5801 = vmatprep.mubr.bf16.mxu0 %v13485_v7  ;;  %v10798_v22 = vld [vmem:[%s15227_s5 + $0x514] ss:$8 sps:$4 sm:$0xff]   ;;  %v10796_v25 = vld [vmem:[%s15227_s5 + $0x510] ss:$8 sps:$4 sm:$0xff]  }
 0x2c8   :  { %v3863_v8 = vpop.f32.mrf.mxu1  ;;  %v3824_v9 = vpop.f32.mrf.mxu0  ;;  %5771 = vmatprep.subr.bf16.mxu0 %v10747_v32  ;;  %v10801_v32 = vld [vmem:[%s15227_s5 + $0x6d4] ss:$8 sps:$4 sm:$0xff]   ;;  %v10799_v41 = vld [vmem:[%s15227_s5 + $0x6d0] ss:$8 sps:$4 sm:$0xff]  }
 0x2c9   :  { %v3864_v19 = vadd.f32 %v3863_v8, %v3823_v3  ;;  %v3825_v39 = vadd.f32 %v3824_v9, %v3784_v1  ;;  %v10804_v1 = vld [vmem:[%s15227_s5 + $0x504] ss:$8 sps:$4 sm:$0xff]   ;;  %v10802_v8 = vld [vmem:[%s15227_s5 + $0x500] ss:$8 sps:$4 sm:$0xff]   ;;  %v10810_v9 = vld [vmem:[%s15227_s5 + $0x5f4] ss:$8 sps:$4 sm:$0xff]  }
 0x2ca   :  { %v3865_v17 = vpop.f32.mrf.mxu1  ;;  %v3826_v14 = vpop.f32.mrf.mxu0  ;;  %v10807_v3 = vld [vmem:[%s15227_s5 + $0x6c4] ss:$8 sps:$4 sm:$0xff]  }
 0x2cb   :  { %v3876_v15 = vmax.f32 %v3864_v19, 0.0  ;;  %v3866_v18 = vadd.f32 %v3865_v17, %v3825_v39  ;;  %5772 = vmatpush1.bf16.msra.mxu0 %v10745_v5  ;;  %v10805_v5 = vld [vmem:[%s15227_s5 + $0x6c0] ss:$8 sps:$4 sm:$0xff]   ;;  %v10808_v19 = vld [vmem:[%s15227_s5 + $0x5f0] ss:$8 sps:$4 sm:$0xff]  }
 0x2cc   :  { %v3867_v36 = vpop.f32.mrf.mxu1  ;;  %v3827_v23 = vpop.f32.mrf.mxu0  ;;  %5773 = vmatprep.subr.bf16.mxu0 %v10753_v12  ;;  %v10813_v12 = vld [vmem:[%s15227_s5 + $0x6b4] ss:$8 sps:$4 sm:$0xff]   ;;  %v10816_v39 = vld [vmem:[%s15227_s5 + $0x5e4] ss:$8 sps:$4 sm:$0xff]   ;;  %v10814_v14 = vld [vmem:[%s15227_s5 + $0x5e0] ss:$8 sps:$4 sm:$0xff]  }
 0x2cd   :  { %v3926_v26 = vmul.f32 %v3907_v13, %v3876_v15  ;;  %v3877_v27 = vmax.f32 %v3866_v18, 0.0  ;;  %v10811_v13 = vld [vmem:[%s15227_s5 + $0x6b0] ss:$8 sps:$4 sm:$0xff]   ;;  %v10819_v17 = vld [vmem:[%s15227_s5 + $0x6a4] ss:$8 sps:$4 sm:$0xff]  }
 0x2ce   :  { %v3868_v53 = vpop.f32.mrf.mxu1  ;;  %v10817_v15 = vld [vmem:[%s15227_s5 + $0x6a0] ss:$8 sps:$4 sm:$0xff]   ;;  %v10822_v18 = vld [vmem:[%s15227_s5 + $0x5d4] ss:$8 sps:$4 sm:$0xff]   ;;  %v10820_v36 = vld [vmem:[%s15227_s5 + $0x5d0] ss:$8 sps:$4 sm:$0xff]  }
 0x2cf   :  { %v3927_v21 = vmul.f32 %v3911_v31, %v3877_v27  ;;  %5774 = vmatpush1.bf16.msra.mxu0 %v10751_v55  ;;  %v3976_v34 = vadd.f32 %v3957_v20, %v3926_v26  ;;  %v10825_v31 = vld [vmem:[%s15227_s5 + $0x694] ss:$8 sps:$4 sm:$0xff]   ;;  %v10823_v55 = vld [vmem:[%s15227_s5 + $0x690] ss:$8 sps:$4 sm:$0xff]   ;;  %v10828_v20 = vld [vmem:[%s15227_s5 + $0x5c4] ss:$8 sps:$4 sm:$0xff]  }
 0x2d0   :  { %5775 = vmatprep.subr.bf16.mxu0 %v10759_v24  ;;  %v10831_v23 = vld [vmem:[%s15227_s5 + $0x684] ss:$8 sps:$4 sm:$0xff]   ;;  %v10826_v24 = vld [vmem:[%s15227_s5 + $0x5c0] ss:$8 sps:$4 sm:$0xff]   ;;  %v10834_v27 = vld [vmem:[%s15227_s5 + $0x5b4] ss:$8 sps:$4 sm:$0xff]  }
 0x2d1   :  { %v3977_v45 = vadd.f32 %v3961_v30, %v3927_v21  ;;  %v13790_v58 = vpack.c.bf16 %v3976_v34, %v3976_v34  ;;  %v10829_v26 = vld [vmem:[%s15227_s5 + $0x680] ss:$8 sps:$4 sm:$0xff]   ;;  %v10837_v30 = vld [vmem:[%s15227_s5 + $0x874] ss:$8 sps:$4 sm:$0xff]   ;;  %v10832_v53 = vld [vmem:[%s15227_s5 + $0x5b0] ss:$8 sps:$4 sm:$0xff]  }
 0x2d2   :  { %v10835_v21 = vld [vmem:[%s15227_s5 + $0x870] ss:$8 sps:$4 sm:$0xff]   ;;  %v10843_v34 = vld [vmem:[%s15227_s5 + $0x864] ss:$8 sps:$4 sm:$0xff]  }
 0x2d3   :  { %v13785_v38 = vpack.c.bf16 %v3977_v45, %v3977_v45  ;;  %5776 = vmatpush1.bf16.msra.mxu0 %v10757_v60  ;;  %v10840_v60 = vld [vmem:[%s15227_s5 + $0x5a4] ss:$8 sps:$4 sm:$0xff]  }
 0x2d4   :  { %5777 = vmatprep.subr.bf16.mxu0 %v10765_v63 }
 0x2d5   :  { %4909 = vmatprep.mubr.bf16.mxu1 %v13785_v38 }
 0x2d6   :  { %4910 = vmatmul.mubr.bf16.vlgmr.msra.gmra.mxu1 %v13790_v58 }
 0x2d7   :  { %5729 = vmatpush1.bf16.msra.mxu1 %v10760_v43  ;;  %5760 = vmatprep.mubr.bf16.mxu1 %v13210_v54  ;;  %v10838_v43 = vld [vmem:[%s15227_s5 + $0x5a0] ss:$8 sps:$4 sm:$0xff]  }
 0x2d8   :  { %5778 = vmatpush1.bf16.msra.mxu0 %v10763_v40  ;;  %5730 = vmatprep.subr.bf16.mxu1 %v10768_v0 }
 0x2d9   :  { %5779 = vmatprep.subr.bf16.mxu0 %v10771_v11  ;;  %v10841_v11 = vld [vmem:[%s15227_s5 + $0x860] ss:$8 sps:$4 sm:$0xff]  }
 0x2db   :  { %5731 = vmatpush1.bf16.msra.mxu1 %v10766_v42  ;;  %v10846_v42 = vld [vmem:[%s15227_s5 + $0x594] ss:$8 sps:$4 sm:$0xff]  }
 0x2dc   :  { %5780 = vmatpush1.bf16.msra.mxu0 %v10769_v46  ;;  %5732 = vmatprep.subr.bf16.mxu1 %v10774_v62  ;;  %v10849_v62 = vld [vmem:[%s15227_s5 + $0x854] ss:$8 sps:$4 sm:$0xff]  }
 0x2dd   :  { %5781 = vmatprep.subr.bf16.mxu0 %v10777_v33 }
 0x2df   :  { %5733 = vmatpush1.bf16.msra.mxu1 %v10772_v47 }
 0x2e0   :  { %5782 = vmatpush1.bf16.msra.mxu0 %v10775_v2  ;;  %5734 = vmatprep.subr.bf16.mxu1 %v10780_v48  ;;  %v10844_v48 = vld [vmem:[%s15227_s5 + $0x590] ss:$8 sps:$4 sm:$0xff]  }
 0x2e1   :  { %5783 = vmatprep.subr.bf16.mxu0 %v10783_v35 }
 0x2e3   :  { %5735 = vmatpush1.bf16.msra.mxu1 %v10778_v16  ;;  %v10847_v16 = vld [vmem:[%s15227_s5 + $0x850] ss:$8 sps:$4 sm:$0xff]  }
 0x2e4   :  { %5784 = vmatpush1.bf16.msra.mxu0 %v10781_v49  ;;  %5736 = vmatprep.subr.bf16.mxu1 %v10786_v52  ;;  %v10852_v49 = vld [vmem:[%s15227_s5 + $0x584] ss:$8 sps:$4 sm:$0xff]  }
 0x2e5   :  { %5785 = vmatprep.subr.bf16.mxu0 %v10789_v6  ;;  %v10855_v6 = vld [vmem:[%s15227_s5 + $0x844] ss:$8 sps:$4 sm:$0xff]  }
 0x2e7   :  { %5737 = vmatpush1.bf16.msra.mxu1 %v10784_v4  ;;  %v10850_v4 = vld [vmem:[%s15227_s5 + $0x580] ss:$8 sps:$4 sm:$0xff]  }
 0x2e8   :  { %5786 = vmatpush2.bf16.msra.mxu0 %v10787_v56  ;;  %5738 = vmatprep.subr.bf16.mxu1 %v10792_v59  ;;  %v10853_v56 = vld [vmem:[%s15227_s5 + $0x840] ss:$8 sps:$4 sm:$0xff]   ;;  %v10858_v59 = vld [vmem:[%s15227_s5 + $0x774] ss:$8 sps:$4 sm:$0xff]  }
 0x2e9   :  { %5787 = vmatprep.subr.bf16.mxu0 %v10795_v44  ;;  %v10861_v44 = vld [vmem:[%s15227_s5 + $0x834] ss:$8 sps:$4 sm:$0xff]  }
 0x2eb   :  { %5739 = vmatpush1.bf16.msra.mxu1 %v10790_v57  ;;  %v10856_v57 = vld [vmem:[%s15227_s5 + $0x770] ss:$8 sps:$4 sm:$0xff]  }
 0x2ec   :  { %5788 = vmatpush2.bf16.msra.mxu0 %v10793_v61  ;;  %5740 = vmatprep.subr.bf16.mxu1 %v10798_v22  ;;  %v10859_v61 = vld [vmem:[%s15227_s5 + $0x830] ss:$8 sps:$4 sm:$0xff]   ;;  %v10864_v22 = vld [vmem:[%s15227_s5 + $0x764] ss:$8 sps:$4 sm:$0xff]  }
 0x2ed   :  { %5789 = vmatprep.subr.bf16.mxu0 %v10801_v32  ;;  %v10867_v32 = vld [vmem:[%s15227_s5 + $0x824] ss:$8 sps:$4 sm:$0xff]  }
 0x2ef   :  { %5741 = vmatpush1.bf16.msra.mxu1 %v10796_v25  ;;  %v10862_v25 = vld [vmem:[%s15227_s5 + $0x760] ss:$8 sps:$4 sm:$0xff]  }
 0x2f0   :  { %5790 = vmatpush2.bf16.msra.mxu0 %v10799_v41  ;;  %5742 = vmatprep.subr.bf16.mxu1 %v10804_v1  ;;  %v10865_v41 = vld [vmem:[%s15227_s5 + $0x820] ss:$8 sps:$4 sm:$0xff]   ;;  %v10870_v1 = vld [vmem:[%s15227_s5 + $0x754] ss:$8 sps:$4 sm:$0xff]  }
 0x2f1   :  { %5791 = vmatprep.subr.bf16.mxu0 %v10807_v3  ;;  %v10873_v3 = vld [vmem:[%s15227_s5 + $0x814] ss:$8 sps:$4 sm:$0xff]  }
 0x2f3   :  { %5743 = vmatpush1.bf16.msra.mxu1 %v10802_v8  ;;  %v10868_v8 = vld [vmem:[%s15227_s5 + $0x750] ss:$8 sps:$4 sm:$0xff]  }
 0x2f4   :  { %5792 = vmatpush2.bf16.msra.mxu0 %v10805_v5  ;;  %5744 = vmatprep.subr.bf16.mxu1 %v10810_v9  ;;  %v10871_v5 = vld [vmem:[%s15227_s5 + $0x810] ss:$8 sps:$4 sm:$0xff]   ;;  %v10876_v9 = vld [vmem:[%s15227_s5 + $0x744] ss:$8 sps:$4 sm:$0xff]  }
 0x2f5   :  { %5793 = vmatprep.subr.bf16.mxu0 %v10813_v12  ;;  %v10879_v12 = vld [vmem:[%s15227_s5 + $0x804] ss:$8 sps:$4 sm:$0xff]  }
 0x2f7   :  { %5745 = vmatpush2.bf16.msra.mxu1 %v10808_v19  ;;  %v10874_v19 = vld [vmem:[%s15227_s5 + $0x740] ss:$8 sps:$4 sm:$0xff]  }
 0x2f8   :  { %5794 = vmatpush2.bf16.msra.mxu0 %v10811_v13  ;;  %5746 = vmatprep.subr.bf16.mxu1 %v10816_v39  ;;  %v10877_v13 = vld [vmem:[%s15227_s5 + $0x800] ss:$8 sps:$4 sm:$0xff]   ;;  %v10882_v39 = vld [vmem:[%s15227_s5 + $0x734] ss:$8 sps:$4 sm:$0xff]  }
 0x2f9   :  { %5795 = vmatprep.subr.bf16.mxu0 %v10819_v17  ;;  %v10885_v17 = vld [vmem:[%s15227_s5 + $0x8f4] ss:$8 sps:$4 sm:$0xff]  }
 0x2fb   :  { %5747 = vmatpush2.bf16.msra.mxu1 %v10814_v14  ;;  %v10880_v14 = vld [vmem:[%s15227_s5 + $0x730] ss:$8 sps:$4 sm:$0xff]  }
 0x2fc   :  { %5796 = vmatpush2.bf16.msra.mxu0 %v10817_v15  ;;  %5748 = vmatprep.subr.bf16.mxu1 %v10822_v18  ;;  %v10883_v15 = vld [vmem:[%s15227_s5 + $0x8f0] ss:$8 sps:$4 sm:$0xff]   ;;  %v10888_v18 = vld [vmem:[%s15227_s5 + $0x724] ss:$8 sps:$4 sm:$0xff]  }
 0x2fd   :  { %5797 = vmatprep.subr.bf16.mxu0 %v10825_v31  ;;  %v10891_v31 = vld [vmem:[%s15227_s5 + $0x8e4] ss:$8 sps:$4 sm:$0xff]  }
 0x2ff   :  { %5749 = vmatpush2.bf16.msra.mxu1 %v10820_v36  ;;  %v10886_v36 = vld [vmem:[%s15227_s5 + $0x720] ss:$8 sps:$4 sm:$0xff]  }
 0x300   :  { %5798 = vmatpush2.bf16.msra.mxu0 %v10823_v55  ;;  %5750 = vmatprep.subr.bf16.mxu1 %v10828_v20  ;;  %v10889_v55 = vld [vmem:[%s15227_s5 + $0x8e0] ss:$8 sps:$4 sm:$0xff]   ;;  %v10894_v20 = vld [vmem:[%s15227_s5 + $0x714] ss:$8 sps:$4 sm:$0xff]  }
 0x301   :  { %5799 = vmatprep.subr.bf16.mxu0 %v10831_v23  ;;  %v10897_v23 = vld [vmem:[%s15227_s5 + $0x8d4] ss:$8 sps:$4 sm:$0xff]  }
 0x303   :  { %5751 = vmatpush2.bf16.msra.mxu1 %v10826_v24  ;;  %v10892_v24 = vld [vmem:[%s15227_s5 + $0x710] ss:$8 sps:$4 sm:$0xff]  }
 0x304   :  { %5800 = vmatpush2.bf16.msra.mxu0 %v10829_v26  ;;  %5752 = vmatprep.subr.bf16.mxu1 %v10834_v27  ;;  %v10895_v26 = vld [vmem:[%s15227_s5 + $0x8d0] ss:$8 sps:$4 sm:$0xff]   ;;  %v10900_v27 = vld [vmem:[%s15227_s5 + $0x704] ss:$8 sps:$4 sm:$0xff]  }
 0x305   :  { %6622 = vmatprep.subr.bf16.mxu0 %v10837_v30  ;;  %v10903_v30 = vld [vmem:[%s15227_s5 + $0x8c4] ss:$8 sps:$4 sm:$0xff]  }
 0x306   :  { %v4788_v63 = vpop.f32.mrf.mxu0 }
 0x307   :  { %5753 = vmatpush2.bf16.msra.mxu1 %v10832_v53  ;;  %5802 = vmatmul.mubr.bf16.vlgmr.msra.gmra.mxu0 %v13642_v10  ;;  %v10898_v53 = vld [vmem:[%s15227_s5 + $0x700] ss:$8 sps:$4 sm:$0xff]  }
 0x308   :  { %v4829_v45 = vpop.f32.mrf.mxu1  ;;  %6623 = vmatpush1.bf16.msra.mxu0 %v10835_v21  ;;  %6654 = vmatprep.mubr.bf16.mxu0 %v13204_v51  ;;  %v4790_v0 = vpop.f32.mrf.mxu0  ;;  %v10901_v21 = vld [vmem:[%s15227_s5 + $0x8c0] ss:$8 sps:$4 sm:$0xff]  }
 0x309   :  { %v13952_v40 = vadd.f32 %v4829_v45, %v4788_v63  ;;  %5754 = vmatprep.subr.bf16.mxu1 %v10840_v60  ;;  %6624 = vmatprep.subr.bf16.mxu0 %v10843_v34  ;;  %v10906_v60 = vld [vmem:[%s15227_s5 + $0x7f4] ss:$8 sps:$4 sm:$0xff]   ;;  %v10904_v63 = vld [vmem:[%s15227_s5 + $0x7f0] ss:$8 sps:$4 sm:$0xff]  }
 0x30a   :  { %v4831_v46 = vpop.f32.mrf.mxu1  ;;  %v4792_v47 = vpop.f32.mrf.mxu0  ;;  %v10909_v34 = vld [vmem:[%s15227_s5 + $0x8b4] ss:$8 sps:$4 sm:$0xff]   ;;  %v10907_v45 = vld [vmem:[%s15227_s5 + $0x8b0] ss:$8 sps:$4 sm:$0xff]  }
 0x30b   :  { %v13964_v33 = vadd.f32 %v4831_v46, %v4790_v0  ;;  %5755 = vmatpush2.bf16.msra.mxu1 %v10838_v43  ;;  %v10912_v43 = vld [vmem:[%s15227_s5 + $0x7e4] ss:$8 sps:$4 sm:$0xff]   ;;  %v10918_v46 = vld [vmem:[%s15227_s5 + $0x7d4] ss:$8 sps:$4 sm:$0xff]   ;;  %v10916_v47 = vld [vmem:[%s15227_s5 + $0x7d0] ss:$8 sps:$4 sm:$0xff]  }
 0x30c   :  { %v4833_v2 = vpop.f32.mrf.mxu1  ;;  %6625 = vmatpush1.bf16.msra.mxu0 %v10841_v11  ;;  %v4793_v35 = vpop.f32.mrf.mxu0  ;;  %5756 = vmatprep.subr.bf16.mxu1 %v10846_v42  ;;  %v10915_v0 = vld [vmem:[%s15227_s5 + $0x8a4] ss:$8 sps:$4 sm:$0xff]   ;;  %v10910_v11 = vld [vmem:[%s15227_s5 + $0x7e0] ss:$8 sps:$4 sm:$0xff]  }
 0x30d   :  { %6626 = vmatprep.subr.bf16.mxu0 %v10849_v62  ;;  %v10913_v42 = vld [vmem:[%s15227_s5 + $0x8a0] ss:$8 sps:$4 sm:$0xff]   ;;  %v10921_v62 = vld [vmem:[%s15227_s5 + $0x894] ss:$8 sps:$4 sm:$0xff]   ;;  %v10919_v2 = vld [vmem:[%s15227_s5 + $0x890] ss:$8 sps:$4 sm:$0xff]  }
 0x30e   :  { %v4834_v52 = vpop.f32.mrf.mxu1  ;;  %v10927_v35 = vld [vmem:[%s15227_s5 + $0x884] ss:$8 sps:$4 sm:$0xff]  }
 0x30f   :  { %5757 = vmatpush2.bf16.msra.mxu1 %v10844_v48  ;;  %v10924_v48 = vld [vmem:[%s15227_s5 + $0x7c4] ss:$8 sps:$4 sm:$0xff]   ;;  %v10930_v52 = vld [vmem:[%s15227_s5 + $0x7b4] ss:$8 sps:$4 sm:$0xff]  }
 0x310   :  { %6627 = vmatpush1.bf16.msra.mxu0 %v10847_v16  ;;  %5758 = vmatprep.subr.bf16.mxu1 %v10852_v49  ;;  %v10922_v16 = vld [vmem:[%s15227_s5 + $0x7c0] ss:$8 sps:$4 sm:$0xff]  }
 0x311   :  { %6628 = vmatprep.subr.bf16.mxu0 %v10855_v6  ;;  %v10925_v49 = vld [vmem:[%s15227_s5 + $0x880] ss:$8 sps:$4 sm:$0xff]   ;;  %v10933_v6 = vld [vmem:[%s15227_s5 + $0xa74] ss:$8 sps:$4 sm:$0xff]  }
 0x313   :  { %5759 = vmatpush2.bf16.msra.mxu1 %v10850_v4  ;;  %v10928_v4 = vld [vmem:[%s15227_s5 + $0x7b0] ss:$8 sps:$4 sm:$0xff]  }
 0x314   :  { %6629 = vmatpush1.bf16.msra.mxu0 %v10853_v56  ;;  %5810 = vmatprep.subr.bf16.mxu1 %v10858_v59  ;;  %v10931_v56 = vld [vmem:[%s15227_s5 + $0xa70] ss:$8 sps:$4 sm:$0xff]   ;;  %v10936_v59 = vld [vmem:[%s15227_s5 + $0x7a4] ss:$8 sps:$4 sm:$0xff]  }
 0x315   :  { %6630 = vmatprep.subr.bf16.mxu0 %v10861_v44  ;;  %v10939_v44 = vld [vmem:[%s15227_s5 + $0xa64] ss:$8 sps:$4 sm:$0xff]  }
 0x316   :  { %5761 = vmatmul.mubr.bf16.vlgmr.msra.gmra.mxu1 %v13433_v50 }
 0x317   :  { %5811 = vmatpush1.bf16.msra.mxu1 %v10856_v57  ;;  %5842 = vmatprep.mubr.bf16.mxu1 %v13785_v38 }
 0x318   :  { %6631 = vmatpush1.bf16.msra.mxu0 %v10859_v61  ;;  %5812 = vmatprep.subr.bf16.mxu1 %v10864_v22  ;;  %v10934_v22 = vld [vmem:[%s15227_s5 + $0x7a0] ss:$8 sps:$4 sm:$0xff]  }
 0x319   :  { %6632 = vmatprep.subr.bf16.mxu0 %v10867_v32 }
 0x31b   :  { %5813 = vmatpush1.bf16.msra.mxu1 %v10862_v25  ;;  %v10937_v25 = vld [vmem:[%s15227_s5 + $0xa60] ss:$8 sps:$4 sm:$0xff]  }
 0x31c   :  { %6633 = vmatpush1.bf16.msra.mxu0 %v10865_v41  ;;  %5814 = vmatprep.subr.bf16.mxu1 %v10870_v1  ;;  %v10945_v1 = vld [vmem:[%s15227_s5 + $0xa54] ss:$8 sps:$4 sm:$0xff]  }
 0x31d   :  { %6634 = vmatprep.subr.bf16.mxu0 %v10873_v3 }
 0x31f   :  { %5815 = vmatpush1.bf16.msra.mxu1 %v10868_v8  ;;  %v10940_v8 = vld [vmem:[%s15227_s5 + $0x790] ss:$8 sps:$4 sm:$0xff]  }
 0x320   :  { %6635 = vmatpush1.bf16.msra.mxu0 %v10871_v5  ;;  %5816 = vmatprep.subr.bf16.mxu1 %v10876_v9  ;;  %v10948_v9 = vld [vmem:[%s15227_s5 + $0x784] ss:$8 sps:$4 sm:$0xff]  }
 0x321   :  { %6636 = vmatprep.subr.bf16.mxu0 %v10879_v12  ;;  %v10951_v12 = vld [vmem:[%s15227_s5 + $0xa44] ss:$8 sps:$4 sm:$0xff]  }
 0x323   :  { %5817 = vmatpush1.bf16.msra.mxu1 %v10874_v19  ;;  %v10946_v19 = vld [vmem:[%s15227_s5 + $0x780] ss:$8 sps:$4 sm:$0xff]  }
 0x324   :  { %6637 = vmatpush1.bf16.msra.mxu0 %v10877_v13  ;;  %5818 = vmatprep.subr.bf16.mxu1 %v10882_v39  ;;  %v10949_v13 = vld [vmem:[%s15227_s5 + $0xa40] ss:$8 sps:$4 sm:$0xff]   ;;  %v10954_v39 = vld [vmem:[%s15227_s5 + $0x974] ss:$8 sps:$4 sm:$0xff]  }
 0x325   :  { %6638 = vmatprep.subr.bf16.mxu0 %v10885_v17  ;;  %v10957_v17 = vld [vmem:[%s15227_s5 + $0xa34] ss:$8 sps:$4 sm:$0xff]  }
 0x327   :  { %5819 = vmatpush1.bf16.msra.mxu1 %v10880_v14  ;;  %v10952_v14 = vld [vmem:[%s15227_s5 + $0x970] ss:$8 sps:$4 sm:$0xff]  }
 0x328   :  { %6639 = vmatpush2.bf16.msra.mxu0 %v10883_v15  ;;  %5820 = vmatprep.subr.bf16.mxu1 %v10888_v18  ;;  %v10955_v15 = vld [vmem:[%s15227_s5 + $0xa30] ss:$8 sps:$4 sm:$0xff]   ;;  %v10960_v18 = vld [vmem:[%s15227_s5 + $0x964] ss:$8 sps:$4 sm:$0xff]  }
 0x329   :  { %6640 = vmatprep.subr.bf16.mxu0 %v10891_v31  ;;  %v10963_v31 = vld [vmem:[%s15227_s5 + $0xa24] ss:$8 sps:$4 sm:$0xff]  }
 0x32b   :  { %5821 = vmatpush1.bf16.msra.mxu1 %v10886_v36  ;;  %v10958_v36 = vld [vmem:[%s15227_s5 + $0x960] ss:$8 sps:$4 sm:$0xff]  }
 0x32c   :  { %6641 = vmatpush2.bf16.msra.mxu0 %v10889_v55  ;;  %5822 = vmatprep.subr.bf16.mxu1 %v10894_v20  ;;  %v10961_v55 = vld [vmem:[%s15227_s5 + $0xa20] ss:$8 sps:$4 sm:$0xff]   ;;  %v10966_v20 = vld [vmem:[%s15227_s5 + $0x954] ss:$8 sps:$4 sm:$0xff]  }
 0x32d   :  { %6642 = vmatprep.subr.bf16.mxu0 %v10897_v23  ;;  %v10969_v23 = vld [vmem:[%s15227_s5 + $0xa14] ss:$8 sps:$4 sm:$0xff]  }
 0x32f   :  { %5823 = vmatpush1.bf16.msra.mxu1 %v10892_v24  ;;  %v10964_v24 = vld [vmem:[%s15227_s5 + $0x950] ss:$8 sps:$4 sm:$0xff]  }
 0x330   :  { %6643 = vmatpush2.bf16.msra.mxu0 %v10895_v26  ;;  %5824 = vmatprep.subr.bf16.mxu1 %v10900_v27  ;;  %v10967_v26 = vld [vmem:[%s15227_s5 + $0xa10] ss:$8 sps:$4 sm:$0xff]   ;;  %v10972_v27 = vld [vmem:[%s15227_s5 + $0x944] ss:$8 sps:$4 sm:$0xff]  }
 0x331   :  { %6644 = vmatprep.subr.bf16.mxu0 %v10903_v30  ;;  %v10975_v30 = vld [vmem:[%s15227_s5 + $0xa04] ss:$8 sps:$4 sm:$0xff]  }
 0x333   :  { %5825 = vmatpush1.bf16.msra.mxu1 %v10898_v53  ;;  %v10970_v53 = vld [vmem:[%s15227_s5 + $0x940] ss:$8 sps:$4 sm:$0xff]  }
 0x334   :  { %6645 = vmatpush2.bf16.msra.mxu0 %v10901_v21  ;;  %5826 = vmatprep.subr.bf16.mxu1 %v10906_v60  ;;  %v10973_v21 = vld [vmem:[%s15227_s5 + $0xa00] ss:$8 sps:$4 sm:$0xff]   ;;  %v10978_v60 = vld [vmem:[%s15227_s5 + $0x934] ss:$8 sps:$4 sm:$0xff]  }
 0x335   :  { %6646 = vmatprep.subr.bf16.mxu0 %v10909_v34  ;;  %v10981_v34 = vld [vmem:[%s15227_s5 + $0xaf4] ss:$8 sps:$4 sm:$0xff]  }
 0x337   :  { %5827 = vmatpush2.bf16.msra.mxu1 %v10904_v63  ;;  %v10976_v63 = vld [vmem:[%s15227_s5 + $0x930] ss:$8 sps:$4 sm:$0xff]  }
 0x338   :  { %6647 = vmatpush2.bf16.msra.mxu0 %v10907_v45  ;;  %5828 = vmatprep.subr.bf16.mxu1 %v10912_v43  ;;  %v10979_v45 = vld [vmem:[%s15227_s5 + $0xaf0] ss:$8 sps:$4 sm:$0xff]   ;;  %v10984_v43 = vld [vmem:[%s15227_s5 + $0x924] ss:$8 sps:$4 sm:$0xff]  }
 0x339   :  { %6648 = vmatprep.subr.bf16.mxu0 %v10915_v0  ;;  %v10987_v0 = vld [vmem:[%s15227_s5 + $0xae4] ss:$8 sps:$4 sm:$0xff]  }
 0x33b   :  { %5829 = vmatpush2.bf16.msra.mxu1 %v10910_v11  ;;  %v10982_v11 = vld [vmem:[%s15227_s5 + $0x920] ss:$8 sps:$4 sm:$0xff]  }
 0x33c   :  { %6649 = vmatpush2.bf16.msra.mxu0 %v10913_v42  ;;  %5830 = vmatprep.subr.bf16.mxu1 %v10918_v46  ;;  %v10985_v42 = vld [vmem:[%s15227_s5 + $0xae0] ss:$8 sps:$4 sm:$0xff]   ;;  %v10990_v46 = vld [vmem:[%s15227_s5 + $0x914] ss:$8 sps:$4 sm:$0xff]  }
 0x33d   :  { %6650 = vmatprep.subr.bf16.mxu0 %v10921_v62  ;;  %v10993_v62 = vld [vmem:[%s15227_s5 + $0xad4] ss:$8 sps:$4 sm:$0xff]  }
 0x33f   :  { %5831 = vmatpush2.bf16.msra.mxu1 %v10916_v47  ;;  %v10988_v47 = vld [vmem:[%s15227_s5 + $0x910] ss:$8 sps:$4 sm:$0xff]  }
 0x340   :  { %6651 = vmatpush2.bf16.msra.mxu0 %v10919_v2  ;;  %5832 = vmatprep.subr.bf16.mxu1 %v10924_v48  ;;  %v10991_v2 = vld [vmem:[%s15227_s5 + $0xad0] ss:$8 sps:$4 sm:$0xff]   ;;  %v10996_v48 = vld [vmem:[%s15227_s5 + $0x904] ss:$8 sps:$4 sm:$0xff]  }
 0x341   :  { %6652 = vmatprep.subr.bf16.mxu0 %v10927_v35  ;;  %v10999_v35 = vld [vmem:[%s15227_s5 + $0xac4] ss:$8 sps:$4 sm:$0xff]  }
 0x343   :  { %5833 = vmatpush2.bf16.msra.mxu1 %v10922_v16  ;;  %v10994_v16 = vld [vmem:[%s15227_s5 + $0x900] ss:$8 sps:$4 sm:$0xff]  }
 0x344   :  { %6653 = vmatpush2.bf16.msra.mxu0 %v10925_v49  ;;  %5834 = vmatprep.subr.bf16.mxu1 %v10930_v52  ;;  %v10997_v49 = vld [vmem:[%s15227_s5 + $0xac0] ss:$8 sps:$4 sm:$0xff]   ;;  %v11002_v52 = vld [vmem:[%s15227_s5 + $0x9f4] ss:$8 sps:$4 sm:$0xff]  }
 0x345   :  { %6704 = vmatprep.subr.bf16.mxu0 %v10933_v6  ;;  %v11005_v6 = vld [vmem:[%s15227_s5 + $0xab4] ss:$8 sps:$4 sm:$0xff]  }
 0x346   :  { %v4870_v57 = vpop.f32.mrf.mxu0 }
 0x347   :  { %v14149_v61 = vadd.f32 %v4870_v57, %v13952_v40  ;;  %5835 = vmatpush2.bf16.msra.mxu1 %v10928_v4  ;;  %6655 = vmatmul.mubr.bf16.vlgmr.msra.gmra.mxu0 %v13425_v28  ;;  %v10942_v40 = vld [vmem:[%s15227_s5 + $0x794] ss:$8 sps:$4 sm:$0xff]   ;;  %v11000_v4 = vld [vmem:[%s15227_s5 + $0x9f0] ss:$8 sps:$4 sm:$0xff]   ;;  %v11006_v57 = vld [vmem:[%s15227_s5 + $0x9e0] ss:$8 sps:$4 sm:$0xff]  }
 0x348   :  { %6705 = vmatpush1.bf16.msra.mxu0 %v10931_v56  ;;  %6736 = vmatprep.mubr.bf16.mxu0 %v13485_v7  ;;  %v4872_v32 = vpop.f32.mrf.mxu0  ;;  %v11003_v56 = vld [vmem:[%s15227_s5 + $0xab0] ss:$8 sps:$4 sm:$0xff]  }
 0x349   :  { %v14163_v41 = vadd.f32 %v4872_v32, %v13964_v33  ;;  %5836 = vmatprep.subr.bf16.mxu1 %v10936_v59  ;;  %6706 = vmatprep.subr.bf16.mxu0 %v10939_v44  ;;  %v10943_v33 = vld [vmem:[%s15227_s5 + $0xa50] ss:$8 sps:$4 sm:$0xff]   ;;  %v11008_v59 = vld [vmem:[%s15227_s5 + $0x9e4] ss:$8 sps:$4 sm:$0xff]   ;;  %v11014_v32 = vld [vmem:[%s15227_s5 + $0x9d4] ss:$8 sps:$4 sm:$0xff]  }
 0x34a   :  { %v4874_v3 = vpop.f32.mrf.mxu0  ;;  %v11011_v44 = vld [vmem:[%s15227_s5 + $0xaa4] ss:$8 sps:$4 sm:$0xff]  }
 0x34b   :  { %5837 = vmatpush2.bf16.msra.mxu1 %v10934_v22  ;;  %v11009_v22 = vld [vmem:[%s15227_s5 + $0xaa0] ss:$8 sps:$4 sm:$0xff]   ;;  %v11020_v3 = vld [vmem:[%s15227_s5 + $0x9c4] ss:$8 sps:$4 sm:$0xff]  }
 0x34c   :  { %6707 = vmatpush1.bf16.msra.mxu0 %v10937_v25  ;;  %v4875_v5 = vpop.f32.mrf.mxu0  ;;  %5838 = vmatprep.subr.bf16.mxu1 %v10942_v40  ;;  %v11017_v25 = vld [vmem:[%s15227_s5 + $0xa94] ss:$8 sps:$4 sm:$0xff]   ;;  %v11012_v40 = vld [vmem:[%s15227_s5 + $0x9d0] ss:$8 sps:$4 sm:$0xff]  }
 0x34d   :  { %6708 = vmatprep.subr.bf16.mxu0 %v10945_v1  ;;  %v11015_v1 = vld [vmem:[%s15227_s5 + $0xa90] ss:$8 sps:$4 sm:$0xff]   ;;  %v11018_v5 = vld [vmem:[%s15227_s5 + $0x9c0] ss:$8 sps:$4 sm:$0xff]  }
 0x34f   :  { %5839 = vmatpush2.bf16.msra.mxu1 %v10940_v8  ;;  %v11023_v8 = vld [vmem:[%s15227_s5 + $0xa84] ss:$8 sps:$4 sm:$0xff]  }
 0x350   :  { %6709 = vmatpush1.bf16.msra.mxu0 %v10943_v33  ;;  %5840 = vmatprep.subr.bf16.mxu1 %v10948_v9  ;;  %v11021_v33 = vld [vmem:[%s15227_s5 + $0xa80] ss:$8 sps:$4 sm:$0xff]   ;;  %v11026_v9 = vld [vmem:[%s15227_s5 + $0x9b4] ss:$8 sps:$4 sm:$0xff]  }
 0x351   :  { %6710 = vmatprep.subr.bf16.mxu0 %v10951_v12  ;;  %v11029_v12 = vld [vmem:[%s15227_s5 + $0xc74] ss:$8 sps:$4 sm:$0xff]  }
 0x353   :  { %5841 = vmatpush2.bf16.msra.mxu1 %v10946_v19  ;;  %v11024_v19 = vld [vmem:[%s15227_s5 + $0x9b0] ss:$8 sps:$4 sm:$0xff]  }
 0x354   :  { %6711 = vmatpush1.bf16.msra.mxu0 %v10949_v13  ;;  %6663 = vmatprep.subr.bf16.mxu1 %v10954_v39  ;;  %v11027_v13 = vld [vmem:[%s15227_s5 + $0xc70] ss:$8 sps:$4 sm:$0xff]   ;;  %v11032_v39 = vld [vmem:[%s15227_s5 + $0x9a4] ss:$8 sps:$4 sm:$0xff]  }
 0x355   :  { %6712 = vmatprep.subr.bf16.mxu0 %v10957_v17  ;;  %v11035_v17 = vld [vmem:[%s15227_s5 + $0xc64] ss:$8 sps:$4 sm:$0xff]  }
 0x356   :  { %5843 = vmatmul.mubr.bf16.vlgmr.msra.gmra.mxu1 %v13790_v58 }
 0x357   :  { %6664 = vmatpush1.bf16.msra.mxu1 %v10952_v14  ;;  %6695 = vmatprep.mubr.bf16.mxu1 %v13210_v54 }
 0x358   :  { %6713 = vmatpush1.bf16.msra.mxu0 %v10955_v15  ;;  %6665 = vmatprep.subr.bf16.mxu1 %v10960_v18  ;;  %v11030_v15 = vld [vmem:[%s15227_s5 + $0x9a0] ss:$8 sps:$4 sm:$0xff]  }
 0x359   :  { %6714 = vmatprep.subr.bf16.mxu0 %v10963_v31  ;;  %v11033_v31 = vld [vmem:[%s15227_s5 + $0xc60] ss:$8 sps:$4 sm:$0xff]  }
 0x35b   :  { %6666 = vmatpush1.bf16.msra.mxu1 %v10958_v36  ;;  %v11038_v36 = vld [vmem:[%s15227_s5 + $0x994] ss:$8 sps:$4 sm:$0xff]  }
 0x35c   :  { %6715 = vmatpush1.bf16.msra.mxu0 %v10961_v55  ;;  %6667 = vmatprep.subr.bf16.mxu1 %v10966_v20  ;;  %v11041_v55 = vld [vmem:[%s15227_s5 + $0xc54] ss:$8 sps:$4 sm:$0xff]  }
 0x35d   :  { %6716 = vmatprep.subr.bf16.mxu0 %v10969_v23 }
 0x35f   :  { %6668 = vmatpush1.bf16.msra.mxu1 %v10964_v24  ;;  %v11039_v24 = vld [vmem:[%s15227_s5 + $0xc50] ss:$8 sps:$4 sm:$0xff]  }
 0x360   :  { %6717 = vmatpush1.bf16.msra.mxu0 %v10967_v26  ;;  %6669 = vmatprep.subr.bf16.mxu1 %v10972_v27  ;;  %v11044_v26 = vld [vmem:[%s15227_s5 + $0x984] ss:$8 sps:$4 sm:$0xff]  }
 0x361   :  { %6718 = vmatprep.subr.bf16.mxu0 %v10975_v30  ;;  %v11047_v27 = vld [vmem:[%s15227_s5 + $0xc44] ss:$8 sps:$4 sm:$0xff]   ;;  %v11042_v30 = vld [vmem:[%s15227_s5 + $0x980] ss:$8 sps:$4 sm:$0xff]  }
 0x363   :  { %6670 = vmatpush1.bf16.msra.mxu1 %v10970_v53  ;;  %v11045_v53 = vld [vmem:[%s15227_s5 + $0xc40] ss:$8 sps:$4 sm:$0xff]  }
 0x364   :  { %6719 = vmatpush1.bf16.msra.mxu0 %v10973_v21  ;;  %6671 = vmatprep.subr.bf16.mxu1 %v10978_v60  ;;  %v11050_v21 = vld [vmem:[%s15227_s5 + $0xb74] ss:$8 sps:$4 sm:$0xff]  }
 0x365   :  { %6720 = vmatprep.subr.bf16.mxu0 %v10981_v34  ;;  %v11053_v60 = vld [vmem:[%s15227_s5 + $0xc34] ss:$8 sps:$4 sm:$0xff]   ;;  %v11048_v34 = vld [vmem:[%s15227_s5 + $0xb70] ss:$8 sps:$4 sm:$0xff]  }
 0x367   :  { %6672 = vmatpush1.bf16.msra.mxu1 %v10976_v63  ;;  %v11051_v63 = vld [vmem:[%s15227_s5 + $0xc30] ss:$8 sps:$4 sm:$0xff]  }
 0x368   :  { %6721 = vmatpush2.bf16.msra.mxu0 %v10979_v45  ;;  %6673 = vmatprep.subr.bf16.mxu1 %v10984_v43  ;;  %v11056_v45 = vld [vmem:[%s15227_s5 + $0xb64] ss:$8 sps:$4 sm:$0xff]  }
 0x369   :  { %6722 = vmatprep.subr.bf16.mxu0 %v10987_v0  ;;  %v11059_v43 = vld [vmem:[%s15227_s5 + $0xc24] ss:$8 sps:$4 sm:$0xff]  }
 0x36b   :  { %6674 = vmatpush1.bf16.msra.mxu1 %v10982_v11 }
 0x36c   :  { %6723 = vmatpush2.bf16.msra.mxu0 %v10985_v42  ;;  %6675 = vmatprep.subr.bf16.mxu1 %v10990_v46  ;;  %v11054_v42 = vld [vmem:[%s15227_s5 + $0xb60] ss:$8 sps:$4 sm:$0xff]  }
 0x36d   :  { %6724 = vmatprep.subr.bf16.mxu0 %v10993_v62  ;;  %v11057_v62 = vld [vmem:[%s15227_s5 + $0xc20] ss:$8 sps:$4 sm:$0xff]  }
 0x36f   :  { %6676 = vmatpush1.bf16.msra.mxu1 %v10988_v47  ;;  %v11062_v47 = vld [vmem:[%s15227_s5 + $0xb54] ss:$8 sps:$4 sm:$0xff]  }
 0x370   :  { %6725 = vmatpush2.bf16.msra.mxu0 %v10991_v2  ;;  %6677 = vmatprep.subr.bf16.mxu1 %v10996_v48  ;;  %v11065_v2 = vld [vmem:[%s15227_s5 + $0xc14] ss:$8 sps:$4 sm:$0xff]  }
 0x371   :  { %6726 = vmatprep.subr.bf16.mxu0 %v10999_v35  ;;  %v11060_v35 = vld [vmem:[%s15227_s5 + $0xb50] ss:$8 sps:$4 sm:$0xff]  }
 0x373   :  { %6678 = vmatpush1.bf16.msra.mxu1 %v10994_v16 }
 0x374   :  { %6727 = vmatpush2.bf16.msra.mxu0 %v10997_v49  ;;  %6679 = vmatprep.subr.bf16.mxu1 %v11002_v52  ;;  %v11063_v49 = vld [vmem:[%s15227_s5 + $0xc10] ss:$8 sps:$4 sm:$0xff]   ;;  %v11071_v52 = vld [vmem:[%s15227_s5 + $0xc04] ss:$8 sps:$4 sm:$0xff]  }
 0x375   :  { %6728 = vmatprep.subr.bf16.mxu0 %v11005_v6  ;;  %v11066_v6 = vld [vmem:[%s15227_s5 + $0xb40] ss:$8 sps:$4 sm:$0xff]  }
 0x377   :  { %6680 = vmatpush2.bf16.msra.mxu1 %v11000_v4  ;;  %v11069_v4 = vld [vmem:[%s15227_s5 + $0xc00] ss:$8 sps:$4 sm:$0xff]  }
 0x378   :  { %6729 = vmatpush2.bf16.msra.mxu0 %v11003_v56  ;;  %6681 = vmatprep.subr.bf16.mxu1 %v11008_v59  ;;  %v11074_v56 = vld [vmem:[%s15227_s5 + $0xb34] ss:$8 sps:$4 sm:$0xff]  }
 0x379   :  { %6730 = vmatprep.subr.bf16.mxu0 %v11011_v44  ;;  %v11077_v59 = vld [vmem:[%s15227_s5 + $0xcf4] ss:$8 sps:$4 sm:$0xff]   ;;  %v11072_v44 = vld [vmem:[%s15227_s5 + $0xb30] ss:$8 sps:$4 sm:$0xff]  }
 0x37b   :  { %6682 = vmatpush2.bf16.msra.mxu1 %v11006_v57  ;;  %v11075_v57 = vld [vmem:[%s15227_s5 + $0xcf0] ss:$8 sps:$4 sm:$0xff]  }
 0x37c   :  { %6731 = vmatpush2.bf16.msra.mxu0 %v11009_v22  ;;  %6683 = vmatprep.subr.bf16.mxu1 %v11014_v32  ;;  %v11080_v22 = vld [vmem:[%s15227_s5 + $0xb24] ss:$8 sps:$4 sm:$0xff]  }
 0x37d   :  { %6732 = vmatprep.subr.bf16.mxu0 %v11017_v25  ;;  %v11083_v32 = vld [vmem:[%s15227_s5 + $0xce4] ss:$8 sps:$4 sm:$0xff]   ;;  %v11078_v25 = vld [vmem:[%s15227_s5 + $0xb20] ss:$8 sps:$4 sm:$0xff]  }
 0x37f   :  { %6684 = vmatpush2.bf16.msra.mxu1 %v11012_v40  ;;  %v11081_v40 = vld [vmem:[%s15227_s5 + $0xce0] ss:$8 sps:$4 sm:$0xff]  }
 0x380   :  { %6733 = vmatpush2.bf16.msra.mxu0 %v11015_v1  ;;  %6685 = vmatprep.subr.bf16.mxu1 %v11020_v3  ;;  %v11086_v1 = vld [vmem:[%s15227_s5 + $0xb14] ss:$8 sps:$4 sm:$0xff]  }
 0x381   :  { %6734 = vmatprep.subr.bf16.mxu0 %v11023_v8  ;;  %v11089_v3 = vld [vmem:[%s15227_s5 + $0xcd4] ss:$8 sps:$4 sm:$0xff]   ;;  %v11084_v8 = vld [vmem:[%s15227_s5 + $0xb10] ss:$8 sps:$4 sm:$0xff]  }
 0x383   :  { %6686 = vmatpush2.bf16.msra.mxu1 %v11018_v5  ;;  %v11087_v5 = vld [vmem:[%s15227_s5 + $0xcd0] ss:$8 sps:$4 sm:$0xff]  }
 0x384   :  { %6735 = vmatpush2.bf16.msra.mxu0 %v11021_v33  ;;  %6687 = vmatprep.subr.bf16.mxu1 %v11026_v9  ;;  %v11092_v33 = vld [vmem:[%s15227_s5 + $0xb04] ss:$8 sps:$4 sm:$0xff]  }
 0x385   :  { %7557 = vmatprep.subr.bf16.mxu0 %v11029_v12  ;;  %v11095_v9 = vld [vmem:[%s15227_s5 + $0xcc4] ss:$8 sps:$4 sm:$0xff]   ;;  %v11090_v12 = vld [vmem:[%s15227_s5 + $0xb00] ss:$8 sps:$4 sm:$0xff]  }
 0x386   :  { %v14350_v14 = vpop.f32.mrf.mxu0 }
 0x387   :  { %6688 = vmatpush2.bf16.msra.mxu1 %v11024_v19  ;;  %6737 = vmatmul.mubr.bf16.vlgmr.msra.gmra.mxu0 %v13642_v10  ;;  %v11093_v19 = vld [vmem:[%s15227_s5 + $0xcc0] ss:$8 sps:$4 sm:$0xff]  }
 0x388   :  { %7558 = vmatpush1.bf16.msra.mxu0 %v11027_v13  ;;  %7589 = vmatprep.mubr.bf16.mxu0 %v13204_v51  ;;  %v14357_v18 = vpop.f32.mrf.mxu0  ;;  %v11036_v51 = vld [vmem:[%s15227_s5 + $0x990] ss:$8 sps:$4 sm:$0xff]   ;;  %v11098_v13 = vld [vmem:[%s15227_s5 + $0xbf4] ss:$8 sps:$4 sm:$0xff]  }
 0x389   :  { %6689 = vmatprep.subr.bf16.mxu1 %v11032_v39  ;;  %7559 = vmatprep.subr.bf16.mxu0 %v11035_v17  ;;  %v11101_v39 = vld [vmem:[%s15227_s5 + $0xcb4] ss:$8 sps:$4 sm:$0xff]   ;;  %v11096_v17 = vld [vmem:[%s15227_s5 + $0xbf0] ss:$8 sps:$4 sm:$0xff]  }
 0x38a   :  { %v5725_v20 = vpop.f32.mrf.mxu0 }
 0x38b   :  { %6690 = vmatpush2.bf16.msra.mxu1 %v11030_v15  ;;  %v11099_v15 = vld [vmem:[%s15227_s5 + $0xcb0] ss:$8 sps:$4 sm:$0xff]   ;;  %v11105_v20 = vld [vmem:[%s15227_s5 + $0xca0] ss:$8 sps:$4 sm:$0xff]  }
 0x38c   :  { %7560 = vmatpush1.bf16.msra.mxu0 %v11033_v31  ;;  %v5726_v23 = vpop.f32.mrf.mxu0  ;;  %6691 = vmatprep.subr.bf16.mxu1 %v11038_v36  ;;  %v11104_v31 = vld [vmem:[%s15227_s5 + $0xbe4] ss:$8 sps:$4 sm:$0xff]  }
 0x38d   :  { %7561 = vmatprep.subr.bf16.mxu0 %v11041_v55  ;;  %v11107_v36 = vld [vmem:[%s15227_s5 + $0xca4] ss:$8 sps:$4 sm:$0xff]   ;;  %v11102_v55 = vld [vmem:[%s15227_s5 + $0xbe0] ss:$8 sps:$4 sm:$0xff]   ;;  %v11113_v23 = vld [vmem:[%s15227_s5 + $0xc94] ss:$8 sps:$4 sm:$0xff]  }
 0x38f   :  { %6692 = vmatpush2.bf16.msra.mxu1 %v11036_v51  ;;  %v11110_v51 = vld [vmem:[%s15227_s5 + $0xbd4] ss:$8 sps:$4 sm:$0xff]  }
 0x390   :  { %7562 = vmatpush1.bf16.msra.mxu0 %v11039_v24  ;;  %6693 = vmatprep.subr.bf16.mxu1 %v11044_v26  ;;  %v11108_v24 = vld [vmem:[%s15227_s5 + $0xbd0] ss:$8 sps:$4 sm:$0xff]  }
 0x391   :  { %7563 = vmatprep.subr.bf16.mxu0 %v11047_v27  ;;  %v11111_v26 = vld [vmem:[%s15227_s5 + $0xc90] ss:$8 sps:$4 sm:$0xff]   ;;  %v11116_v27 = vld [vmem:[%s15227_s5 + $0xbc4] ss:$8 sps:$4 sm:$0xff]  }
 0x393   :  { %6694 = vmatpush2.bf16.msra.mxu1 %v11042_v30  ;;  %v11119_v30 = vld [vmem:[%s15227_s5 + $0xc84] ss:$8 sps:$4 sm:$0xff]  }
 0x394   :  { %7564 = vmatpush1.bf16.msra.mxu0 %v11045_v53  ;;  %6745 = vmatprep.subr.bf16.mxu1 %v11050_v21  ;;  %v11114_v53 = vld [vmem:[%s15227_s5 + $0xbc0] ss:$8 sps:$4 sm:$0xff]  }
 0x395   :  { %7565 = vmatprep.subr.bf16.mxu0 %v11053_v60  ;;  %v11117_v21 = vld [vmem:[%s15227_s5 + $0xc80] ss:$8 sps:$4 sm:$0xff]   ;;  %v11122_v60 = vld [vmem:[%s15227_s5 + $0xbb4] ss:$8 sps:$4 sm:$0xff]  }
 0x396   :  { %6696 = vmatmul.mubr.bf16.vlgmr.msra.gmra.mxu1 %v13433_v50  ;;  %v4911_v0 = vpop.f32.mrf.mxu1 }
 0x397   :  { %v14406_v11 = vadd.f32 %v4911_v0, %v14149_v61  ;;  %6746 = vmatpush1.bf16.msra.mxu1 %v11048_v34  ;;  %6777 = vmatprep.mubr.bf16.mxu1 %v13785_v38  ;;  %v11125_v34 = vld [vmem:[%s15227_s5 + $0xe74] ss:$8 sps:$4 sm:$0xff]   ;;  %v11131_v0 = vld [vmem:[%s15227_s5 + $0xe64] ss:$8 sps:$4 sm:$0xff]  }
 0x398   :  { %7566 = vmatpush1.bf16.msra.mxu0 %v11051_v63  ;;  %v4913_v46 = vpop.f32.mrf.mxu1  ;;  %6747 = vmatprep.subr.bf16.mxu1 %v11056_v45  ;;  %v11120_v63 = vld [vmem:[%s15227_s5 + $0xbb0] ss:$8 sps:$4 sm:$0xff]  }
 0x399   :  { %v14419_v61 = vadd.f32 %v4913_v46, %v14163_v41  ;;  %7567 = vmatprep.subr.bf16.mxu0 %v11059_v43  ;;  %v11068_v41 = vld [vmem:[%s15227_s5 + $0xb44] ss:$8 sps:$4 sm:$0xff]   ;;  %v11123_v45 = vld [vmem:[%s15227_s5 + $0xe70] ss:$8 sps:$4 sm:$0xff]   ;;  %v11126_v46 = vld [vmem:[%s15227_s5 + $0xba0] ss:$8 sps:$4 sm:$0xff]  }
 0x39a   :  { %v4915_v48 = vpop.f32.mrf.mxu1  ;;  %v11128_v43 = vld [vmem:[%s15227_s5 + $0xba4] ss:$8 sps:$4 sm:$0xff]  }
 0x39b   :  { %6748 = vmatpush1.bf16.msra.mxu1 %v11054_v42 }
 0x39c   :  { %7568 = vmatpush1.bf16.msra.mxu0 %v11057_v62  ;;  %v4916_v16 = vpop.f32.mrf.mxu1  ;;  %6749 = vmatprep.subr.bf16.mxu1 %v11062_v47  ;;  %v11129_v62 = vld [vmem:[%s15227_s5 + $0xe60] ss:$8 sps:$4 sm:$0xff]   ;;  %v11134_v47 = vld [vmem:[%s15227_s5 + $0xb94] ss:$8 sps:$4 sm:$0xff]  }
 0x39d   :  { %7569 = vmatprep.subr.bf16.mxu0 %v11065_v2  ;;  %v11140_v16 = vld [vmem:[%s15227_s5 + $0xb84] ss:$8 sps:$4 sm:$0xff]  }
 0x39f   :  { %6750 = vmatpush1.bf16.msra.mxu1 %v11060_v35  ;;  %v11135_v35 = vld [vmem:[%s15227_s5 + $0xe50] ss:$8 sps:$4 sm:$0xff]  }
 0x3a0   :  { %7570 = vmatpush1.bf16.msra.mxu0 %v11063_v49  ;;  %6751 = vmatprep.subr.bf16.mxu1 %v11068_v41  ;;  %v11143_v41 = vld [vmem:[%s15227_s5 + $0xe44] ss:$8 sps:$4 sm:$0xff]  }
 0x3a1   :  { %7571 = vmatprep.subr.bf16.mxu0 %v11071_v52  ;;  %v11138_v52 = vld [vmem:[%s15227_s5 + $0xb80] ss:$8 sps:$4 sm:$0xff]  }
 0x3a3   :  { %6752 = vmatpush1.bf16.msra.mxu1 %v11066_v6  ;;  %v11141_v6 = vld [vmem:[%s15227_s5 + $0xe40] ss:$8 sps:$4 sm:$0xff]  }
 0x3a4   :  { %7572 = vmatpush1.bf16.msra.mxu0 %v11069_v4  ;;  %6753 = vmatprep.subr.bf16.mxu1 %v11074_v56  ;;  %v11146_v4 = vld [vmem:[%s15227_s5 + $0xd74] ss:$8 sps:$4 sm:$0xff]  }
 0x3a5   :  { %7573 = vmatprep.subr.bf16.mxu0 %v11077_v59  ;;  %v11149_v56 = vld [vmem:[%s15227_s5 + $0xe34] ss:$8 sps:$4 sm:$0xff]   ;;  %v11144_v59 = vld [vmem:[%s15227_s5 + $0xd70] ss:$8 sps:$4 sm:$0xff]  }
 0x3a7   :  { %6754 = vmatpush1.bf16.msra.mxu1 %v11072_v44  ;;  %v11147_v44 = vld [vmem:[%s15227_s5 + $0xe30] ss:$8 sps:$4 sm:$0xff]  }
 0x3a8   :  { %7574 = vmatpush2.bf16.msra.mxu0 %v11075_v57  ;;  %6755 = vmatprep.subr.bf16.mxu1 %v11080_v22  ;;  %v11152_v57 = vld [vmem:[%s15227_s5 + $0xd64] ss:$8 sps:$4 sm:$0xff]  }
 0x3a9   :  { %7575 = vmatprep.subr.bf16.mxu0 %v11083_v32  ;;  %v11155_v22 = vld [vmem:[%s15227_s5 + $0xe24] ss:$8 sps:$4 sm:$0xff]  }
 0x3ab   :  { %6756 = vmatpush1.bf16.msra.mxu1 %v11078_v25 }
 0x3ac   :  { %7576 = vmatpush2.bf16.msra.mxu0 %v11081_v40  ;;  %6757 = vmatprep.subr.bf16.mxu1 %v11086_v1  ;;  %v11150_v40 = vld [vmem:[%s15227_s5 + $0xd60] ss:$8 sps:$4 sm:$0xff]  }
 0x3ad   :  { %7577 = vmatprep.subr.bf16.mxu0 %v11089_v3  ;;  %v11153_v3 = vld [vmem:[%s15227_s5 + $0xe20] ss:$8 sps:$4 sm:$0xff]  }
 0x3af   :  { %6758 = vmatpush1.bf16.msra.mxu1 %v11084_v8  ;;  %v11158_v8 = vld [vmem:[%s15227_s5 + $0xd54] ss:$8 sps:$4 sm:$0xff]  }
 0x3b0   :  { %7578 = vmatpush2.bf16.msra.mxu0 %v11087_v5  ;;  %6759 = vmatprep.subr.bf16.mxu1 %v11092_v33 }
 0x3b1   :  { %7579 = vmatprep.subr.bf16.mxu0 %v11095_v9  ;;  %v11156_v9 = vld [vmem:[%s15227_s5 + $0xd50] ss:$8 sps:$4 sm:$0xff]  }
 0x3b3   :  { %6760 = vmatpush1.bf16.msra.mxu1 %v11090_v12 }
 0x3b4   :  { %7580 = vmatpush2.bf16.msra.mxu0 %v11093_v19  ;;  %6761 = vmatprep.subr.bf16.mxu1 %v11098_v13  ;;  %v11164_v13 = vld [vmem:[%s15227_s5 + $0xd44] ss:$8 sps:$4 sm:$0xff]  }
 0x3b5   :  { %7581 = vmatprep.subr.bf16.mxu0 %v11101_v39  ;;  %v11167_v39 = vld [vmem:[%s15227_s5 + $0xe04] ss:$8 sps:$4 sm:$0xff]  }
 0x3b7   :  { %6762 = vmatpush2.bf16.msra.mxu1 %v11096_v17  ;;  %v11162_v17 = vld [vmem:[%s15227_s5 + $0xd40] ss:$8 sps:$4 sm:$0xff]  }
 0x3b8   :  { %7582 = vmatpush2.bf16.msra.mxu0 %v11099_v15  ;;  %6763 = vmatprep.subr.bf16.mxu1 %v11104_v31  ;;  %v11165_v15 = vld [vmem:[%s15227_s5 + $0xe00] ss:$8 sps:$4 sm:$0xff]   ;;  %v11170_v31 = vld [vmem:[%s15227_s5 + $0xd34] ss:$8 sps:$4 sm:$0xff]  }
 0x3b9   :  { %7583 = vmatprep.subr.bf16.mxu0 %v11107_v36  ;;  %v11173_v36 = vld [vmem:[%s15227_s5 + $0xef4] ss:$8 sps:$4 sm:$0xff]  }
 0x3bb   :  { %6764 = vmatpush2.bf16.msra.mxu1 %v11102_v55  ;;  %v11168_v55 = vld [vmem:[%s15227_s5 + $0xd30] ss:$8 sps:$4 sm:$0xff]  }
 0x3bc   :  { %7584 = vmatpush2.bf16.msra.mxu0 %v11105_v20  ;;  %6765 = vmatprep.subr.bf16.mxu1 %v11110_v51  ;;  %v11171_v20 = vld [vmem:[%s15227_s5 + $0xef0] ss:$8 sps:$4 sm:$0xff]   ;;  %v11176_v51 = vld [vmem:[%s15227_s5 + $0xd24] ss:$8 sps:$4 sm:$0xff]  }
 0x3bd   :  { %7585 = vmatprep.subr.bf16.mxu0 %v11113_v23  ;;  %v11179_v23 = vld [vmem:[%s15227_s5 + $0xee4] ss:$8 sps:$4 sm:$0xff]  }
 0x3bf   :  { %6766 = vmatpush2.bf16.msra.mxu1 %v11108_v24  ;;  %v11174_v24 = vld [vmem:[%s15227_s5 + $0xd20] ss:$8 sps:$4 sm:$0xff]  }
 0x3c0   :  { %7586 = vmatpush2.bf16.msra.mxu0 %v11111_v26  ;;  %6767 = vmatprep.subr.bf16.mxu1 %v11116_v27  ;;  %v11177_v26 = vld [vmem:[%s15227_s5 + $0xee0] ss:$8 sps:$4 sm:$0xff]   ;;  %v11182_v27 = vld [vmem:[%s15227_s5 + $0xd14] ss:$8 sps:$4 sm:$0xff]  }
 0x3c1   :  { %7587 = vmatprep.subr.bf16.mxu0 %v11119_v30  ;;  %v11185_v30 = vld [vmem:[%s15227_s5 + $0xed4] ss:$8 sps:$4 sm:$0xff]  }
 0x3c3   :  { %6768 = vmatpush2.bf16.msra.mxu1 %v11114_v53  ;;  %v11180_v53 = vld [vmem:[%s15227_s5 + $0xd10] ss:$8 sps:$4 sm:$0xff]  }
 0x3c4   :  { %7588 = vmatpush2.bf16.msra.mxu0 %v11117_v21  ;;  %6769 = vmatprep.subr.bf16.mxu1 %v11122_v60  ;;  %v11183_v21 = vld [vmem:[%s15227_s5 + $0xed0] ss:$8 sps:$4 sm:$0xff]   ;;  %v11188_v60 = vld [vmem:[%s15227_s5 + $0xd04] ss:$8 sps:$4 sm:$0xff]  }
 0x3c5   :  { %7639 = vmatprep.subr.bf16.mxu0 %v11125_v34  ;;  %v11191_v34 = vld [vmem:[%s15227_s5 + $0xec4] ss:$8 sps:$4 sm:$0xff]  }
 0x3c7   :  { %v5803_v42 = vpop.f32.mrf.mxu0  ;;  %6770 = vmatpush2.bf16.msra.mxu1 %v11120_v63  ;;  %7590 = vmatmul.mubr.bf16.vlgmr.msra.gmra.mxu0 %v13425_v28  ;;  %v11137_v28 = vld [vmem:[%s15227_s5 + $0xe54] ss:$8 sps:$4 sm:$0xff]   ;;  %v11186_v63 = vld [vmem:[%s15227_s5 + $0xd00] ss:$8 sps:$4 sm:$0xff]  }
 0x3c8   :  { %7640 = vmatpush1.bf16.msra.mxu0 %v11123_v45  ;;  %7671 = vmatprep.mubr.bf16.mxu0 %v13485_v7  ;;  %v11132_v7 = vld [vmem:[%s15227_s5 + $0xb90] ss:$8 sps:$4 sm:$0xff]   ;;  %v11189_v45 = vld [vmem:[%s15227_s5 + $0xec0] ss:$8 sps:$4 sm:$0xff]  }
 0x3c9   :  { %v5805_v2 = vpop.f32.mrf.mxu0  ;;  %6771 = vmatprep.subr.bf16.mxu1 %v11128_v43  ;;  %7641 = vmatprep.subr.bf16.mxu0 %v11131_v0  ;;  %v11194_v43 = vld [vmem:[%s15227_s5 + $0xdf4] ss:$8 sps:$4 sm:$0xff]  }
 0x3ca   :  { %v11197_v0 = vld [vmem:[%s15227_s5 + $0xeb4] ss:$8 sps:$4 sm:$0xff]  }
 0x3cb   :  { %v5807_v48 = vpop.f32.mrf.mxu0  ;;  %6772 = vmatpush2.bf16.msra.mxu1 %v11126_v46  ;;  %v11195_v46 = vld [vmem:[%s15227_s5 + $0xeb0] ss:$8 sps:$4 sm:$0xff]  }
 0x3cc   :  { %7642 = vmatpush1.bf16.msra.mxu0 %v11129_v62  ;;  %6773 = vmatprep.subr.bf16.mxu1 %v11134_v47  ;;  %v11200_v62 = vld [vmem:[%s15227_s5 + $0xde4] ss:$8 sps:$4 sm:$0xff]   ;;  %v11206_v48 = vld [vmem:[%s15227_s5 + $0xdd4] ss:$8 sps:$4 sm:$0xff]  }
 0x3cd   :  { %v5808_v49 = vpop.f32.mrf.mxu0  ;;  %7643 = vmatprep.subr.bf16.mxu0 %v11137_v28  ;;  %v11203_v47 = vld [vmem:[%s15227_s5 + $0xea4] ss:$8 sps:$4 sm:$0xff]   ;;  %v11201_v28 = vld [vmem:[%s15227_s5 + $0xea0] ss:$8 sps:$4 sm:$0xff]  }
 0x3ce   :  { %v11212_v49 = vld [vmem:[%s15227_s5 + $0xdc4] ss:$8 sps:$4 sm:$0xff]  }
 0x3cf   :  { %6774 = vmatpush2.bf16.msra.mxu1 %v11132_v7  ;;  %v11209_v7 = vld [vmem:[%s15227_s5 + $0xe94] ss:$8 sps:$4 sm:$0xff]  }
 0x3d0   :  { %7644 = vmatpush1.bf16.msra.mxu0 %v11135_v35  ;;  %6775 = vmatprep.subr.bf16.mxu1 %v11140_v16  ;;  %v11204_v35 = vld [vmem:[%s15227_s5 + $0xdd0] ss:$8 sps:$4 sm:$0xff]  }
 0x3d1   :  { %7645 = vmatprep.subr.bf16.mxu0 %v11143_v41  ;;  %v11207_v16 = vld [vmem:[%s15227_s5 + $0xe90] ss:$8 sps:$4 sm:$0xff]   ;;  %v11215_v41 = vld [vmem:[%s15227_s5 + $0xe84] ss:$8 sps:$4 sm:$0xff]  }
 0x3d3   :  { %6776 = vmatpush2.bf16.msra.mxu1 %v11138_v52  ;;  %v11210_v52 = vld [vmem:[%s15227_s5 + $0xdc0] ss:$8 sps:$4 sm:$0xff]  }
 0x3d4   :  { %7646 = vmatpush1.bf16.msra.mxu0 %v11141_v6  ;;  %7598 = vmatprep.subr.bf16.mxu1 %v11146_v4  ;;  %v11213_v6 = vld [vmem:[%s15227_s5 + $0xe80] ss:$8 sps:$4 sm:$0xff]   ;;  %v11218_v4 = vld [vmem:[%s15227_s5 + $0xdb4] ss:$8 sps:$4 sm:$0xff]  }
 0x3d5   :  { %7647 = vmatprep.subr.bf16.mxu0 %v11149_v56  ;;  %v11216_v56 = vld [vmem:[%s15227_s5 + $0xdb0] ss:$8 sps:$4 sm:$0xff]  }
 0x3d6   :  { %v5762_v32 = vpop.f32.mrf.mxu1  ;;  %6778 = vmatmul.mubr.bf16.vlgmr.msra.gmra.mxu1 %v13790_v58 }
 0x3d7   :  { %v5763_v25 = vadd.f32 %v5762_v32, %v14350_v14  ;;  %7599 = vmatpush1.bf16.msra.mxu1 %v11144_v59  ;;  %7630 = vmatprep.mubr.bf16.mxu1 %v13210_v54  ;;  %v11161_v54 = vld [vmem:[%s15227_s5 + $0xe14] ss:$8 sps:$4 sm:$0xff]   ;;  %v11221_v59 = vld [vmem:[%s15227_s5 + $0xda4] ss:$8 sps:$4 sm:$0xff]  }
 0x3d8   :  { %v5764_v1 = vpop.f32.mrf.mxu1  ;;  %7648 = vmatpush1.bf16.msra.mxu0 %v11147_v44  ;;  %7600 = vmatprep.subr.bf16.mxu1 %v11152_v57  ;;  %v11219_v57 = vld [vmem:[%s15227_s5 + $0xda0] ss:$8 sps:$4 sm:$0xff]  }
 0x3d9   :  { %v5765_v14 = vadd.f32 %v5764_v1, %v14357_v18  ;;  %7649 = vmatprep.subr.bf16.mxu0 %v11155_v22  ;;  %v14622_v5 = vadd.f32 %v5803_v42, %v5763_v25  ;;  %v11159_v18 = vld [vmem:[%s15227_s5 + $0xe10] ss:$8 sps:$4 sm:$0xff]   ;;  %v11224_v22 = vld [vmem:[%s15227_s5 + $0xd94] ss:$8 sps:$4 sm:$0xff]  }
 0x3da   :  { %v5766_v33 = vpop.f32.mrf.mxu1  ;;  %v11192_v42 = vld [vmem:[%s15227_s5 + $0xdf0] ss:$8 sps:$4 sm:$0xff]  }
 0x3db   :  { %7601 = vmatpush1.bf16.msra.mxu1 %v11150_v40  ;;  %v14627_v12 = vadd.f32 %v5805_v2, %v5765_v14  ;;  %v11198_v2 = vld [vmem:[%s15227_s5 + $0xde0] ss:$8 sps:$4 sm:$0xff]   ;;  %v11222_v40 = vld [vmem:[%s15227_s5 + $0xd90] ss:$8 sps:$4 sm:$0xff]  }
 0x3dc   :  { %v5767_v19 = vpop.f32.mrf.mxu1  ;;  %7650 = vmatpush1.bf16.msra.mxu0 %v11153_v3  ;;  %7602 = vmatprep.subr.bf16.mxu1 %v11158_v8  ;;  %v11225_v3 = vld [vmem:[%s15227_s5 + $0xd80] ss:$8 sps:$4 sm:$0xff]   ;;  %v11230_v8 = vld [vmem:[%s15227_s5 + $0xf74] ss:$8 sps:$4 sm:$0xff]   ;;  %v11228_v14 = vld [vmem:[%s15227_s5 + $0xf70] ss:$8 sps:$4 sm:$0xff]  }
 0x3dd   :  { %7651 = vmatprep.subr.bf16.mxu0 %v11161_v54  ;;  %v11233_v54 = vld [vmem:[%s15227_s5 + $0xf64] ss:$8 sps:$4 sm:$0xff]   ;;  %v11231_v19 = vld [vmem:[%s15227_s5 + $0xf60] ss:$8 sps:$4 sm:$0xff]  }
 0x3df   :  { %7603 = vmatpush1.bf16.msra.mxu1 %v11156_v9 }
 0x3e0   :  { %7652 = vmatpush1.bf16.msra.mxu0 %v11159_v18  ;;  %7604 = vmatprep.subr.bf16.mxu1 %v11164_v13  ;;  %v11236_v13 = vld [vmem:[%s15227_s5 + $0xf54] ss:$8 sps:$4 sm:$0xff]  }
 0x3e1   :  { %7653 = vmatprep.subr.bf16.mxu0 %v11167_v39 }
 0x3e3   :  { %7605 = vmatpush1.bf16.msra.mxu1 %v11162_v17  ;;  %v11234_v17 = vld [vmem:[%s15227_s5 + $0xf50] ss:$8 sps:$4 sm:$0xff]  }
 0x3e4   :  { %7654 = vmatpush1.bf16.msra.mxu0 %v11165_v15  ;;  %7606 = vmatprep.subr.bf16.mxu1 %v11170_v31  ;;  %v11239_v31 = vld [vmem:[%s15227_s5 + $0xf44] ss:$8 sps:$4 sm:$0xff]  }
 0x3e5   :  { %7655 = vmatprep.subr.bf16.mxu0 %v11173_v36  ;;  %v11242_v36 = vld [vmem:[%s15227_s5 + $0xf34] ss:$8 sps:$4 sm:$0xff]  }
 0x3e7   :  { %7607 = vmatpush1.bf16.msra.mxu1 %v11168_v55  ;;  %v11240_v55 = vld [vmem:[%s15227_s5 + $0xf30] ss:$8 sps:$4 sm:$0xff]  }
 0x3e8   :  { %7656 = vmatpush2.bf16.msra.mxu0 %v11171_v20  ;;  %7608 = vmatprep.subr.bf16.mxu1 %v11176_v51  ;;  %v11245_v20 = vld [vmem:[%s15227_s5 + $0xf24] ss:$8 sps:$4 sm:$0xff]   ;;  %v11243_v51 = vld [vmem:[%s15227_s5 + $0xf20] ss:$8 sps:$4 sm:$0xff]  }
 0x3e9   :  { %7657 = vmatprep.subr.bf16.mxu0 %v11179_v23  ;;  %v11248_v23 = vld [vmem:[%s15227_s5 + $0xf14] ss:$8 sps:$4 sm:$0xff]  }
 0x3eb   :  { %7609 = vmatpush1.bf16.msra.mxu1 %v11174_v24  ;;  %v11246_v24 = vld [vmem:[%s15227_s5 + $0xf10] ss:$8 sps:$4 sm:$0xff]  }
 0x3ec   :  { %7658 = vmatpush2.bf16.msra.mxu0 %v11177_v26  ;;  %7610 = vmatprep.subr.bf16.mxu1 %v11182_v27  ;;  %v11251_v26 = vld [vmem:[%s15227_s5 + $0xf04] ss:$8 sps:$4 sm:$0xff]   ;;  %v11249_v27 = vld [vmem:[%s15227_s5 + $0xf00] ss:$8 sps:$4 sm:$0xff]  }
 0x3ed   :  { %7659 = vmatprep.subr.bf16.mxu0 %v11185_v30  ;;  %v11254_v30 = vld [vmem:[%s15227_s5 + $0xff4] ss:$8 sps:$4 sm:$0xff]  }
 0x3ef   :  { %7611 = vmatpush1.bf16.msra.mxu1 %v11180_v53  ;;  %v11252_v53 = vld [vmem:[%s15227_s5 + $0xff0] ss:$8 sps:$4 sm:$0xff]  }
 0x3f0   :  { %7660 = vmatpush2.bf16.msra.mxu0 %v11183_v21  ;;  %7612 = vmatprep.subr.bf16.mxu1 %v11188_v60  ;;  %v11257_v21 = vld [vmem:[%s15227_s5 + $0xfe4] ss:$8 sps:$4 sm:$0xff]   ;;  %v11255_v60 = vld [vmem:[%s15227_s5 + $0xfe0] ss:$8 sps:$4 sm:$0xff]  }
 0x3f1   :  { %7661 = vmatprep.subr.bf16.mxu0 %v11191_v34  ;;  %v11260_v34 = vld [vmem:[%s15227_s5 + $0xfd4] ss:$8 sps:$4 sm:$0xff]  }
 0x3f3   :  { %7613 = vmatpush1.bf16.msra.mxu1 %v11186_v63  ;;  %v11258_v63 = vld [vmem:[%s15227_s5 + $0xfd0] ss:$8 sps:$4 sm:$0xff]  }
 0x3f4   :  { %7662 = vmatpush2.bf16.msra.mxu0 %v11189_v45  ;;  %7614 = vmatprep.subr.bf16.mxu1 %v11194_v43  ;;  %v11263_v45 = vld [vmem:[%s15227_s5 + $0xfc4] ss:$8 sps:$4 sm:$0xff]   ;;  %v11261_v43 = vld [vmem:[%s15227_s5 + $0xfc0] ss:$8 sps:$4 sm:$0xff]  }
 0x3f5   :  { %7663 = vmatprep.subr.bf16.mxu0 %v11197_v0  ;;  %v11266_v0 = vld [vmem:[%s15227_s5 + $0xfb4] ss:$8 sps:$4 sm:$0xff]  }
 0x3f7   :  { %7615 = vmatpush2.bf16.msra.mxu1 %v11192_v42  ;;  %v11264_v42 = vld [vmem:[%s15227_s5 + $0xfb0] ss:$8 sps:$4 sm:$0xff]  }
 0x3f8   :  { %7664 = vmatpush2.bf16.msra.mxu0 %v11195_v46  ;;  %7616 = vmatprep.subr.bf16.mxu1 %v11200_v62  ;;  %v11269_v46 = vld [vmem:[%s15227_s5 + $0xfa4] ss:$8 sps:$4 sm:$0xff]  }
 0x3f9   :  { %7665 = vmatprep.subr.bf16.mxu0 %v11203_v47  ;;  %v11267_v47 = vld [vmem:[%s15227_s5 + $0xfa0] ss:$8 sps:$4 sm:$0xff]  }
 0x3fb   :  { %7617 = vmatpush2.bf16.msra.mxu1 %v11198_v2  ;;  %v11272_v2 = vld [vmem:[%s15227_s5 + $0xf94] ss:$8 sps:$4 sm:$0xff]  }
 0x3fc   :  { %7666 = vmatpush2.bf16.msra.mxu0 %v11201_v28  ;;  %7618 = vmatprep.subr.bf16.mxu1 %v11206_v48 }
 0x3fd   :  { %7667 = vmatprep.subr.bf16.mxu0 %v11209_v7  ;;  %v11270_v7 = vld [vmem:[%s15227_s5 + $0xf90] ss:$8 sps:$4 sm:$0xff]  }
 0x3ff   :  { %7619 = vmatpush2.bf16.msra.mxu1 %v11204_v35  ;;  %v11275_v35 = vld [vmem:[%s15227_s5 + $0xf84] ss:$8 sps:$4 sm:$0xff]  }
 0x400   :  { %7668 = vmatpush2.bf16.msra.mxu0 %v11207_v16  ;;  %7620 = vmatprep.subr.bf16.mxu1 %v11212_v49  ;;  %v11273_v49 = vld [vmem:[%s15227_s5 + $0xf80] ss:$8 sps:$4 sm:$0xff]  }
 0x401   :  { %7669 = vmatprep.subr.bf16.mxu0 %v11215_v41 }
 0x403   :  { %7621 = vmatpush2.bf16.msra.mxu1 %v11210_v52 }
 0x404   :  { %7670 = vmatpush2.bf16.msra.mxu0 %v11213_v6  ;;  %7622 = vmatprep.subr.bf16.mxu1 %v11218_v4 }
 0x407   :  { %v14749_v44 = vpop.f32.mrf.mxu0  ;;  %7623 = vmatpush2.bf16.msra.mxu1 %v11216_v56  ;;  %7672 = vmatmul.mubr.bf16.vlgmr.msra.gmra.mxu0 %v13642_v10  ;;  %v11227_v10 = vld [vmem:[%s15227_s5 + $0xd84] ss:$8 sps:$4 sm:$0xff]  }
 0x408   :  { %7624 = vmatprep.subr.bf16.mxu1 %v11221_v59 }
 0x409   :  { %v14758_v32 = vpop.f32.mrf.mxu0 }
 0x40b   :  { %v6660_v25 = vpop.f32.mrf.mxu0  ;;  %7625 = vmatpush2.bf16.msra.mxu1 %v11219_v57 }
 0x40c   :  { %7626 = vmatprep.subr.bf16.mxu1 %v11224_v22  ;;  %v11276_v25 = vld [vmem:[%s15228_s6 + $0x70] ss:$8 sps:$4 sm:$0xff]  }
 0x40d   :  { %v6661_v1 = vpop.f32.mrf.mxu0 }
 0x40e   :  { %v11287_v1 = vld [vmem:[%s15228_s6 + $0x44] ss:$8 sps:$4 sm:$0xff]  }
 0x40f   :  { %7627 = vmatpush2.bf16.msra.mxu1 %v11222_v40  ;;  %v11278_v40 = vld [vmem:[%s15228_s6 + $0x74] ss:$8 sps:$4 sm:$0xff]  }
 0x410   :  { %7628 = vmatprep.subr.bf16.mxu1 %v11227_v10  ;;  %7929 = vmatprep.subr.bf16.mxu0 %v11278_v40  ;;  %v11282_v10 = vld [vmem:[%s15228_s6 + $0x50] ss:$8 sps:$4 sm:$0xff]  }
 0x411   :  { %7930 = vmatpush1.bf16.msra.mxu0 %v11276_v25 }
 0x413   :  { %7629 = vmatpush2.bf16.msra.mxu1 %v11225_v3  ;;  %v11285_v3 = vld [vmem:[%s15228_s6 + $0x40] ss:$8 sps:$4 sm:$0xff]  }
 0x414   :  { %7680 = vmatprep.subr.bf16.mxu1 %v11230_v8  ;;  %v11290_v8 = vld [vmem:[%s15228_s6 + $0x34] ss:$8 sps:$4 sm:$0xff]  }
 0x416   :  { %v5844_v33 = vpop.f32.mrf.mxu1  ;;  %7631 = vmatmul.mubr.bf16.vlgmr.msra.gmra.mxu1 %v13433_v50 }
 0x417   :  { %v14780_v9 = vadd.f32 %v5844_v33, %v14622_v5  ;;  %7681 = vmatpush1.bf16.msra.mxu1 %v11228_v14  ;;  %7712 = vmatprep.mubr.bf16.mxu1 %v13785_v38  ;;  %v11288_v14 = vld [vmem:[%s15228_s6 + $0x30] ss:$8 sps:$4 sm:$0xff]   ;;  %v11291_v33 = vld [vmem:[%s15228_s6 + $0x20] ss:$8 sps:$4 sm:$0xff]  }
 0x418   :  { %v5846_v18 = vpop.f32.mrf.mxu1  ;;  %7682 = vmatprep.subr.bf16.mxu1 %v11233_v54  ;;  %v11293_v54 = vld [vmem:[%s15228_s6 + $0x24] ss:$8 sps:$4 sm:$0xff]  }
 0x419   :  { %v5851_v39 = vmax.f32 %v14406_v11, %v14780_v9  ;;  %v14792_v50 = vadd.f32 %v5846_v18, %v14627_v12  ;;  %v11237_v12 = vld [vmem:[%s15227_s5 + $0xf40] ss:$8 sps:$4 sm:$0xff]   ;;  %v11294_v18 = vld [vmem:[%s15228_s6 + $0x10] ss:$8 sps:$4 sm:$0xff]  }
 0x41a   :  { %v5848_v5 = vpop.f32.mrf.mxu1  ;;  %v11324_v11 = vld [vmem:[%s15232_s10 + $0x78] sm:$0xff]  }
 0x41b   :  { %v5852_v38 = vmax.f32 %v14419_v61, %v14792_v50  ;;  %7683 = vmatpush1.bf16.msra.mxu1 %v11231_v19  ;;  %v11296_v19 = vld [vmem:[%s15228_s6 + $0x14] ss:$8 sps:$4 sm:$0xff]   ;;  %v11297_v5 = vld [vmem:[%s15228_s6] ss:$8 sps:$4 sm:$0xff]  }
 0x41c   :  { %v5849_v15 = vpop.f32.mrf.mxu1  ;;  %7684 = vmatprep.subr.bf16.mxu1 %v11236_v13  ;;  %v11299_v13 = vld [vmem:[%s15228_s6 + $0x4] ss:$8 sps:$4 sm:$0xff]   ;;  %v11325_v61 = vld [vmem:[%s15232_s10 + $0x38] sm:$0xff]   ;;  %v11329_v50 = vld [vmem:[%s15232_s10 + $0x30] sm:$0xff]  }
 0x41d   :  { %v11300_v15 = vld [vmem:[%s15228_s6 + $0xf0] ss:$8 sps:$4 sm:$0xff]  }
 0x41e   :  { %v11326_v9 = vld [vmem:[%s15232_s10 + $0x178] sm:$0xff]  }
 0x41f   :  { %7685 = vmatpush1.bf16.msra.mxu1 %v11234_v17  ;;  %v11302_v17 = vld [vmem:[%s15228_s6 + $0xf4] ss:$8 sps:$4 sm:$0xff]  }
 0x420   :  { %7686 = vmatprep.subr.bf16.mxu1 %v11239_v31  ;;  %v11305_v31 = vld [vmem:[%s15228_s6 + $0xe4] ss:$8 sps:$4 sm:$0xff]  }
 0x423   :  { %7687 = vmatpush1.bf16.msra.mxu1 %v11237_v12  ;;  %v11303_v12 = vld [vmem:[%s15228_s6 + $0xe0] ss:$8 sps:$4 sm:$0xff]  }
 0x424   :  { %7688 = vmatprep.subr.bf16.mxu1 %v11242_v36  ;;  %v11308_v36 = vld [vmem:[%s15228_s6 + $0xd4] ss:$8 sps:$4 sm:$0xff]  }
 0x427   :  { %7689 = vmatpush1.bf16.msra.mxu1 %v11240_v55  ;;  %v11306_v55 = vld [vmem:[%s15228_s6 + $0xd0] ss:$8 sps:$4 sm:$0xff]  }
 0x428   :  { %7690 = vmatprep.subr.bf16.mxu1 %v11245_v20  ;;  %v11311_v20 = vld [vmem:[%s15228_s6 + $0xc4] ss:$8 sps:$4 sm:$0xff]  }
 0x42b   :  { %7691 = vmatpush1.bf16.msra.mxu1 %v11243_v51 }
 0x42c   :  { %7692 = vmatprep.subr.bf16.mxu1 %v11248_v23  ;;  %v11309_v23 = vld [vmem:[%s15228_s6 + $0xc0] ss:$8 sps:$4 sm:$0xff]  }
 0x42f   :  { %7693 = vmatpush1.bf16.msra.mxu1 %v11246_v24  ;;  %v11314_v24 = vld [vmem:[%s15228_s6 + $0xb4] ss:$8 sps:$4 sm:$0xff]  }
 0x430   :  { %7694 = vmatprep.subr.bf16.mxu1 %v11251_v26 }
 0x433   :  { %7695 = vmatpush1.bf16.msra.mxu1 %v11249_v27 }
 0x434   :  { %7696 = vmatprep.subr.bf16.mxu1 %v11254_v30  ;;  %v11312_v30 = vld [vmem:[%s15228_s6 + $0xb0] ss:$8 sps:$4 sm:$0xff]  }
 0x437   :  { %7697 = vmatpush2.bf16.msra.mxu1 %v11252_v53  ;;  %v11317_v53 = vld [vmem:[%s15228_s6 + $0xa4] ss:$8 sps:$4 sm:$0xff]  }
 0x438   :  { %7698 = vmatprep.subr.bf16.mxu1 %v11257_v21 }
 0x43b   :  { %7699 = vmatpush2.bf16.msra.mxu1 %v11255_v60  ;;  %v11315_v60 = vld [vmem:[%s15228_s6 + $0xa0] ss:$8 sps:$4 sm:$0xff]  }
 0x43c   :  { %7700 = vmatprep.subr.bf16.mxu1 %v11260_v34 }
 0x43f   :  { %7701 = vmatpush2.bf16.msra.mxu1 %v11258_v63 }
 0x440   :  { %7702 = vmatprep.subr.bf16.mxu1 %v11263_v45  ;;  %v11320_v45 = vld [vmem:[%s15228_s6 + $0x94] ss:$8 sps:$4 sm:$0xff]  }
 0x443   :  { %7703 = vmatpush2.bf16.msra.mxu1 %v11261_v43 }
 0x444   :  { %7704 = vmatprep.subr.bf16.mxu1 %v11266_v0  ;;  %v11318_v0 = vld [vmem:[%s15228_s6 + $0x90] ss:$8 sps:$4 sm:$0xff]  }
 0x447   :  { %v6738_v62 = vpop.f32.mrf.mxu0  ;;  %7705 = vmatpush2.bf16.msra.mxu1 %v11264_v42 }
 0x448   :  { %7706 = vmatprep.subr.bf16.mxu1 %v11269_v46 }
 0x449   :  { %v6740_v28 = vpop.f32.mrf.mxu0 }
 0x44b   :  { %v6742_v48 = vpop.f32.mrf.mxu0  ;;  %7707 = vmatpush2.bf16.msra.mxu1 %v11267_v47 }
 0x44c   :  { %7708 = vmatprep.subr.bf16.mxu1 %v11272_v2  ;;  %v11323_v2 = vld [vmem:[%s15228_s6 + $0x84] ss:$8 sps:$4 sm:$0xff]   ;;  %v11321_v48 = vld [vmem:[%s15228_s6 + $0x80] ss:$8 sps:$4 sm:$0xff]  }
 0x44d   :  { %v6743_v16 = vpop.f32.mrf.mxu0 }
 0x44e   :  { %v11337_v16 = vld [vmem:[%s15232_s10 + $0x20] sm:$0xff]  }
 0x44f   :  { %7709 = vmatpush2.bf16.msra.mxu1 %v11270_v7  ;;  %v11333_v7 = vld [vmem:[%s15232_s10 + $0x28] sm:$0xff]  }
 0x450   :  { %7710 = vmatprep.subr.bf16.mxu1 %v11275_v35  ;;  %v11336_v35 = vld [vmem:[%s15232_s10 + $0x60] sm:$0xff]  }
 0x453   :  { %7711 = vmatpush2.bf16.msra.mxu1 %v11273_v49  ;;  %v11340_v49 = vld [vmem:[%s15232_s10 + $0x58] sm:$0xff]  }
 0x454   :  { %10397 = vmatprep.subr.bf16.mxu1 %v11324_v11  ;;  %v7986_v11 = vld [vmem:[%s15231_s9] sm:$0x3] }
 0x456   :  { %v6697_v41 = vpop.f32.mrf.mxu1  ;;  %7713 = vmatmul.mubr.bf16.vlgmr.msra.gmra.mxu1 %v13790_v58  ;;  %v11281_v58 = vld [vmem:[%s15228_s6 + $0x64] ss:$8 sps:$4 sm:$0xff]  }
 0x457   :  { %v6698_v52 = vadd.f32 %v6697_v41, %v14749_v44  ;;  %v11279_v44 = vld [vmem:[%s15228_s6 + $0x60] ss:$8 sps:$4 sm:$0xff]   ;;  %7931 = vmatprep.subr.bf16.mxu0 %v11281_v58  ;;  %10398 = vmatpush3.bf16.msra.mxu1 %v11325_v61  ;;  %v11341_v41 = vld [vmem:[%s15232_s10 + $0x18] sm:$0xff]  }
 0x458   :  { %v6699_v6 = vpop.f32.mrf.mxu1  ;;  %7932 = vmatpush1.bf16.msra.mxu0 %v11279_v44 }
 0x459   :  { %v6700_v4 = vadd.f32 %v6699_v6, %v14758_v32  ;;  %v14880_v56 = vadd.f32 %v6738_v62, %v6698_v52  ;;  %v11284_v32 = vld [vmem:[%s15228_s6 + $0x54] ss:$8 sps:$4 sm:$0xff]  }
 0x45a   :  { %v6701_v59 = vpop.f32.mrf.mxu1  ;;  %7933 = vmatprep.subr.bf16.mxu0 %v11284_v32 }
 0x45b   :  { %v14882_v57 = vadd.f32 %v6740_v28, %v6700_v4 }
 0x45c   :  { %v6702_v22 = vpop.f32.mrf.mxu1  ;;  %7934 = vmatpush1.bf16.msra.mxu0 %v11282_v10 }
 0x45d   :  { %7935 = vmatprep.subr.bf16.mxu0 %v11287_v1 }
 0x460   :  { %7936 = vmatpush1.bf16.msra.mxu0 %v11285_v3 }
 0x461   :  { %7937 = vmatprep.subr.bf16.mxu0 %v11290_v8 }
 0x464   :  { %7938 = vmatpush1.bf16.msra.mxu0 %v11288_v14 }
 0x465   :  { %7939 = vmatprep.subr.bf16.mxu0 %v11293_v54 }
 0x468   :  { %7940 = vmatpush1.bf16.msra.mxu0 %v11291_v33 }
 0x469   :  { %7941 = vmatprep.subr.bf16.mxu0 %v11296_v19 }
 0x46c   :  { %7942 = vmatpush1.bf16.msra.mxu0 %v11294_v18 }
 0x46d   :  { %7943 = vmatprep.subr.bf16.mxu0 %v11299_v13  ;;  %v11327_v13 = vld [vmem:[%s15232_s10 + $0x138] sm:$0xff]  }
 0x470   :  { %7944 = vmatpush1.bf16.msra.mxu0 %v11297_v5 }
 0x471   :  { %7945 = vmatprep.subr.bf16.mxu0 %v11302_v17  ;;  %v11330_v17 = vld [vmem:[%s15232_s10 + $0x170] sm:$0xff]  }
 0x474   :  { %7946 = vmatpush2.bf16.msra.mxu0 %v11300_v15  ;;  %v11331_v15 = vld [vmem:[%s15232_s10 + $0x130] sm:$0xff]  }
 0x475   :  { %7947 = vmatprep.subr.bf16.mxu0 %v11305_v31  ;;  %v11334_v31 = vld [vmem:[%s15232_s10 + $0x168] sm:$0xff]  }
 0x478   :  { %7948 = vmatpush2.bf16.msra.mxu0 %v11303_v12  ;;  %v11335_v12 = vld [vmem:[%s15232_s10 + $0x128] sm:$0xff]  }
 0x479   :  { %7949 = vmatprep.subr.bf16.mxu0 %v11308_v36  ;;  %v11338_v36 = vld [vmem:[%s15232_s10 + $0x160] sm:$0xff]  }
 0x47c   :  { %7950 = vmatpush2.bf16.msra.mxu0 %v11306_v55  ;;  %v11339_v55 = vld [vmem:[%s15232_s10 + $0x120] sm:$0xff]  }
 0x47d   :  { %7951 = vmatprep.subr.bf16.mxu0 %v11311_v20  ;;  %v11342_v20 = vld [vmem:[%s15232_s10 + $0x158] sm:$0xff]  }
 0x480   :  { %7952 = vmatpush2.bf16.msra.mxu0 %v11309_v23  ;;  %v11344_v23 = vld [vmem:[%s15232_s10 + $0x50] sm:$0xff]  }
 0x481   :  { %7953 = vmatprep.subr.bf16.mxu0 %v11314_v24  ;;  %v11345_v24 = vld [vmem:[%s15232_s10 + $0x10] sm:$0xff]  }
 0x484   :  { %7954 = vmatpush2.bf16.msra.mxu0 %v11312_v30  ;;  %v11348_v30 = vld [vmem:[%s15232_s10 + $0x48] sm:$0xff]  }
 0x485   :  { %7955 = vmatprep.subr.bf16.mxu0 %v11317_v53  ;;  %v11349_v53 = vld [vmem:[%s15232_s10 + $0x8] sm:$0xff]  }
 0x487   :  { %v7591_v51 = vpop.f32.mrf.mxu0 }
 0x488   :  { %7956 = vmatpush2.bf16.msra.mxu0 %v11315_v60  ;;  %v11351_v60 = vld [vmem:[%s15232_s10 + $0x108] sm:$0xff]  }
 0x489   :  { %v7593_v26 = vpop.f32.mrf.mxu0  ;;  %7957 = vmatprep.subr.bf16.mxu0 %v11320_v45  ;;  %v11354_v45 = vld [vmem:[%s15232_s10 + $0x140] sm:$0xff]  }
 0x48b   :  { %v7595_v27 = vpop.f32.mrf.mxu0 }
 0x48c   :  { %7958 = vmatpush2.bf16.msra.mxu0 %v11318_v0  ;;  %v11347_v27 = vld [vmem:[%s15232_s10 + $0x110] sm:$0xff]   ;;  %v11356_v0 = vld [vmem:[%s15232_s10 + $0xf8] sm:$0xff]  }
 0x48d   :  { %v7596_v21 = vpop.f32.mrf.mxu0  ;;  %7959 = vmatprep.subr.bf16.mxu0 %v11323_v2 }
 0x48e   :  { %v11350_v21 = vld [vmem:[%s15232_s10 + $0x148] sm:$0xff]  }
 0x490   :  { %7960 = vmatpush2.bf16.msra.mxu0 %v11321_v48 }
 0x491   :  { %10441 = vmatprep.subr.bf16.mxu0 %v11326_v9 }
 0x496   :  { %v6779_v34 = vpop.f32.mrf.mxu1 }
 0x497   :  { %v6780_v63 = vadd.f32 %v6779_v34, %v14880_v56  ;;  %v11352_v34 = vld [vmem:[%s15232_s10 + $0x40] sm:$0xff]  }
 0x498   :  { %v6781_v43 = vpop.f32.mrf.mxu1 }
 0x499   :  { %v6786_v42 = vmax.f32 %v5851_v39, %v6780_v63  ;;  %v6782_v46 = vadd.f32 %v6781_v43, %v14882_v57  ;;  %v11328_v39 = vld [vmem:[%s15232_s10 + $0x70] sm:$0xff]   ;;  %v11353_v63 = vld [vmem:[%s15232_s10] sm:$0xff]  }
 0x49a   :  { %v6783_v62 = vpop.f32.mrf.mxu1  ;;  %10399 = vmatprep.subr.bf16.mxu1 %v11328_v39  ;;  %v11355_v43 = vld [vmem:[%s15232_s10 + $0x100] sm:$0xff]  }
 0x49b   :  { %v6787_v47 = vmax.f32 %v5852_v38, %v6782_v46  ;;  %v11332_v38 = vld [vmem:[%s15232_s10 + $0x68] sm:$0xff]   ;;  %10400 = vmatpush3.bf16.msra.mxu1 %v11329_v50  ;;  %v7972_v62 = vld [vmem:[%s15230_s8] sm:$0x3] }
 0x49c   :  { %v6784_v28 = vpop.f32.mrf.mxu1  ;;  %10401 = vmatprep.subr.bf16.mxu1 %v11332_v38  ;;  %v7977_v48 = vrot.slane %v7972_v62, %v12347_v29  ;;  %v7981_v50 = vrot.slane %v7972_v62, %v12359_v37  ;;  %v7991_v38 = vrot.slane %v7986_v11, %v12347_v29 }
 0x49f   :  { %10402 = vmatpush3.bf16.msra.mxu1 %v11333_v7 }
 0x4a0   :  { %10403 = vmatprep.subr.bf16.mxu1 %v11336_v35 }
 0x4a3   :  { %10404 = vmatpush3.bf16.msra.mxu1 %v11337_v16 }
 0x4a4   :  { %10405 = vmatprep.subr.bf16.mxu1 %v11340_v49  ;;  %v7995_v49 = vrot.slane %v7986_v11, %v12359_v37 }
 0x4a7   :  { %10406 = vmatpush3.bf16.msra.mxu1 %v11341_v41 }
 0x4a8   :  { %10407 = vmatprep.subr.bf16.mxu1 %v11344_v23  ;;  %v11385_v23 = vld [vmem:[%s15232_s10 + $0x188] sm:$0xff]  }
 0x4ab   :  { %10408 = vmatpush3.bf16.msra.mxu1 %v11345_v24  ;;  %v11386_v24 = vld [vmem:[%s15232_s10 + $0x1c0] sm:$0xff]  }
 0x4ac   :  { %10409 = vmatprep.subr.bf16.mxu1 %v11348_v30  ;;  %v11421_v30 = vmov 0.0  }
 0x4af   :  { %10410 = vmatpush3.bf16.msra.mxu1 %v11349_v53  ;;  %v11389_v53 = vld [vmem:[%s15233_s11 + $0x10] sm:$0xff]  }
 0x4b0   :  { %10411 = vmatprep.subr.bf16.mxu1 %v11352_v34 }
 0x4b3   :  { %10412 = vmatpush3.bf16.msra.mxu1 %v11353_v63 }
 0x4b4   :  { %10419 = vmatprep.subr.bf16.mxu1 %v11356_v0 }
 0x4c7   :  { %v7673_v52 = vpop.f32.mrf.mxu0 }
 0x4c9   :  { %v7675_v6 = vpop.f32.mrf.mxu0 }
 0x4cb   :  { %v7677_v4 = vpop.f32.mrf.mxu0 }
 0x4cd   :  { %v7678_v56 = vpop.f32.mrf.mxu0 }
 0x4d6   :  { %v7632_v59 = vpop.f32.mrf.mxu1 }
 0x4d7   :  { %v7633_v40 = vadd.f32 %v7632_v59, %v7591_v51  ;;  %v11343_v51 = vld [vmem:[%s15232_s10 + $0x118] sm:$0xff]  }
 0x4d8   :  { %v7634_v57 = vpop.f32.mrf.mxu1  ;;  %v11357_v59 = vld [vmem:[%s15232_s10 + $0xb8] sm:$0xff]  }
 0x4d9   :  { %v7635_v58 = vadd.f32 %v7634_v57, %v7593_v26  ;;  %v7674_v44 = vadd.f32 %v7673_v52, %v7633_v40  ;;  %v11346_v26 = vld [vmem:[%s15232_s10 + $0x150] sm:$0xff]   ;;  %v11362_v40 = vld [vmem:[%s15232_s10 + $0xe0] sm:$0xff]  }
 0x4da   :  { %v7636_v22 = vpop.f32.mrf.mxu1 }
 0x4db   :  { %v7676_v1 = vadd.f32 %v7675_v6, %v7635_v58  ;;  %v11360_v22 = vld [vmem:[%s15232_s10 + $0xe8] sm:$0xff]   ;;  %v11363_v58 = vld [vmem:[%s15232_s10 + $0xa0] sm:$0xff]  }
 0x4dc   :  { %v7637_v25 = vpop.f32.mrf.mxu1 }
 0x4dd   :  { %v11361_v25 = vld [vmem:[%s15232_s10 + $0xa8] sm:$0xff]  }
 0x516   :  { %v7714_v32 = vpop.f32.mrf.mxu1 }
 0x517   :  { %v7715_v10 = vadd.f32 %v7714_v32, %v7674_v44  ;;  %v11364_v44 = vld [vmem:[%s15232_s10 + $0xd8] sm:$0xff]  }
 0x518   :  { %v7716_v3 = vpop.f32.mrf.mxu1  ;;  %v11365_v32 = vld [vmem:[%s15232_s10 + $0x98] sm:$0xff]  }
 0x519   :  { %v7721_v8 = vmax.f32 %v6786_v42, %v7715_v10  ;;  %v7717_v14 = vadd.f32 %v7716_v3, %v7676_v1  ;;  %v7757_v42 = vld [vmem:[%s15229_s7] sm:$0x3]  ;;  %v11366_v10 = vld [vmem:[%s15232_s10 + $0xd0] sm:$0xff]   ;;  %v11368_v3 = vld [vmem:[%s15232_s10 + $0xc8] sm:$0xff]  }
 0x51a   :  { %v7718_v54 = vpop.f32.mrf.mxu1  ;;  %v7762_v46 = vrot.slane %v7757_v42, %v12347_v29  ;;  %v11358_v29 = vld [vmem:[%s15232_s10 + $0xf0] sm:$0xff]  }
 0x51b   :  { %v7722_v33 = vmax.f32 %v6787_v47, %v7717_v14  ;;  %v7723_v5 = vpack.c.bf16 %v7721_v8, %v7721_v8  ;;  %v7766_v47 = vrot.slane %v7757_v42, %v12359_v37  ;;  %v11359_v37 = vld [vmem:[%s15232_s10 + $0xb0] sm:$0xff]   ;;  %v11369_v8 = vld [vmem:[%s15232_s10 + $0x88] sm:$0xff]   ;;  %v11370_v14 = vld [vmem:[%s15232_s10 + $0xc0] sm:$0xff]  }
 0x51c   :  { %v7719_v19 = vpop.f32.mrf.mxu1  ;;  %v11367_v1 = vld [vmem:[%s15232_s10 + $0x90] sm:$0xff]   ;;  %v11371_v54 = vld [vmem:[%s15232_s10 + $0x80] sm:$0xff]  }
 0x51d   :  { %v7724_v18 = vpack.c.bf16 %v7722_v33, %v7722_v33  ;;  %v11372_v33 = vld [vmem:[%s15232_s10 + $0x1f8] sm:$0xff]  }
 0x51e   :  { %v11373_v19 = vld [vmem:[%s15232_s10 + $0x1b8] sm:$0xff]  }
 0x51f   :  { %7961 = vmatprep.mubr.bf16.mxu0 %v7724_v18  ;;  %v11374_v18 = vld [vmem:[%s15232_s10 + $0x1f0] sm:$0xff]  }
 0x520   :  { %7962 = vmatmul.mubr.bf16.vlgmr.msra.gmra.mxu0 %v7723_v5  ;;  %v11376_v5 = vld [vmem:[%s15232_s10 + $0x1e8] sm:$0xff]  }
 0x521   :  { %10442 = vmatpush3.bf16.msra.mxu0 %v11327_v13  ;;  %v11375_v13 = vld [vmem:[%s15232_s10 + $0x1b0] sm:$0xff]  }
 0x522   :  { %10443 = vmatprep.subr.bf16.mxu0 %v11330_v17  ;;  %v11377_v17 = vld [vmem:[%s15232_s10 + $0x1a8] sm:$0xff]  }
 0x525   :  { %10444 = vmatpush3.bf16.msra.mxu0 %v11331_v15  ;;  %v11378_v15 = vld [vmem:[%s15232_s10 + $0x1e0] sm:$0xff]  }
 0x526   :  { %10445 = vmatprep.subr.bf16.mxu0 %v11334_v31  ;;  %v11379_v31 = vld [vmem:[%s15232_s10 + $0x1a0] sm:$0xff]  }
 0x529   :  { %10446 = vmatpush3.bf16.msra.mxu0 %v11335_v12  ;;  %v11380_v12 = vld [vmem:[%s15232_s10 + $0x1d8] sm:$0xff]  }
 0x52a   :  { %10447 = vmatprep.subr.bf16.mxu0 %v11338_v36  ;;  %v11381_v36 = vld [vmem:[%s15232_s10 + $0x198] sm:$0xff]  }
 0x52d   :  { %10448 = vmatpush3.bf16.msra.mxu0 %v11339_v55  ;;  %v11382_v55 = vld [vmem:[%s15232_s10 + $0x1d0] sm:$0xff]  }
 0x52e   :  { %10449 = vmatprep.subr.bf16.mxu0 %v11342_v20  ;;  %v11383_v20 = vld [vmem:[%s15232_s10 + $0x190] sm:$0xff]  }
 0x531   :  { %10450 = vmatpush3.bf16.msra.mxu0 %v11343_v51  ;;  %v11384_v51 = vld [vmem:[%s15232_s10 + $0x1c8] sm:$0xff]  }
 0x532   :  { %10451 = vmatprep.subr.bf16.mxu0 %v11346_v26  ;;  %v11387_v26 = vld [vmem:[%s15232_s10 + $0x180] sm:$0xff]  }
 0x535   :  { %10452 = vmatpush3.bf16.msra.mxu0 %v11347_v27  ;;  %v11388_v27 = vld [vmem:[%s15233_s11 + $0x18] sm:$0xff]  }
 0x536   :  { %10453 = vmatprep.subr.bf16.mxu0 %v11350_v21  ;;  %v11390_v21 = vld [vmem:[%s15233_s11 + $0x8] sm:$0xff]  }
 0x539   :  { %10454 = vmatpush3.bf16.msra.mxu0 %v11351_v60  ;;  %v11391_v60 = vld [vmem:[%s15233_s11] sm:$0xff]  }
 0x53a   :  { %10455 = vmatprep.subr.bf16.mxu0 %v11354_v45 }
 0x53d   :  { %10456 = vmatpush3.bf16.msra.mxu0 %v11355_v43 }
 0x53e   :  { %10490 = vmatprep.subr.bf16.mxu0 %v11421_v30 }
 0x5e0   :  { %v7963_v2 = vpop.f32.mrf.mxu0 }
 0x5e1   :  { %v7964_v28 = vadd.f32 %v7963_v2, %v7762_v46 }
 0x5e2   :  { %v7965_v61 = vpop.f32.mrf.mxu0 }
 0x5e3   :  { %v7970_v9 = vmax.f32 %v7964_v28, 0.0  ;;  %v7966_v39 = vadd.f32 %v7965_v61, %v7766_v47 }
 0x5e4   :  { %v7967_v7 = vpop.f32.mrf.mxu0 }
 0x5e5   :  { %v7984_v35 = vmul.f32 %v7977_v48, %v7970_v9  ;;  %v7971_v16 = vmax.f32 %v7966_v39, 0.0 }
 0x5e6   :  { %v7968_v41 = vpop.f32.mrf.mxu0 }
 0x5e7   :  { %v7985_v52 = vmul.f32 %v7981_v50, %v7971_v16  ;;  %v7998_v6 = vadd.f32 %v7991_v38, %v7984_v35 }
 0x5e9   :  { %v7999_v4 = vadd.f32 %v7995_v49, %v7985_v52  ;;  %v15105_v57 = vpack.c.bf16 %v7998_v6, %v7998_v6  ;;  %v10391_v6 = vld [vmem:[%s15234_s12] ss:$0 sm:$0xff]  ;;  %s11423_s12 = smov [#allocation2]  }
 0x5ea   :  { %s8783_s25 = sshll.u32 %s11423_s12, 4  ;;  %s8784_s25 = int_to_ptr.vmem [resolvable:$true] %s8783_s25 }
 0x5eb   :  { %v8001_v56 = vpack.c.bf16 %v7999_v4, %v7999_v4  ;;  %s11398_s26 = scalar_lea.vmem %s8784_s25, 32  ;;  %p11403_p1 = scmp.lt.s32.totalorder %s8784_s25, %s8784_s25 }
 0x5ec   :  { %p11399_p0 = scmp.ne.s32.totalorder %s8784_s25, %s11398_s26  ;;  %p11404_p2 = scmp.lt.s32.totalorder %s11398_s26, %s11398_s26 }
 0x5ed   :  { %8162 = vmatprep.mubr.bf16.mxu1 %v8001_v56  ;;  %8501 = vmatprep.mubr.bf16.mxu0 %v8001_v56 }
 0x5ee   :  { %8163 = vmatmul.mubr.bf16.vlgmr.msra.gmra.mxu1 %v15105_v57  ;;  %8502 = vmatmul.mubr.bf16.vlgmr.msra.gmra.mxu0 %v15105_v57  ;;  %p11405_p3 = por %p11404_p2, %p11403_p1 }
 0x5ef   :  { %10420 = vmatpush3.bf16.msra.mxu1 %v11357_v59  ;;  %8331 = vmatprep.mubr.bf16.mxu1 %v8001_v56 }
 0x5f0   :  { %10421 = vmatprep.subr.bf16.mxu1 %v11358_v29  ;;  %10491 = vmatpush3.bf16.msra.mxu0 %v11388_v27  ;;  %p11406_p4 = pnand %p11405_p3, %p11399_p0 }
 0x5f1   :  { %10492 = vmatprep.subr.bf16.mxu0 %v11421_v30  ;;  %10498 = vmatprep.mubr.msk.bf16.mxu0 %vm11422_vm0, %v11421_v30 }
 0x5f3   :  { %10422 = vmatpush3.bf16.msra.mxu1 %v11359_v37 }
 0x5f4   :  { %10423 = vmatprep.subr.bf16.mxu1 %v11360_v22  ;;  %10493 = vmatpush3.bf16.msra.mxu0 %v11389_v53 }
 0x5f5   :  { %10494 = vmatprep.subr.bf16.mxu0 %v11421_v30 }
 0x5f7   :  { %10424 = vmatpush3.bf16.msra.mxu1 %v11361_v25 }
 0x5f8   :  { %10425 = vmatprep.subr.bf16.mxu1 %v11362_v40  ;;  %10495 = vmatpush3.bf16.msra.mxu0 %v11390_v21 }
 0x5f9   :  { %10496 = vmatprep.subr.bf16.mxu0 %v11421_v30 }
 0x5fb   :  { %10426 = vmatpush3.bf16.msra.mxu1 %v11363_v58 }
 0x5fc   :  { %10427 = vmatprep.subr.bf16.mxu1 %v11364_v44  ;;  %10497 = vmatpush3.bf16.msra.mxu0 %v11391_v60 }
 0x5ff   :  { %10428 = vmatpush3.bf16.msra.mxu1 %v11365_v32 }
 0x600   :  { %10429 = vmatprep.subr.bf16.mxu1 %v11366_v10 }
 0x603   :  { %10430 = vmatpush3.bf16.msra.mxu1 %v11367_v1 }
 0x604   :  { %10431 = vmatprep.subr.bf16.mxu1 %v11368_v3 }
 0x607   :  { %10432 = vmatpush3.bf16.msra.mxu1 %v11369_v8 }
 0x608   :  { %10433 = vmatprep.subr.bf16.mxu1 %v11370_v14 }
 0x60b   :  { %10434 = vmatpush3.bf16.msra.mxu1 %v11371_v54 }
 0x60c   :  { %10463 = vmatprep.subr.bf16.mxu1 %v11372_v33 }
 0x60e   :  { %8332 = vmatmul.mubr.bf16.vlgmr.msra.gmra.mxu1 %v15105_v57 }
 0x60f   :  { %10464 = vmatpush3.bf16.msra.mxu1 %v11373_v19  ;;  %8671 = vmatprep.mubr.bf16.mxu1 %v8001_v56 }
 0x610   :  { %10465 = vmatprep.subr.bf16.mxu1 %v11374_v18 }
 0x613   :  { %10466 = vmatpush3.bf16.msra.mxu1 %v11375_v13 }
 0x614   :  { %10467 = vmatprep.subr.bf16.mxu1 %v11376_v5 }
 0x617   :  { %10468 = vmatpush3.bf16.msra.mxu1 %v11377_v17 }
 0x618   :  { %10469 = vmatprep.subr.bf16.mxu1 %v11378_v15 }
 0x61b   :  { %10470 = vmatpush3.bf16.msra.mxu1 %v11379_v31 }
 0x61c   :  { %10471 = vmatprep.subr.bf16.mxu1 %v11380_v12 }
 0x61f   :  { %10472 = vmatpush3.bf16.msra.mxu1 %v11381_v36 }
 0x620   :  { %10473 = vmatprep.subr.bf16.mxu1 %v11382_v55 }
 0x623   :  { %10474 = vmatpush3.bf16.msra.mxu1 %v11383_v20 }
 0x624   :  { %10475 = vmatprep.subr.bf16.mxu1 %v11384_v51 }
 0x627   :  { %10476 = vmatpush3.bf16.msra.mxu1 %v11385_v23 }
 0x628   :  { %10477 = vmatprep.subr.bf16.mxu1 %v11386_v24 }
 0x62b   :  { %10478 = vmatpush3.bf16.msra.mxu1 %v11387_v26 }
 0x62e   :  { %8672 = vmatmul.mubr.bf16.vlgmr.msra.gmra.mxu1 %v15105_v57 }
 0x6ae   :  { %v10413_v34 = vpop.f32.mrf.mxu1  ;;  %v10457_v63 = vpop.f32.mrf.mxu0 }
 0x6b0   :  { %v10414_v45 = vpop.f32.mrf.mxu1  ;;  %v10458_v43 = vpop.f32.mrf.mxu0 }
 0x6b1   :  { %v10415_v61 = vadd.f32 %v10414_v45, %v10413_v34  ;;  %v10459_v50 = vadd.f32 %v10458_v43, %v10457_v63 }
 0x6b2   :  { %v10416_v0 = vpop.f32.mrf.mxu1  ;;  %v10460_v42 = vpop.f32.mrf.mxu0 }
 0x6b4   :  { %v10417_v46 = vpop.f32.mrf.mxu1  ;;  %v10461_v62 = vpop.f32.mrf.mxu0 }
 0x6ce   :  { %v10435_v47 = vpop.f32.mrf.mxu1 }
 0x6d0   :  { %v10436_v2 = vpop.f32.mrf.mxu1 }
 0x6d1   :  { %v10437_v11 = vadd.f32 %v10436_v2, %v10435_v47 }
 0x6d2   :  { %v10438_v28 = vpop.f32.mrf.mxu1 }
 0x6d3   :  { %v8339_v9 = vmax.f32 %v10415_v61, %v10437_v11 }
 0x6d4   :  { %v10439_v48 = vpop.f32.mrf.mxu1 }
 0x6d5   :  { %v8509_v7 = vmax.f32 %v8339_v9, %v10459_v50 }
 0x6ee   :  { %v10479_v39 = vpop.f32.mrf.mxu1 }
 0x6f0   :  { %v10480_v38 = vpop.f32.mrf.mxu1 }
 0x6f1   :  { %v10481_v35 = vadd.f32 %v10480_v38, %v10479_v39 }
 0x6f2   :  { %v10482_v16 = vpop.f32.mrf.mxu1 }
 0x6f3   :  { %v8679_v49 = vmax.f32 %v8509_v7, %v10481_v35 }
 0x6f4   :  { %v10483_v41 = vpop.f32.mrf.mxu1 }
 0x6f5   :  { %v8680_v52 = vpack.c.bf16 %v8679_v49, %v8679_v49 }
 0x6f7   :  { %10499 = vmatmul.mubr.msk.bf16.vlgmr.msra.gmra.mxu0 %vm8720_vm1, %v8680_v52 }
 0x7b7   :  { %v8758_v4 = vpop.f32.mrf.mxu0 }
 0x7b8   :  { %v8759_v56 = vadd.f32 %v10391_v6, %v8758_v4 }
 0x7b9   :  { %v10500_v59 = vpop.f32.mrf.mxu0 }
 0x7ba   :  { %v8765_v57 = vsel %vm8764_vm2, %v8759_v56, -inf }
 0x7bb   :  { %8766 = vmax.xlane.f32.xlu0 %v8765_v57  ;;  %v8761_v29 = vpop.f32.mrf.mxu0 }
 0x7bd   :  { %v10501_v37 = vpop.f32.mrf.mxu0 }
 0x844   :  { %v8767_v22 = vpop.xlane.xlu0 %8766 }
 0x845   :  { %v8768_v25 = vsub.f32 %v8759_v56, %v8767_v22 }
 0x847   :  { %v8769_v40 = vmul.f32 1.442695, %v8768_v25 }
 0x849   :  { %11392 = vpow2.f32 %v8769_v40 }
 0x856   :  { %v11393_v58 = vpop.eup %11392 }
 0x857   :  { %v8771_v44 = vsel %vm8764_vm2, %v11393_v58, 0.0 }
 0x858   :  { %8772 = vadd.xlane.f32.xlu0 %v8771_v44 }
 0x8e1   :  { %v8773_v32 = vpop.xlane.xlu0 %8772 }
 0x8e2   :  { %11394 = vrcp.f32 %v8773_v32 }
 0x8ef   :  { %v11395_v10 = vpop.eup %11394 }
 0x8f0   :  { %v8775_v1 = vmul.f32 %v11395_v10, %v11393_v58 }
 0x8f2   :  { %8776 = vst.msk [vmem:[#allocation2] sm:$0x3] %vm8764_vm2, %v8775_v1 }
 0x8f3   :  { %11409 = shalt.err (!%p11406_p4)
}
 0x8f4   :  { %8786 = dma.vmem_to_hbm [thread:$0]  %s8784_s25, 32, %s15235_s13, [#allocation3]  }
 0x8f5   :  { %11418 = dma.done.wait [#allocation3], 32  }
 0x8f6   :  { %11419 = vsyncadd [#allocation3], 4294967264 }
 0x8f7   :  { %8790 = vsyncpa [#allocation3], 1 }

</bundles_post_ra>
